<compile_context>
chip_gen: v7x
topology: tpu7x:2x2x1
jax: 0.10.0
libtpu: 0.0.40
codegen_flags: <defaults>
</compile_context>

<pallas_src>
import functools

import numpy as np
import jax
import jax.numpy as jnp
from jax import lax
from jax.experimental import pallas as pl
from jax.experimental.pallas import tpu as pltpu

# ---- module hyper-parameters (mirroring Model8.__init__) --------------------
INPUT_SIZE = 32                       # must be >= kernel_size (19)
OUTPUT_SIZE = 4
HIDDEN = 128                          # hard-coded in Model8
NUM_FILTERS = INPUT_SIZE              # num_filters = input_size
KERNEL_SIZE = 19
NUM_LAYERS = 2
CONV_OUT = INPUT_SIZE - KERNEL_SIZE + 1
PB = 8                                # batch padded to one full sublane tile


def model8_kernel(S, x_ref, w1_ref, b1_ref, wblk_hbm, b2_ref,
                  h01_ref, c01_ref, h02_ref, c02_ref,
                  out_ref, wblk_vmem, dma_sem):
    # x_ref    : (S*PB, T)      bf16, time-major rows (row s*PB + b == x[b, s])
    # w1_ref   : (T, 4H)        bf16, fused conv+pool+layer0-input projection
    # b1_ref   : (1, 4H)        f32, fused bias (conv bias + b_ih_l0 + b_hh_l0)
    # wblk_hbm : (2H, 8H)       bf16 in HBM: [[whh0.T, wih1.T], [0, whh1.T]]
    # b2_ref   : (1, 4H)        f32, b_ih_l1 + b_hh_l1
    # h01/c01/h02/c02 : (1, H)  f32 initial states per layer
    # out_ref  : (S*PB, H)      bf16, layer-1 hidden states, time-major
    # wblk_vmem: (2H, 8H)       bf16 VMEM scratch for the block-recurrent weight
    H = HIDDEN
    H4 = 4 * H

    # Start streaming the block-recurrent weight while the feed-forward matmul runs.
    wblk_copy = pltpu.make_async_copy(wblk_hbm, wblk_vmem, dma_sem)
    wblk_copy.start()

    # Fused conv + avgpool + layer-0 input projection for all (s, b) rows at once.
    z1 = jnp.dot(x_ref[...], w1_ref[...],
                 preferred_element_type=jnp.float32) + b1_ref[...]

    # Hoisted loads / broadcasts (the unrolled loop would re-emit them otherwise).
    b2 = jnp.broadcast_to(b2_ref[...], (PB, H4))
    h1_bf = jnp.broadcast_to(h01_ref[...], (PB, H)).astype(jnp.bfloat16)
    h2_bf = jnp.broadcast_to(h02_ref[...], (PB, H)).astype(jnp.bfloat16)
    c1 = jnp.broadcast_to(c01_ref[...], (PB, H))
    c2 = jnp.broadcast_to(c02_ref[...], (PB, H))

    def sigmoid(v):
        # one EUP tanh + one VALU FMA (instead of exp + reciprocal)
        return 0.5 * jnp.tanh(0.5 * v) + 0.5

    def lstm_gates(pre, c_prev):
        i = sigmoid(pre[:, 0:H])
        f = sigmoid(pre[:, H:2 * H])
        g = jnp.tanh(pre[:, 2 * H:3 * H])
        o = sigmoid(pre[:, 3 * H:4 * H])
        c_new = f * c_prev + i * g
        h_new = o * jnp.tanh(c_new)
        return h_new, c_new

    wblk_copy.wait()
    wblk = wblk_vmem[...]

    # Peeled recurrent projection for step 0, layer 0 (cols [4H:8H) of comb unused).
    comb = jnp.dot(jnp.concatenate([h1_bf, h2_bf], axis=-1), wblk,
                   preferred_element_type=jnp.float32)
    pre1 = z1[0:PB, :] + comb[:, 0:H4]

    # Software-pipelined recurrence: per serially-dependent step, one K=256 block
    # matmul + one gate block.  Fully unrolled (S small, static) -> static slices.
    for s in range(S):
        # ---- layer 0, step s ----
        h1, c1 = lstm_gates(pre1, c1)
        h1_bf = h1.astype(jnp.bfloat16)

        # [h1(s), h2(s-1)] @ [[whh0, wih1], [0, whh1]]
        #   cols [0:4H)  -> h1(s) @ whh0.T                (layer-0 rec term, step s+1)
        #   cols [4H:8H) -> h1(s) @ wih1.T + h2(s-1) @ whh1.T  (layer-1 pre-acts, s)
        comb = jnp.dot(jnp.concatenate([h1_bf, h2_bf], axis=-1), wblk,
                       preferred_element_type=jnp.float32)
        pre2 = comb[:, H4:2 * H4] + b2
        if s + 1 < S:
            pre1 = z1[(s + 1) * PB:(s + 2) * PB, :] + comb[:, 0:H4]

        # ---- layer 1, step s ----
        h2, c2 = lstm_gates(pre2, c2)
        h2_bf = h2.astype(jnp.bfloat16)

        # lane-dense (128 wide), sublane-aligned (8-row) store at a static offset
        out_ref[s * PB:(s + 1) * PB, :] = h2_bf


def model8_forward(x, params):
    (w_conv, b_conv,
     w_ih0, w_hh0, b_ih0, b_hh0,
     w_ih1, w_hh1, b_ih1, b_hh1,
     w_out, b_out, h0, c0) = params
    B, S, T = x.shape
    assert T == INPUT_SIZE and B <= PB

    # Conv1d(valid) + AvgPool1d(conv_out) collapse to:  pooled = x @ pool_m + b_conv
    # pool_m[p, f] = (1/conv_out) * sum_{k valid} w_conv[f, k]
    p_idx = np.arange(INPUT_SIZE)[:, None]
    k_idx = np.arange(KERNEL_SIZE)[None, :]
    count = jnp.asarray(
        ((p_idx - k_idx >= 0) & (p_idx - k_idx < CONV_OUT)).astype(np.float32))
    pool_m = (count @ w_conv.T) / CONV_OUT                        # (T, F)

    # Fuse pool matrix into the layer-0 LSTM input projection.
    w1 = (pool_m @ w_ih0.T).astype(jnp.bfloat16)                  # (T, 4H)
    b1 = (b_conv @ w_ih0.T + b_ih0 + b_hh0).reshape(1, 4 * HIDDEN)
    b2 = (b_ih1 + b_hh1).reshape(1, 4 * HIDDEN)

    # Block recurrent weight for the per-step fused matmul.
    wblk = jnp.concatenate(
        [jnp.concatenate([w_hh0.T, w_ih1.T], axis=1),
         jnp.concatenate([jnp.zeros((HIDDEN, 4 * HIDDEN), jnp.float32),
                          w_hh1.T], axis=1)],
        axis=0).astype(jnp.bfloat16)                              # (2H, 8H)

    # Time-major rows; batch padded to a full sublane tile so every per-step
    # slice/store inside the kernel is (8,128)-aligned.
    x_pad = jnp.zeros((PB, S, T), x.dtype).at[:B].set(x)
    x_tm = jnp.transpose(x_pad, (1, 0, 2)).reshape(S * PB, T).astype(jnp.bfloat16)

    kernel = functools.partial(model8_kernel, S)
    h_all = pl.pallas_call(
        kernel,
        out_shape=jax.ShapeDtypeStruct((S * PB, HIDDEN), jnp.bfloat16),
        grid_spec=pltpu.PrefetchScalarGridSpec(
            num_scalar_prefetch=0,
            grid=(1,),                               # whole (tiny) problem in one step
            in_specs=[
                pl.BlockSpec((S * PB, INPUT_SIZE), lambda i: (0, 0)),
                pl.BlockSpec((INPUT_SIZE, 4 * HIDDEN), lambda i: (0, 0)),
                pl.BlockSpec((1, 4 * HIDDEN), lambda i: (0, 0)),
                pl.BlockSpec(memory_space=pl.ANY),   # wblk: manual DMA inside kernel
                pl.BlockSpec((1, 4 * HIDDEN), lambda i: (0, 0)),
                pl.BlockSpec((1, HIDDEN), lambda i: (0, 0)),
                pl.BlockSpec((1, HIDDEN), lambda i: (0, 0)),
                pl.BlockSpec((1, HIDDEN), lambda i: (0, 0)),
                pl.BlockSpec((1, HIDDEN), lambda i: (0, 0)),
            ],
            out_specs=pl.BlockSpec((S * PB, HIDDEN), lambda i: (0, 0)),
            scratch_shapes=[
                pltpu.VMEM((2 * HIDDEN, 8 * HIDDEN), jnp.bfloat16),
                pltpu.SemaphoreType.DMA,
            ]),
        compiler_params=pltpu.CompilerParams(
            # single grid step; for large B one would tile batch here and mark it
            # "parallel" (v7x megacore)
            dimension_semantics=("arbitrary",)),
    )(x_tm, w1, b1, wblk, b2, h0[0], c0[0], h0[1], c0[1])

    # (S*PB, H) time-major -> drop padded rows -> (B, S, H); the 128 -> OUTPUT_SIZE
    # Linear stays in XLA so the kernel output is lane-dense.
    lstm_out = (h_all.reshape(S, PB, HIDDEN)[:, :B]
                .transpose(1, 0, 2).astype(jnp.float32))
    return lstm_out @ w_out.T + b_out


def reference_forward(x, params):
    """Pure-JAX reference matching the PyTorch Model8 forward semantics."""
    (w_conv, b_conv,
     w_ih0, w_hh0, b_ih0, b_hh0,
     w_ih1, w_hh1, b_ih1, b_hh1,
     w_out, b_out, h0, c0) = params
    B, S, T = x.shape
    xr = x.reshape(B * S, T)
    conv = jnp.stack(
        [xr[:, t:t + KERNEL_SIZE] @ w_conv.T for t in range(CONV_OUT)],
        axis=-1) + b_conv[None, :, None]                 # (B*S, F, conv_out)
    pooled = conv.mean(axis=-1).reshape(B, S, NUM_FILTERS)

    def lstm_layer(inp, w_ih, w_hh, b_ih, b_hh, h_init, c_init):
        def cell(carry, x_t):
            h, c = carry
            gates = x_t @ w_ih.T + b_ih + h @ w_hh.T + b_hh
            i, f, g, o = jnp.split(gates, 4, axis=-1)
            i = jax.nn.sigmoid(i)
            f = jax.nn.sigmoid(f)
            g = jnp.tanh(g)
            o = jax.nn.sigmoid(o)
            c = f * c + i * g
            h = o * jnp.tanh(c)
            return (h, c), h
        hB = jnp.broadcast_to(h_init, (inp.shape[0], HIDDEN))
        cB = jnp.broadcast_to(c_init, (inp.shape[0], HIDDEN))
        _, hs = lax.scan(cell, (hB, cB), jnp.transpose(inp, (1, 0, 2)))
        return jnp.transpose(hs, (1, 0, 2))

    l0 = lstm_layer(pooled, w_ih0, w_hh0, b_ih0, b_hh0, h0[0], c0[0])
    l1 = lstm_layer(l0, w_ih1, w_hh1, b_ih1, b_hh1, h0[1], c0[1])
    return l1 @ w_out.T + b_out


if __name__ == "__main__":
    B, S = 2, 8
    key = jax.random.PRNGKey(0)
    ks = jax.random.split(key, 16)
    scale = 0.1
    w_conv = jax.random.normal(ks[0], (NUM_FILTERS, KERNEL_SIZE), jnp.float32) * scale
    b_conv = jax.random.normal(ks[1], (NUM_FILTERS,), jnp.float32) * scale
    w_ih0 = jax.random.normal(ks[2], (4 * HIDDEN, NUM_FILTERS), jnp.float32) * scale
    w_hh0 = jax.random.normal(ks[3], (4 * HIDDEN, HIDDEN), jnp.float32) * scale
    b_ih0 = jax.random.normal(ks[4], (4 * HIDDEN,), jnp.float32) * scale
    b_hh0 = jax.random.normal(ks[5], (4 * HIDDEN,), jnp.float32) * scale
    w_ih1 = jax.random.normal(ks[6], (4 * HIDDEN, HIDDEN), jnp.float32) * scale
    w_hh1 = jax.random.normal(ks[7], (4 * HIDDEN, HIDDEN), jnp.float32) * scale
    b_ih1 = jax.random.normal(ks[8], (4 * HIDDEN,), jnp.float32) * scale
    b_hh1 = jax.random.normal(ks[9], (4 * HIDDEN,), jnp.float32) * scale
    w_out = jax.random.normal(ks[10], (OUTPUT_SIZE, HIDDEN), jnp.float32) * scale
    b_out = jax.random.normal(ks[11], (OUTPUT_SIZE,), jnp.float32) * scale
    h0 = jax.random.uniform(ks[12], (NUM_LAYERS, 1, HIDDEN), jnp.float32)
    c0 = jax.random.uniform(ks[13], (NUM_LAYERS, 1, HIDDEN), jnp.float32)
    params = (w_conv, b_conv, w_ih0, w_hh0, b_ih0, b_hh0,
              w_ih1, w_hh1, b_ih1, b_hh1, w_out, b_out, h0, c0)

    x = jax.random.normal(ks[14], (B, S, INPUT_SIZE), jnp.float32)

    out = jax.block_until_ready(model8_forward(x, params))
    ref = jax.block_until_ready(reference_forward(x, params))

    assert out.shape == (B, S, OUTPUT_SIZE), out.shape
    np.testing.assert_allclose(np.asarray(out), np.asarray(ref),
                               rtol=2e-2, atol=2e-2)
    print("KERNEL_OK")
</pallas_src>

<mosaic_0001>
module attributes {stable_mosaic.version = 11 : i64} {
  func.func @model8_kernel(%arg0: i32, %arg1: memref<64x32xbf16, #tpu.memory_space<vmem>>, %arg2: memref<32x512xbf16, #tpu.memory_space<vmem>>, %arg3: memref<1x512xf32, #tpu.memory_space<vmem>>, %arg4: memref<256x1024xbf16, #tpu.memory_space<any>>, %arg5: memref<1x512xf32, #tpu.memory_space<vmem>>, %arg6: memref<1x128xf32, #tpu.memory_space<vmem>>, %arg7: memref<1x128xf32, #tpu.memory_space<vmem>>, %arg8: memref<1x128xf32, #tpu.memory_space<vmem>>, %arg9: memref<1x128xf32, #tpu.memory_space<vmem>>, %arg10: memref<64x128xbf16, #tpu.memory_space<vmem>>, %arg11: memref<256x1024xbf16, #tpu.memory_space<vmem>>, %arg12: memref<!tpu.dma_semaphore, #tpu.memory_space<semaphore_mem>>) attributes {dimension_semantics = [#tpu.dimension_semantics<arbitrary>], iteration_bounds = array<i64: 1>, scalar_prefetch = 0 : i64, scratch_operands = 2 : i64, tpu.core_type = #tpu.core_type<tc>, window_params = [{pipeline_mode = #tpu.pipeline_mode<synchronous>, transform_indices = @transform_0, window_bounds = array<i64: 64, 32>}, {pipeline_mode = #tpu.pipeline_mode<synchronous>, transform_indices = @transform_1, window_bounds = array<i64: 32, 512>}, {pipeline_mode = #tpu.pipeline_mode<synchronous>, transform_indices = @transform_2, window_bounds = array<i64: 1, 512>}, {}, {pipeline_mode = #tpu.pipeline_mode<synchronous>, transform_indices = @transform_4, window_bounds = array<i64: 1, 512>}, {pipeline_mode = #tpu.pipeline_mode<synchronous>, transform_indices = @transform_5, window_bounds = array<i64: 1, 128>}, {pipeline_mode = #tpu.pipeline_mode<synchronous>, transform_indices = @transform_6, window_bounds = array<i64: 1, 128>}, {pipeline_mode = #tpu.pipeline_mode<synchronous>, transform_indices = @transform_7, window_bounds = array<i64: 1, 128>}, {pipeline_mode = #tpu.pipeline_mode<synchronous>, transform_indices = @transform_8, window_bounds = array<i64: 1, 128>}, {pipeline_mode = #tpu.pipeline_mode<synchronous>, transform_indices = @transform_9, window_bounds = array<i64: 64, 128>}]} {
    tpu.enqueue_dma source(%arg4 : memref<256x1024xbf16, #tpu.memory_space<any>>) target(%arg11 : memref<256x1024xbf16, #tpu.memory_space<vmem>>) target_semaphore(%arg12 : memref<!tpu.dma_semaphore, #tpu.memory_space<semaphore_mem>>)
    %c0 = arith.constant 0 : index
    %c0_0 = arith.constant 0 : index
    %0 = vector.load %arg1[%c0, %c0_0] : memref<64x32xbf16, #tpu.memory_space<vmem>>, vector<64x32xbf16>
    %c0_1 = arith.constant 0 : index
    %c0_2 = arith.constant 0 : index
    %1 = vector.load %arg2[%c0_1, %c0_2] : memref<32x512xbf16, #tpu.memory_space<vmem>>, vector<32x512xbf16>
    %cst = arith.constant dense<0.000000e+00> : vector<64x512xf32>
    %2 = tpu.matmul %0, %1, %cst {dimension_numbers = #tpu.dot_dimension_numbers<[1], [0], [0], [1], [0, 0, 1, 1], [], []>} : vector<64x32xbf16>, vector<32x512xbf16>, vector<64x512xf32> -> vector<64x512xf32>
    %c0_3 = arith.constant 0 : index
    %c0_4 = arith.constant 0 : index
    %3 = vector.load %arg3[%c0_3, %c0_4] : memref<1x512xf32, #tpu.memory_space<vmem>>, vector<1x512xf32>
    %4 = vector.broadcast %3 : vector<1x512xf32> to vector<64x512xf32>
    %5 = arith.addf %2, %4 : vector<64x512xf32>
    %c0_5 = arith.constant 0 : index
    %c0_6 = arith.constant 0 : index
    %6 = vector.load %arg5[%c0_5, %c0_6] : memref<1x512xf32, #tpu.memory_space<vmem>>, vector<1x512xf32>
    %7 = vector.shape_cast %6 : vector<1x512xf32> to vector<1x512xf32>
    %8 = vector.broadcast %7 : vector<1x512xf32> to vector<8x512xf32>
    %c0_7 = arith.constant 0 : index
    %c0_8 = arith.constant 0 : index
    %9 = vector.load %arg6[%c0_7, %c0_8] : memref<1x128xf32, #tpu.memory_space<vmem>>, vector<1x128xf32>
    %10 = vector.shape_cast %9 : vector<1x128xf32> to vector<1x128xf32>
    %11 = vector.broadcast %10 : vector<1x128xf32> to vector<8x128xf32>
    %12 = arith.truncf %11 : vector<8x128xf32> to vector<8x128xbf16>
    %c0_9 = arith.constant 0 : index
    %c0_10 = arith.constant 0 : index
    %13 = vector.load %arg8[%c0_9, %c0_10] : memref<1x128xf32, #tpu.memory_space<vmem>>, vector<1x128xf32>
    %14 = vector.shape_cast %13 : vector<1x128xf32> to vector<1x128xf32>
    %15 = vector.broadcast %14 : vector<1x128xf32> to vector<8x128xf32>
    %16 = arith.truncf %15 : vector<8x128xf32> to vector<8x128xbf16>
    %c0_11 = arith.constant 0 : index
    %c0_12 = arith.constant 0 : index
    %17 = vector.load %arg7[%c0_11, %c0_12] : memref<1x128xf32, #tpu.memory_space<vmem>>, vector<1x128xf32>
    %18 = vector.shape_cast %17 : vector<1x128xf32> to vector<1x128xf32>
    %19 = vector.broadcast %18 : vector<1x128xf32> to vector<8x128xf32>
    %c0_13 = arith.constant 0 : index
    %c0_14 = arith.constant 0 : index
    %20 = vector.load %arg9[%c0_13, %c0_14] : memref<1x128xf32, #tpu.memory_space<vmem>>, vector<1x128xf32>
    %21 = vector.shape_cast %20 : vector<1x128xf32> to vector<1x128xf32>
    %22 = vector.broadcast %21 : vector<1x128xf32> to vector<8x128xf32>
    tpu.wait_dma2 semaphore(%arg12 : memref<!tpu.dma_semaphore, #tpu.memory_space<semaphore_mem>>) src(%arg4 : memref<256x1024xbf16, #tpu.memory_space<any>>) dst(%arg11 : memref<256x1024xbf16, #tpu.memory_space<vmem>>)
    %c0_15 = arith.constant 0 : index
    %c0_16 = arith.constant 0 : index
    %23 = vector.load %arg11[%c0_15, %c0_16] : memref<256x1024xbf16, #tpu.memory_space<vmem>>, vector<256x1024xbf16>
    %24 = tpu.concatenate %12, %16 in 1 : vector<8x128xbf16>, vector<8x128xbf16> -> vector<8x256xbf16>
    %cst_17 = arith.constant dense<0.000000e+00> : vector<8x1024xf32>
    %25 = tpu.matmul %24, %23, %cst_17 {dimension_numbers = #tpu.dot_dimension_numbers<[1], [0], [0], [1], [0, 0, 1, 1], [], []>} : vector<8x256xbf16>, vector<256x1024xbf16>, vector<8x1024xf32> -> vector<8x1024xf32>
    %26 = vector.extract_strided_slice %5 {offsets = [0, 0], sizes = [8, 512], strides = [1, 1]} : vector<64x512xf32> to vector<8x512xf32>
    %27 = vector.extract_strided_slice %25 {offsets = [0, 0], sizes = [8, 512], strides = [1, 1]} : vector<8x1024xf32> to vector<8x512xf32>
    %28 = arith.addf %26, %27 : vector<8x512xf32>
    %29 = vector.extract_strided_slice %28 {offsets = [0, 0], sizes = [8, 128], strides = [1, 1]} : vector<8x512xf32> to vector<8x128xf32>
    %cst_18 = arith.constant 5.000000e-01 : f32
    %30 = vector.broadcast %cst_18 : f32 to vector<8x128xf32>
    %31 = arith.mulf %30, %29 : vector<8x128xf32>
    %32 = math.tanh %31 : vector<8x128xf32>
    %cst_19 = arith.constant 5.000000e-01 : f32
    %33 = vector.broadcast %cst_19 : f32 to vector<8x128xf32>
    %34 = arith.mulf %33, %32 : vector<8x128xf32>
    %cst_20 = arith.constant 5.000000e-01 : f32
    %35 = vector.broadcast %cst_20 : f32 to vector<8x128xf32>
    %36 = arith.addf %34, %35 : vector<8x128xf32>
    %37 = vector.extract_strided_slice %28 {offsets = [0, 128], sizes = [8, 128], strides = [1, 1]} : vector<8x512xf32> to vector<8x128xf32>
    %cst_21 = arith.constant 5.000000e-01 : f32
    %38 = vector.broadcast %cst_21 : f32 to vector<8x128xf32>
    %39 = arith.mulf %38, %37 : vector<8x128xf32>
    %40 = math.tanh %39 : vector<8x128xf32>
    %cst_22 = arith.constant 5.000000e-01 : f32
    %41 = vector.broadcast %cst_22 : f32 to vector<8x128xf32>
    %42 = arith.mulf %41, %40 : vector<8x128xf32>
    %cst_23 = arith.constant 5.000000e-01 : f32
    %43 = vector.broadcast %cst_23 : f32 to vector<8x128xf32>
    %44 = arith.addf %42, %43 : vector<8x128xf32>
    %45 = vector.extract_strided_slice %28 {offsets = [0, 256], sizes = [8, 128], strides = [1, 1]} : vector<8x512xf32> to vector<8x128xf32>
    %46 = math.tanh %45 : vector<8x128xf32>
    %47 = vector.extract_strided_slice %28 {offsets = [0, 384], sizes = [8, 128], strides = [1, 1]} : vector<8x512xf32> to vector<8x128xf32>
    %cst_24 = arith.constant 5.000000e-01 : f32
    %48 = vector.broadcast %cst_24 : f32 to vector<8x128xf32>
    %49 = arith.mulf %48, %47 : vector<8x128xf32>
    %50 = math.tanh %49 : vector<8x128xf32>
    %cst_25 = arith.constant 5.000000e-01 : f32
    %51 = vector.broadcast %cst_25 : f32 to vector<8x128xf32>
    %52 = arith.mulf %51, %50 : vector<8x128xf32>
    %cst_26 = arith.constant 5.000000e-01 : f32
    %53 = vector.broadcast %cst_26 : f32 to vector<8x128xf32>
    %54 = arith.addf %52, %53 : vector<8x128xf32>
    %55 = arith.mulf %44, %19 : vector<8x128xf32>
    %56 = arith.mulf %36, %46 : vector<8x128xf32>
    %57 = arith.addf %55, %56 : vector<8x128xf32>
    %58 = math.tanh %57 : vector<8x128xf32>
    %59 = arith.mulf %54, %58 : vector<8x128xf32>
    %60 = arith.truncf %59 : vector<8x128xf32> to vector<8x128xbf16>
    %61 = tpu.concatenate %60, %16 in 1 : vector<8x128xbf16>, vector<8x128xbf16> -> vector<8x256xbf16>
    %cst_27 = arith.constant dense<0.000000e+00> : vector<8x1024xf32>
    %62 = tpu.matmul %61, %23, %cst_27 {dimension_numbers = #tpu.dot_dimension_numbers<[1], [0], [0], [1], [0, 0, 1, 1], [], []>} : vector<8x256xbf16>, vector<256x1024xbf16>, vector<8x1024xf32> -> vector<8x1024xf32>
    %63 = vector.extract_strided_slice %62 {offsets = [0, 512], sizes = [8, 512], strides = [1, 1]} : vector<8x1024xf32> to vector<8x512xf32>
    %64 = arith.addf %63, %8 : vector<8x512xf32>
    %65 = vector.extract_strided_slice %5 {offsets = [8, 0], sizes = [8, 512], strides = [1, 1]} : vector<64x512xf32> to vector<8x512xf32>
    %66 = vector.extract_strided_slice %62 {offsets = [0, 0], sizes = [8, 512], strides = [1, 1]} : vector<8x1024xf32> to vector<8x512xf32>
    %67 = arith.addf %65, %66 : vector<8x512xf32>
    %68 = vector.extract_strided_slice %64 {offsets = [0, 0], sizes = [8, 128], strides = [1, 1]} : vector<8x512xf32> to vector<8x128xf32>
    %cst_28 = arith.constant 5.000000e-01 : f32
    %69 = vector.broadcast %cst_28 : f32 to vector<8x128xf32>
    %70 = arith.mulf %69, %68 : vector<8x128xf32>
    %71 = math.tanh %70 : vector<8x128xf32>
    %cst_29 = arith.constant 5.000000e-01 : f32
    %72 = vector.broadcast %cst_29 : f32 to vector<8x128xf32>
    %73 = arith.mulf %72, %71 : vector<8x128xf32>
    %cst_30 = arith.constant 5.000000e-01 : f32
    %74 = vector.broadcast %cst_30 : f32 to vector<8x128xf32>
    %75 = arith.addf %73, %74 : vector<8x128xf32>
    %76 = vector.extract_strided_slice %64 {offsets = [0, 128], sizes = [8, 128], strides = [1, 1]} : vector<8x512xf32> to vector<8x128xf32>
    %cst_31 = arith.constant 5.000000e-01 : f32
    %77 = vector.broadcast %cst_31 : f32 to vector<8x128xf32>
    %78 = arith.mulf %77, %76 : vector<8x128xf32>
    %79 = math.tanh %78 : vector<8x128xf32>
    %cst_32 = arith.constant 5.000000e-01 : f32
    %80 = vector.broadcast %cst_32 : f32 to vector<8x128xf32>
    %81 = arith.mulf %80, %79 : vector<8x128xf32>
    %cst_33 = arith.constant 5.000000e-01 : f32
    %82 = vector.broadcast %cst_33 : f32 to vector<8x128xf32>
    %83 = arith.addf %81, %82 : vector<8x128xf32>
    %84 = vector.extract_strided_slice %64 {offsets = [0, 256], sizes = [8, 128], strides = [1, 1]} : vector<8x512xf32> to vector<8x128xf32>
    %85 = math.tanh %84 : vector<8x128xf32>
    %86 = vector.extract_strided_slice %64 {offsets = [0, 384], sizes = [8, 128], strides = [1, 1]} : vector<8x512xf32> to vector<8x128xf32>
    %cst_34 = arith.constant 5.000000e-01 : f32
    %87 = vector.broadcast %cst_34 : f32 to vector<8x128xf32>
    %88 = arith.mulf %87, %86 : vector<8x128xf32>
    %89 = math.tanh %88 : vector<8x128xf32>
    %cst_35 = arith.constant 5.000000e-01 : f32
    %90 = vector.broadcast %cst_35 : f32 to vector<8x128xf32>
    %91 = arith.mulf %90, %89 : vector<8x128xf32>
    %cst_36 = arith.constant 5.000000e-01 : f32
    %92 = vector.broadcast %cst_36 : f32 to vector<8x128xf32>
    %93 = arith.addf %91, %92 : vector<8x128xf32>
    %94 = arith.mulf %83, %22 : vector<8x128xf32>
    %95 = arith.mulf %75, %85 : vector<8x128xf32>
    %96 = arith.addf %94, %95 : vector<8x128xf32>
    %97 = math.tanh %96 : vector<8x128xf32>
    %98 = arith.mulf %93, %97 : vector<8x128xf32>
    %99 = arith.truncf %98 : vector<8x128xf32> to vector<8x128xbf16>
    %c0_37 = arith.constant 0 : index
    %c0_38 = arith.constant 0 : index
    %100 = vector.load %arg10[%c0_37, %c0_38] : memref<64x128xbf16, #tpu.memory_space<vmem>>, vector<8x128xbf16>
    tpu.vector_store %arg10[%c0_37, %c0_38], %99 {strides = array<i32>} : memref<64x128xbf16, #tpu.memory_space<vmem>>, vector<8x128xbf16>,
    %101 = vector.extract_strided_slice %67 {offsets = [0, 0], sizes = [8, 128], strides = [1, 1]} : vector<8x512xf32> to vector<8x128xf32>
    %cst_39 = arith.constant 5.000000e-01 : f32
    %102 = vector.broadcast %cst_39 : f32 to vector<8x128xf32>
    %103 = arith.mulf %102, %101 : vector<8x128xf32>
    %104 = math.tanh %103 : vector<8x128xf32>
    %cst_40 = arith.constant 5.000000e-01 : f32
    %105 = vector.broadcast %cst_40 : f32 to vector<8x128xf32>
    %106 = arith.mulf %105, %104 : vector<8x128xf32>
    %cst_41 = arith.constant 5.000000e-01 : f32
    %107 = vector.broadcast %cst_41 : f32 to vector<8x128xf32>
    %108 = arith.addf %106, %107 : vector<8x128xf32>
    %109 = vector.extract_strided_slice %67 {offsets = [0, 128], sizes = [8, 128], strides = [1, 1]} : vector<8x512xf32> to vector<8x128xf32>
    %cst_42 = arith.constant 5.000000e-01 : f32
    %110 = vector.broadcast %cst_42 : f32 to vector<8x128xf32>
    %111 = arith.mulf %110, %109 : vector<8x128xf32>
    %112 = math.tanh %111 : vector<8x128xf32>
    %cst_43 = arith.constant 5.000000e-01 : f32
    %113 = vector.broadcast %cst_43 : f32 to vector<8x128xf32>
    %114 = arith.mulf %113, %112 : vector<8x128xf32>
    %cst_44 = arith.constant 5.000000e-01 : f32
    %115 = vector.broadcast %cst_44 : f32 to vector<8x128xf32>
    %116 = arith.addf %114, %115 : vector<8x128xf32>
    %117 = vector.extract_strided_slice %67 {offsets = [0, 256], sizes = [8, 128], strides = [1, 1]} : vector<8x512xf32> to vector<8x128xf32>
    %118 = math.tanh %117 : vector<8x128xf32>
    %119 = vector.extract_strided_slice %67 {offsets = [0, 384], sizes = [8, 128], strides = [1, 1]} : vector<8x512xf32> to vector<8x128xf32>
    %cst_45 = arith.constant 5.000000e-01 : f32
    %120 = vector.broadcast %cst_45 : f32 to vector<8x128xf32>
    %121 = arith.mulf %120, %119 : vector<8x128xf32>
    %122 = math.tanh %121 : vector<8x128xf32>
    %cst_46 = arith.constant 5.000000e-01 : f32
    %123 = vector.broadcast %cst_46 : f32 to vector<8x128xf32>
    %124 = arith.mulf %123, %122 : vector<8x128xf32>
    %cst_47 = arith.constant 5.000000e-01 : f32
    %125 = vector.broadcast %cst_47 : f32 to vector<8x128xf32>
    %126 = arith.addf %124, %125 : vector<8x128xf32>
    %127 = arith.mulf %116, %57 : vector<8x128xf32>
    %128 = arith.mulf %108, %118 : vector<8x128xf32>
    %129 = arith.addf %127, %128 : vector<8x128xf32>
    %130 = math.tanh %129 : vector<8x128xf32>
    %131 = arith.mulf %126, %130 : vector<8x128xf32>
    %132 = arith.truncf %131 : vector<8x128xf32> to vector<8x128xbf16>
    %133 = tpu.concatenate %132, %99 in 1 : vector<8x128xbf16>, vector<8x128xbf16> -> vector<8x256xbf16>
    %cst_48 = arith.constant dense<0.000000e+00> : vector<8x1024xf32>
    %134 = tpu.matmul %133, %23, %cst_48 {dimension_numbers = #tpu.dot_dimension_numbers<[1], [0], [0], [1], [0, 0, 1, 1], [], []>} : vector<8x256xbf16>, vector<256x1024xbf16>, vector<8x1024xf32> -> vector<8x1024xf32>
    %135 = vector.extract_strided_slice %134 {offsets = [0, 512], sizes = [8, 512], strides = [1, 1]} : vector<8x1024xf32> to vector<8x512xf32>
    %136 = arith.addf %135, %8 : vector<8x512xf32>
    %137 = vector.extract_strided_slice %5 {offsets = [16, 0], sizes = [8, 512], strides = [1, 1]} : vector<64x512xf32> to vector<8x512xf32>
    %138 = vector.extract_strided_slice %134 {offsets = [0, 0], sizes = [8, 512], strides = [1, 1]} : vector<8x1024xf32> to vector<8x512xf32>
    %139 = arith.addf %137, %138 : vector<8x512xf32>
    %140 = vector.extract_strided_slice %136 {offsets = [0, 0], sizes = [8, 128], strides = [1, 1]} : vector<8x512xf32> to vector<8x128xf32>
    %cst_49 = arith.constant 5.000000e-01 : f32
    %141 = vector.broadcast %cst_49 : f32 to vector<8x128xf32>
    %142 = arith.mulf %141, %140 : vector<8x128xf32>
    %143 = math.tanh %142 : vector<8x128xf32>
    %cst_50 = arith.constant 5.000000e-01 : f32
    %144 = vector.broadcast %cst_50 : f32 to vector<8x128xf32>
    %145 = arith.mulf %144, %143 : vector<8x128xf32>
    %cst_51 = arith.constant 5.000000e-01 : f32
    %146 = vector.broadcast %cst_51 : f32 to vector<8x128xf32>
    %147 = arith.addf %145, %146 : vector<8x128xf32>
    %148 = vector.extract_strided_slice %136 {offsets = [0, 128], sizes = [8, 128], strides = [1, 1]} : vector<8x512xf32> to vector<8x128xf32>
    %cst_52 = arith.constant 5.000000e-01 : f32
    %149 = vector.broadcast %cst_52 : f32 to vector<8x128xf32>
    %150 = arith.mulf %149, %148 : vector<8x128xf32>
    %151 = math.tanh %150 : vector<8x128xf32>
    %cst_53 = arith.constant 5.000000e-01 : f32
    %152 = vector.broadcast %cst_53 : f32 to vector<8x128xf32>
    %153 = arith.mulf %152, %151 : vector<8x128xf32>
    %cst_54 = arith.constant 5.000000e-01 : f32
    %154 = vector.broadcast %cst_54 : f32 to vector<8x128xf32>
    %155 = arith.addf %153, %154 : vector<8x128xf32>
    %156 = vector.extract_strided_slice %136 {offsets = [0, 256], sizes = [8, 128], strides = [1, 1]} : vector<8x512xf32> to vector<8x128xf32>
    %157 = math.tanh %156 : vector<8x128xf32>
    %158 = vector.extract_strided_slice %136 {offsets = [0, 384], sizes = [8, 128], strides = [1, 1]} : vector<8x512xf32> to vector<8x128xf32>
    %cst_55 = arith.constant 5.000000e-01 : f32
    %159 = vector.broadcast %cst_55 : f32 to vector<8x128xf32>
    %160 = arith.mulf %159, %158 : vector<8x128xf32>
    %161 = math.tanh %160 : vector<8x128xf32>
    %cst_56 = arith.constant 5.000000e-01 : f32
    %162 = vector.broadcast %cst_56 : f32 to vector<8x128xf32>
    %163 = arith.mulf %162, %161 : vector<8x128xf32>
    %cst_57 = arith.constant 5.000000e-01 : f32
    %164 = vector.broadcast %cst_57 : f32 to vector<8x128xf32>
    %165 = arith.addf %163, %164 : vector<8x128xf32>
    %166 = arith.mulf %155, %96 : vector<8x128xf32>
    %167 = arith.mulf %147, %157 : vector<8x128xf32>
    %168 = arith.addf %166, %167 : vector<8x128xf32>
    %169 = math.tanh %168 : vector<8x128xf32>
    %170 = arith.mulf %165, %169 : vector<8x128xf32>
    %171 = arith.truncf %170 : vector<8x128xf32> to vector<8x128xbf16>
    %c8 = arith.constant 8 : index
    %c0_58 = arith.constant 0 : index
    %172 = vector.load %arg10[%c8, %c0_58] : memref<64x128xbf16, #tpu.memory_space<vmem>>, vector<8x128xbf16>
    tpu.vector_store %arg10[%c8, %c0_58], %171 {strides = array<i32>} : memref<64x128xbf16, #tpu.memory_space<vmem>>, vector<8x128xbf16>,
    %173 = vector.extract_strided_slice %139 {offsets = [0, 0], sizes = [8, 128], strides = [1, 1]} : vector<8x512xf32> to vector<8x128xf32>
    %cst_59 = arith.constant 5.000000e-01 : f32
    %174 = vector.broadcast %cst_59 : f32 to vector<8x128xf32>
    %175 = arith.mulf %174, %173 : vector<8x128xf32>
    %176 = math.tanh %175 : vector<8x128xf32>
    %cst_60 = arith.constant 5.000000e-01 : f32
    %177 = vector.broadcast %cst_60 : f32 to vector<8x128xf32>
    %178 = arith.mulf %177, %176 : vector<8x128xf32>
    %cst_61 = arith.constant 5.000000e-01 : f32
    %179 = vector.broadcast %cst_61 : f32 to vector<8x128xf32>
    %180 = arith.addf %178, %179 : vector<8x128xf32>
    %181 = vector.extract_strided_slice %139 {offsets = [0, 128], sizes = [8, 128], strides = [1, 1]} : vector<8x512xf32> to vector<8x128xf32>
    %cst_62 = arith.constant 5.000000e-01 : f32
    %182 = vector.broadcast %cst_62 : f32 to vector<8x128xf32>
    %183 = arith.mulf %182, %181 : vector<8x128xf32>
    %184 = math.tanh %183 : vector<8x128xf32>
    %cst_63 = arith.constant 5.000000e-01 : f32
    %185 = vector.broadcast %cst_63 : f32 to vector<8x128xf32>
    %186 = arith.mulf %185, %184 : vector<8x128xf32>
    %cst_64 = arith.constant 5.000000e-01 : f32
    %187 = vector.broadcast %cst_64 : f32 to vector<8x128xf32>
    %188 = arith.addf %186, %187 : vector<8x128xf32>
    %189 = vector.extract_strided_slice %139 {offsets = [0, 256], sizes = [8, 128], strides = [1, 1]} : vector<8x512xf32> to vector<8x128xf32>
    %190 = math.tanh %189 : vector<8x128xf32>
    %191 = vector.extract_strided_slice %139 {offsets = [0, 384], sizes = [8, 128], strides = [1, 1]} : vector<8x512xf32> to vector<8x128xf32>
    %cst_65 = arith.constant 5.000000e-01 : f32
    %192 = vector.broadcast %cst_65 : f32 to vector<8x128xf32>
    %193 = arith.mulf %192, %191 : vector<8x128xf32>
    %194 = math.tanh %193 : vector<8x128xf32>
    %cst_66 = arith.constant 5.000000e-01 : f32
    %195 = vector.broadcast %cst_66 : f32 to vector<8x128xf32>
    %196 = arith.mulf %195, %194 : vector<8x128xf32>
    %cst_67 = arith.constant 5.000000e-01 : f32
    %197 = vector.broadcast %cst_67 : f32 to vector<8x128xf32>
    %198 = arith.addf %196, %197 : vector<8x128xf32>
    %199 = arith.mulf %188, %129 : vector<8x128xf32>
    %200 = arith.mulf %180, %190 : vector<8x128xf32>
    %201 = arith.addf %199, %200 : vector<8x128xf32>
    %202 = math.tanh %201 : vector<8x128xf32>
    %203 = arith.mulf %198, %202 : vector<8x128xf32>
    %204 = arith.truncf %203 : vector<8x128xf32> to vector<8x128xbf16>
    %205 = tpu.concatenate %204, %171 in 1 : vector<8x128xbf16>, vector<8x128xbf16> -> vector<8x256xbf16>
    %cst_68 = arith.constant dense<0.000000e+00> : vector<8x1024xf32>
    %206 = tpu.matmul %205, %23, %cst_68 {dimension_numbers = #tpu.dot_dimension_numbers<[1], [0], [0], [1], [0, 0, 1, 1], [], []>} : vector<8x256xbf16>, vector<256x1024xbf16>, vector<8x1024xf32> -> vector<8x1024xf32>
    %207 = vector.extract_strided_slice %206 {offsets = [0, 512], sizes = [8, 512], strides = [1, 1]} : vector<8x1024xf32> to vector<8x512xf32>
    %208 = arith.addf %207, %8 : vector<8x512xf32>
    %209 = vector.extract_strided_slice %5 {offsets = [24, 0], sizes = [8, 512], strides = [1, 1]} : vector<64x512xf32> to vector<8x512xf32>
    %210 = vector.extract_strided_slice %206 {offsets = [0, 0], sizes = [8, 512], strides = [1, 1]} : vector<8x1024xf32> to vector<8x512xf32>
    %211 = arith.addf %209, %210 : vector<8x512xf32>
    %212 = vector.extract_strided_slice %208 {offsets = [0, 0], sizes = [8, 128], strides = [1, 1]} : vector<8x512xf32> to vector<8x128xf32>
    %cst_69 = arith.constant 5.000000e-01 : f32
    %213 = vector.broadcast %cst_69 : f32 to vector<8x128xf32>
    %214 = arith.mulf %213, %212 : vector<8x128xf32>
    %215 = math.tanh %214 : vector<8x128xf32>
    %cst_70 = arith.constant 5.000000e-01 : f32
    %216 = vector.broadcast %cst_70 : f32 to vector<8x128xf32>
    %217 = arith.mulf %216, %215 : vector<8x128xf32>
    %cst_71 = arith.constant 5.000000e-01 : f32
    %218 = vector.broadcast %cst_71 : f32 to vector<8x128xf32>
    %219 = arith.addf %217, %218 : vector<8x128xf32>
    %220 = vector.extract_strided_slice %208 {offsets = [0, 128], sizes = [8, 128], strides = [1, 1]} : vector<8x512xf32> to vector<8x128xf32>
    %cst_72 = arith.constant 5.000000e-01 : f32
    %221 = vector.broadcast %cst_72 : f32 to vector<8x128xf32>
    %222 = arith.mulf %221, %220 : vector<8x128xf32>
    %223 = math.tanh %222 : vector<8x128xf32>
    %cst_73 = arith.constant 5.000000e-01 : f32
    %224 = vector.broadcast %cst_73 : f32 to vector<8x128xf32>
    %225 = arith.mulf %224, %223 : vector<8x128xf32>
    %cst_74 = arith.constant 5.000000e-01 : f32
    %226 = vector.broadcast %cst_74 : f32 to vector<8x128xf32>
    %227 = arith.addf %225, %226 : vector<8x128xf32>
    %228 = vector.extract_strided_slice %208 {offsets = [0, 256], sizes = [8, 128], strides = [1, 1]} : vector<8x512xf32> to vector<8x128xf32>
    %229 = math.tanh %228 : vector<8x128xf32>
    %230 = vector.extract_strided_slice %208 {offsets = [0, 384], sizes = [8, 128], strides = [1, 1]} : vector<8x512xf32> to vector<8x128xf32>
    %cst_75 = arith.constant 5.000000e-01 : f32
    %231 = vector.broadcast %cst_75 : f32 to vector<8x128xf32>
    %232 = arith.mulf %231, %230 : vector<8x128xf32>
    %233 = math.tanh %232 : vector<8x128xf32>
    %cst_76 = arith.constant 5.000000e-01 : f32
    %234 = vector.broadcast %cst_76 : f32 to vector<8x128xf32>
    %235 = arith.mulf %234, %233 : vector<8x128xf32>
    %cst_77 = arith.constant 5.000000e-01 : f32
    %236 = vector.broadcast %cst_77 : f32 to vector<8x128xf32>
    %237 = arith.addf %235, %236 : vector<8x128xf32>
    %238 = arith.mulf %227, %168 : vector<8x128xf32>
    %239 = arith.mulf %219, %229 : vector<8x128xf32>
    %240 = arith.addf %238, %239 : vector<8x128xf32>
    %241 = math.tanh %240 : vector<8x128xf32>
    %242 = arith.mulf %237, %241 : vector<8x128xf32>
    %243 = arith.truncf %242 : vector<8x128xf32> to vector<8x128xbf16>
    %c16 = arith.constant 16 : index
    %c0_78 = arith.constant 0 : index
    %244 = vector.load %arg10[%c16, %c0_78] : memref<64x128xbf16, #tpu.memory_space<vmem>>, vector<8x128xbf16>
    tpu.vector_store %arg10[%c16, %c0_78], %243 {strides = array<i32>} : memref<64x128xbf16, #tpu.memory_space<vmem>>, vector<8x128xbf16>,
    %245 = vector.extract_strided_slice %211 {offsets = [0, 0], sizes = [8, 128], strides = [1, 1]} : vector<8x512xf32> to vector<8x128xf32>
    %cst_79 = arith.constant 5.000000e-01 : f32
    %246 = vector.broadcast %cst_79 : f32 to vector<8x128xf32>
    %247 = arith.mulf %246, %245 : vector<8x128xf32>
    %248 = math.tanh %247 : vector<8x128xf32>
    %cst_80 = arith.constant 5.000000e-01 : f32
    %249 = vector.broadcast %cst_80 : f32 to vector<8x128xf32>
    %250 = arith.mulf %249, %248 : vector<8x128xf32>
    %cst_81 = arith.constant 5.000000e-01 : f32
    %251 = vector.broadcast %cst_81 : f32 to vector<8x128xf32>
    %252 = arith.addf %250, %251 : vector<8x128xf32>
    %253 = vector.extract_strided_slice %211 {offsets = [0, 128], sizes = [8, 128], strides = [1, 1]} : vector<8x512xf32> to vector<8x128xf32>
    %cst_82 = arith.constant 5.000000e-01 : f32
    %254 = vector.broadcast %cst_82 : f32 to vector<8x128xf32>
    %255 = arith.mulf %254, %253 : vector<8x128xf32>
    %256 = math.tanh %255 : vector<8x128xf32>
    %cst_83 = arith.constant 5.000000e-01 : f32
    %257 = vector.broadcast %cst_83 : f32 to vector<8x128xf32>
    %258 = arith.mulf %257, %256 : vector<8x128xf32>
    %cst_84 = arith.constant 5.000000e-01 : f32
    %259 = vector.broadcast %cst_84 : f32 to vector<8x128xf32>
    %260 = arith.addf %258, %259 : vector<8x128xf32>
    %261 = vector.extract_strided_slice %211 {offsets = [0, 256], sizes = [8, 128], strides = [1, 1]} : vector<8x512xf32> to vector<8x128xf32>
    %262 = math.tanh %261 : vector<8x128xf32>
    %263 = vector.extract_strided_slice %211 {offsets = [0, 384], sizes = [8, 128], strides = [1, 1]} : vector<8x512xf32> to vector<8x128xf32>
    %cst_85 = arith.constant 5.000000e-01 : f32
    %264 = vector.broadcast %cst_85 : f32 to vector<8x128xf32>
    %265 = arith.mulf %264, %263 : vector<8x128xf32>
    %266 = math.tanh %265 : vector<8x128xf32>
    %cst_86 = arith.constant 5.000000e-01 : f32
    %267 = vector.broadcast %cst_86 : f32 to vector<8x128xf32>
    %268 = arith.mulf %267, %266 : vector<8x128xf32>
    %cst_87 = arith.constant 5.000000e-01 : f32
    %269 = vector.broadcast %cst_87 : f32 to vector<8x128xf32>
    %270 = arith.addf %268, %269 : vector<8x128xf32>
    %271 = arith.mulf %260, %201 : vector<8x128xf32>
    %272 = arith.mulf %252, %262 : vector<8x128xf32>
    %273 = arith.addf %271, %272 : vector<8x128xf32>
    %274 = math.tanh %273 : vector<8x128xf32>
    %275 = arith.mulf %270, %274 : vector<8x128xf32>
    %276 = arith.truncf %275 : vector<8x128xf32> to vector<8x128xbf16>
    %277 = tpu.concatenate %276, %243 in 1 : vector<8x128xbf16>, vector<8x128xbf16> -> vector<8x256xbf16>
    %cst_88 = arith.constant dense<0.000000e+00> : vector<8x1024xf32>
    %278 = tpu.matmul %277, %23, %cst_88 {dimension_numbers = #tpu.dot_dimension_numbers<[1], [0], [0], [1], [0, 0, 1, 1], [], []>} : vector<8x256xbf16>, vector<256x1024xbf16>, vector<8x1024xf32> -> vector<8x1024xf32>
    %279 = vector.extract_strided_slice %278 {offsets = [0, 512], sizes = [8, 512], strides = [1, 1]} : vector<8x1024xf32> to vector<8x512xf32>
    %280 = arith.addf %279, %8 : vector<8x512xf32>
    %281 = vector.extract_strided_slice %5 {offsets = [32, 0], sizes = [8, 512], strides = [1, 1]} : vector<64x512xf32> to vector<8x512xf32>
    %282 = vector.extract_strided_slice %278 {offsets = [0, 0], sizes = [8, 512], strides = [1, 1]} : vector<8x1024xf32> to vector<8x512xf32>
    %283 = arith.addf %281, %282 : vector<8x512xf32>
    %284 = vector.extract_strided_slice %280 {offsets = [0, 0], sizes = [8, 128], strides = [1, 1]} : vector<8x512xf32> to vector<8x128xf32>
    %cst_89 = arith.constant 5.000000e-01 : f32
    %285 = vector.broadcast %cst_89 : f32 to vector<8x128xf32>
    %286 = arith.mulf %285, %284 : vector<8x128xf32>
    %287 = math.tanh %286 : vector<8x128xf32>
    %cst_90 = arith.constant 5.000000e-01 : f32
    %288 = vector.broadcast %cst_90 : f32 to vector<8x128xf32>
    %289 = arith.mulf %288, %287 : vector<8x128xf32>
    %cst_91 = arith.constant 5.000000e-01 : f32
    %290 = vector.broadcast %cst_91 : f32 to vector<8x128xf32>
    %291 = arith.addf %289, %290 : vector<8x128xf32>
    %292 = vector.extract_strided_slice %280 {offsets = [0, 128], sizes = [8, 128], strides = [1, 1]} : vector<8x512xf32> to vector<8x128xf32>
    %cst_92 = arith.constant 5.000000e-01 : f32
    %293 = vector.broadcast %cst_92 : f32 to vector<8x128xf32>
    %294 = arith.mulf %293, %292 : vector<8x128xf32>
    %295 = math.tanh %294 : vector<8x128xf32>
    %cst_93 = arith.constant 5.000000e-01 : f32
    %296 = vector.broadcast %cst_93 : f32 to vector<8x128xf32>
    %297 = arith.mulf %296, %295 : vector<8x128xf32>
    %cst_94 = arith.constant 5.000000e-01 : f32
    %298 = vector.broadcast %cst_94 : f32 to vector<8x128xf32>
    %299 = arith.addf %297, %298 : vector<8x128xf32>
    %300 = vector.extract_strided_slice %280 {offsets = [0, 256], sizes = [8, 128], strides = [1, 1]} : vector<8x512xf32> to vector<8x128xf32>
    %301 = math.tanh %300 : vector<8x128xf32>
    %302 = vector.extract_strided_slice %280 {offsets = [0, 384], sizes = [8, 128], strides = [1, 1]} : vector<8x512xf32> to vector<8x128xf32>
    %cst_95 = arith.constant 5.000000e-01 : f32
    %303 = vector.broadcast %cst_95 : f32 to vector<8x128xf32>
    %304 = arith.mulf %303, %302 : vector<8x128xf32>
    %305 = math.tanh %304 : vector<8x128xf32>
    %cst_96 = arith.constant 5.000000e-01 : f32
    %306 = vector.broadcast %cst_96 : f32 to vector<8x128xf32>
    %307 = arith.mulf %306, %305 : vector<8x128xf32>
    %cst_97 = arith.constant 5.000000e-01 : f32
    %308 = vector.broadcast %cst_97 : f32 to vector<8x128xf32>
    %309 = arith.addf %307, %308 : vector<8x128xf32>
    %310 = arith.mulf %299, %240 : vector<8x128xf32>
    %311 = arith.mulf %291, %301 : vector<8x128xf32>
    %312 = arith.addf %310, %311 : vector<8x128xf32>
    %313 = math.tanh %312 : vector<8x128xf32>
    %314 = arith.mulf %309, %313 : vector<8x128xf32>
    %315 = arith.truncf %314 : vector<8x128xf32> to vector<8x128xbf16>
    %c24 = arith.constant 24 : index
    %c0_98 = arith.constant 0 : index
    %316 = vector.load %arg10[%c24, %c0_98] : memref<64x128xbf16, #tpu.memory_space<vmem>>, vector<8x128xbf16>
    tpu.vector_store %arg10[%c24, %c0_98], %315 {strides = array<i32>} : memref<64x128xbf16, #tpu.memory_space<vmem>>, vector<8x128xbf16>,
    %317 = vector.extract_strided_slice %283 {offsets = [0, 0], sizes = [8, 128], strides = [1, 1]} : vector<8x512xf32> to vector<8x128xf32>
    %cst_99 = arith.constant 5.000000e-01 : f32
    %318 = vector.broadcast %cst_99 : f32 to vector<8x128xf32>
    %319 = arith.mulf %318, %317 : vector<8x128xf32>
    %320 = math.tanh %319 : vector<8x128xf32>
    %cst_100 = arith.constant 5.000000e-01 : f32
    %321 = vector.broadcast %cst_100 : f32 to vector<8x128xf32>
    %322 = arith.mulf %321, %320 : vector<8x128xf32>
    %cst_101 = arith.constant 5.000000e-01 : f32
    %323 = vector.broadcast %cst_101 : f32 to vector<8x128xf32>
    %324 = arith.addf %322, %323 : vector<8x128xf32>
    %325 = vector.extract_strided_slice %283 {offsets = [0, 128], sizes = [8, 128], strides = [1, 1]} : vector<8x512xf32> to vector<8x128xf32>
    %cst_102 = arith.constant 5.000000e-01 : f32
    %326 = vector.broadcast %cst_102 : f32 to vector<8x128xf32>
    %327 = arith.mulf %326, %325 : vector<8x128xf32>
    %328 = math.tanh %327 : vector<8x128xf32>
    %cst_103 = arith.constant 5.000000e-01 : f32
    %329 = vector.broadcast %cst_103 : f32 to vector<8x128xf32>
    %330 = arith.mulf %329, %328 : vector<8x128xf32>
    %cst_104 = arith.constant 5.000000e-01 : f32
    %331 = vector.broadcast %cst_104 : f32 to vector<8x128xf32>
    %332 = arith.addf %330, %331 : vector<8x128xf32>
    %333 = vector.extract_strided_slice %283 {offsets = [0, 256], sizes = [8, 128], strides = [1, 1]} : vector<8x512xf32> to vector<8x128xf32>
    %334 = math.tanh %333 : vector<8x128xf32>
    %335 = vector.extract_strided_slice %283 {offsets = [0, 384], sizes = [8, 128], strides = [1, 1]} : vector<8x512xf32> to vector<8x128xf32>
    %cst_105 = arith.constant 5.000000e-01 : f32
    %336 = vector.broadcast %cst_105 : f32 to vector<8x128xf32>
    %337 = arith.mulf %336, %335 : vector<8x128xf32>
    %338 = math.tanh %337 : vector<8x128xf32>
    %cst_106 = arith.constant 5.000000e-01 : f32
    %339 = vector.broadcast %cst_106 : f32 to vector<8x128xf32>
    %340 = arith.mulf %339, %338 : vector<8x128xf32>
    %cst_107 = arith.constant 5.000000e-01 : f32
    %341 = vector.broadcast %cst_107 : f32 to vector<8x128xf32>
    %342 = arith.addf %340, %341 : vector<8x128xf32>
    %343 = arith.mulf %332, %273 : vector<8x128xf32>
    %344 = arith.mulf %324, %334 : vector<8x128xf32>
    %345 = arith.addf %343, %344 : vector<8x128xf32>
    %346 = math.tanh %345 : vector<8x128xf32>
    %347 = arith.mulf %342, %346 : vector<8x128xf32>
    %348 = arith.truncf %347 : vector<8x128xf32> to vector<8x128xbf16>
    %349 = tpu.concatenate %348, %315 in 1 : vector<8x128xbf16>, vector<8x128xbf16> -> vector<8x256xbf16>
    %cst_108 = arith.constant dense<0.000000e+00> : vector<8x1024xf32>
    %350 = tpu.matmul %349, %23, %cst_108 {dimension_numbers = #tpu.dot_dimension_numbers<[1], [0], [0], [1], [0, 0, 1, 1], [], []>} : vector<8x256xbf16>, vector<256x1024xbf16>, vector<8x1024xf32> -> vector<8x1024xf32>
    %351 = vector.extract_strided_slice %350 {offsets = [0, 512], sizes = [8, 512], strides = [1, 1]} : vector<8x1024xf32> to vector<8x512xf32>
    %352 = arith.addf %351, %8 : vector<8x512xf32>
    %353 = vector.extract_strided_slice %5 {offsets = [40, 0], sizes = [8, 512], strides = [1, 1]} : vector<64x512xf32> to vector<8x512xf32>
    %354 = vector.extract_strided_slice %350 {offsets = [0, 0], sizes = [8, 512], strides = [1, 1]} : vector<8x1024xf32> to vector<8x512xf32>
    %355 = arith.addf %353, %354 : vector<8x512xf32>
    %356 = vector.extract_strided_slice %352 {offsets = [0, 0], sizes = [8, 128], strides = [1, 1]} : vector<8x512xf32> to vector<8x128xf32>
    %cst_109 = arith.constant 5.000000e-01 : f32
    %357 = vector.broadcast %cst_109 : f32 to vector<8x128xf32>
    %358 = arith.mulf %357, %356 : vector<8x128xf32>
    %359 = math.tanh %358 : vector<8x128xf32>
    %cst_110 = arith.constant 5.000000e-01 : f32
    %360 = vector.broadcast %cst_110 : f32 to vector<8x128xf32>
    %361 = arith.mulf %360, %359 : vector<8x128xf32>
    %cst_111 = arith.constant 5.000000e-01 : f32
    %362 = vector.broadcast %cst_111 : f32 to vector<8x128xf32>
    %363 = arith.addf %361, %362 : vector<8x128xf32>
    %364 = vector.extract_strided_slice %352 {offsets = [0, 128], sizes = [8, 128], strides = [1, 1]} : vector<8x512xf32> to vector<8x128xf32>
    %cst_112 = arith.constant 5.000000e-01 : f32
    %365 = vector.broadcast %cst_112 : f32 to vector<8x128xf32>
    %366 = arith.mulf %365, %364 : vector<8x128xf32>
    %367 = math.tanh %366 : vector<8x128xf32>
    %cst_113 = arith.constant 5.000000e-01 : f32
    %368 = vector.broadcast %cst_113 : f32 to vector<8x128xf32>
    %369 = arith.mulf %368, %367 : vector<8x128xf32>
    %cst_114 = arith.constant 5.000000e-01 : f32
    %370 = vector.broadcast %cst_114 : f32 to vector<8x128xf32>
    %371 = arith.addf %369, %370 : vector<8x128xf32>
    %372 = vector.extract_strided_slice %352 {offsets = [0, 256], sizes = [8, 128], strides = [1, 1]} : vector<8x512xf32> to vector<8x128xf32>
    %373 = math.tanh %372 : vector<8x128xf32>
    %374 = vector.extract_strided_slice %352 {offsets = [0, 384], sizes = [8, 128], strides = [1, 1]} : vector<8x512xf32> to vector<8x128xf32>
    %cst_115 = arith.constant 5.000000e-01 : f32
    %375 = vector.broadcast %cst_115 : f32 to vector<8x128xf32>
    %376 = arith.mulf %375, %374 : vector<8x128xf32>
    %377 = math.tanh %376 : vector<8x128xf32>
    %cst_116 = arith.constant 5.000000e-01 : f32
    %378 = vector.broadcast %cst_116 : f32 to vector<8x128xf32>
    %379 = arith.mulf %378, %377 : vector<8x128xf32>
    %cst_117 = arith.constant 5.000000e-01 : f32
    %380 = vector.broadcast %cst_117 : f32 to vector<8x128xf32>
    %381 = arith.addf %379, %380 : vector<8x128xf32>
    %382 = arith.mulf %371, %312 : vector<8x128xf32>
    %383 = arith.mulf %363, %373 : vector<8x128xf32>
    %384 = arith.addf %382, %383 : vector<8x128xf32>
    %385 = math.tanh %384 : vector<8x128xf32>
    %386 = arith.mulf %381, %385 : vector<8x128xf32>
    %387 = arith.truncf %386 : vector<8x128xf32> to vector<8x128xbf16>
    %c32 = arith.constant 32 : index
    %c0_118 = arith.constant 0 : index
    %388 = vector.load %arg10[%c32, %c0_118] : memref<64x128xbf16, #tpu.memory_space<vmem>>, vector<8x128xbf16>
    tpu.vector_store %arg10[%c32, %c0_118], %387 {strides = array<i32>} : memref<64x128xbf16, #tpu.memory_space<vmem>>, vector<8x128xbf16>,
    %389 = vector.extract_strided_slice %355 {offsets = [0, 0], sizes = [8, 128], strides = [1, 1]} : vector<8x512xf32> to vector<8x128xf32>
    %cst_119 = arith.constant 5.000000e-01 : f32
    %390 = vector.broadcast %cst_119 : f32 to vector<8x128xf32>
    %391 = arith.mulf %390, %389 : vector<8x128xf32>
    %392 = math.tanh %391 : vector<8x128xf32>
    %cst_120 = arith.constant 5.000000e-01 : f32
    %393 = vector.broadcast %cst_120 : f32 to vector<8x128xf32>
    %394 = arith.mulf %393, %392 : vector<8x128xf32>
    %cst_121 = arith.constant 5.000000e-01 : f32
    %395 = vector.broadcast %cst_121 : f32 to vector<8x128xf32>
    %396 = arith.addf %394, %395 : vector<8x128xf32>
    %397 = vector.extract_strided_slice %355 {offsets = [0, 128], sizes = [8, 128], strides = [1, 1]} : vector<8x512xf32> to vector<8x128xf32>
    %cst_122 = arith.constant 5.000000e-01 : f32
    %398 = vector.broadcast %cst_122 : f32 to vector<8x128xf32>
    %399 = arith.mulf %398, %397 : vector<8x128xf32>
    %400 = math.tanh %399 : vector<8x128xf32>
    %cst_123 = arith.constant 5.000000e-01 : f32
    %401 = vector.broadcast %cst_123 : f32 to vector<8x128xf32>
    %402 = arith.mulf %401, %400 : vector<8x128xf32>
    %cst_124 = arith.constant 5.000000e-01 : f32
    %403 = vector.broadcast %cst_124 : f32 to vector<8x128xf32>
    %404 = arith.addf %402, %403 : vector<8x128xf32>
    %405 = vector.extract_strided_slice %355 {offsets = [0, 256], sizes = [8, 128], strides = [1, 1]} : vector<8x512xf32> to vector<8x128xf32>
    %406 = math.tanh %405 : vector<8x128xf32>
    %407 = vector.extract_strided_slice %355 {offsets = [0, 384], sizes = [8, 128], strides = [1, 1]} : vector<8x512xf32> to vector<8x128xf32>
    %cst_125 = arith.constant 5.000000e-01 : f32
    %408 = vector.broadcast %cst_125 : f32 to vector<8x128xf32>
    %409 = arith.mulf %408, %407 : vector<8x128xf32>
    %410 = math.tanh %409 : vector<8x128xf32>
    %cst_126 = arith.constant 5.000000e-01 : f32
    %411 = vector.broadcast %cst_126 : f32 to vector<8x128xf32>
    %412 = arith.mulf %411, %410 : vector<8x128xf32>
    %cst_127 = arith.constant 5.000000e-01 : f32
    %413 = vector.broadcast %cst_127 : f32 to vector<8x128xf32>
    %414 = arith.addf %412, %413 : vector<8x128xf32>
    %415 = arith.mulf %404, %345 : vector<8x128xf32>
    %416 = arith.mulf %396, %406 : vector<8x128xf32>
    %417 = arith.addf %415, %416 : vector<8x128xf32>
    %418 = math.tanh %417 : vector<8x128xf32>
    %419 = arith.mulf %414, %418 : vector<8x128xf32>
    %420 = arith.truncf %419 : vector<8x128xf32> to vector<8x128xbf16>
    %421 = tpu.concatenate %420, %387 in 1 : vector<8x128xbf16>, vector<8x128xbf16> -> vector<8x256xbf16>
    %cst_128 = arith.constant dense<0.000000e+00> : vector<8x1024xf32>
    %422 = tpu.matmul %421, %23, %cst_128 {dimension_numbers = #tpu.dot_dimension_numbers<[1], [0], [0], [1], [0, 0, 1, 1], [], []>} : vector<8x256xbf16>, vector<256x1024xbf16>, vector<8x1024xf32> -> vector<8x1024xf32>
    %423 = vector.extract_strided_slice %422 {offsets = [0, 512], sizes = [8, 512], strides = [1, 1]} : vector<8x1024xf32> to vector<8x512xf32>
    %424 = arith.addf %423, %8 : vector<8x512xf32>
    %425 = vector.extract_strided_slice %5 {offsets = [48, 0], sizes = [8, 512], strides = [1, 1]} : vector<64x512xf32> to vector<8x512xf32>
    %426 = vector.extract_strided_slice %422 {offsets = [0, 0], sizes = [8, 512], strides = [1, 1]} : vector<8x1024xf32> to vector<8x512xf32>
    %427 = arith.addf %425, %426 : vector<8x512xf32>
    %428 = vector.extract_strided_slice %424 {offsets = [0, 0], sizes = [8, 128], strides = [1, 1]} : vector<8x512xf32> to vector<8x128xf32>
    %cst_129 = arith.constant 5.000000e-01 : f32
    %429 = vector.broadcast %cst_129 : f32 to vector<8x128xf32>
    %430 = arith.mulf %429, %428 : vector<8x128xf32>
    %431 = math.tanh %430 : vector<8x128xf32>
    %cst_130 = arith.constant 5.000000e-01 : f32
    %432 = vector.broadcast %cst_130 : f32 to vector<8x128xf32>
    %433 = arith.mulf %432, %431 : vector<8x128xf32>
    %cst_131 = arith.constant 5.000000e-01 : f32
    %434 = vector.broadcast %cst_131 : f32 to vector<8x128xf32>
    %435 = arith.addf %433, %434 : vector<8x128xf32>
    %436 = vector.extract_strided_slice %424 {offsets = [0, 128], sizes = [8, 128], strides = [1, 1]} : vector<8x512xf32> to vector<8x128xf32>
    %cst_132 = arith.constant 5.000000e-01 : f32
    %437 = vector.broadcast %cst_132 : f32 to vector<8x128xf32>
    %438 = arith.mulf %437, %436 : vector<8x128xf32>
    %439 = math.tanh %438 : vector<8x128xf32>
    %cst_133 = arith.constant 5.000000e-01 : f32
    %440 = vector.broadcast %cst_133 : f32 to vector<8x128xf32>
    %441 = arith.mulf %440, %439 : vector<8x128xf32>
    %cst_134 = arith.constant 5.000000e-01 : f32
    %442 = vector.broadcast %cst_134 : f32 to vector<8x128xf32>
    %443 = arith.addf %441, %442 : vector<8x128xf32>
    %444 = vector.extract_strided_slice %424 {offsets = [0, 256], sizes = [8, 128], strides = [1, 1]} : vector<8x512xf32> to vector<8x128xf32>
    %445 = math.tanh %444 : vector<8x128xf32>
    %446 = vector.extract_strided_slice %424 {offsets = [0, 384], sizes = [8, 128], strides = [1, 1]} : vector<8x512xf32> to vector<8x128xf32>
    %cst_135 = arith.constant 5.000000e-01 : f32
    %447 = vector.broadcast %cst_135 : f32 to vector<8x128xf32>
    %448 = arith.mulf %447, %446 : vector<8x128xf32>
    %449 = math.tanh %448 : vector<8x128xf32>
    %cst_136 = arith.constant 5.000000e-01 : f32
    %450 = vector.broadcast %cst_136 : f32 to vector<8x128xf32>
    %451 = arith.mulf %450, %449 : vector<8x128xf32>
    %cst_137 = arith.constant 5.000000e-01 : f32
    %452 = vector.broadcast %cst_137 : f32 to vector<8x128xf32>
    %453 = arith.addf %451, %452 : vector<8x128xf32>
    %454 = arith.mulf %443, %384 : vector<8x128xf32>
    %455 = arith.mulf %435, %445 : vector<8x128xf32>
    %456 = arith.addf %454, %455 : vector<8x128xf32>
    %457 = math.tanh %456 : vector<8x128xf32>
    %458 = arith.mulf %453, %457 : vector<8x128xf32>
    %459 = arith.truncf %458 : vector<8x128xf32> to vector<8x128xbf16>
    %c40 = arith.constant 40 : index
    %c0_138 = arith.constant 0 : index
    %460 = vector.load %arg10[%c40, %c0_138] : memref<64x128xbf16, #tpu.memory_space<vmem>>, vector<8x128xbf16>
    tpu.vector_store %arg10[%c40, %c0_138], %459 {strides = array<i32>} : memref<64x128xbf16, #tpu.memory_space<vmem>>, vector<8x128xbf16>,
    %461 = vector.extract_strided_slice %427 {offsets = [0, 0], sizes = [8, 128], strides = [1, 1]} : vector<8x512xf32> to vector<8x128xf32>
    %cst_139 = arith.constant 5.000000e-01 : f32
    %462 = vector.broadcast %cst_139 : f32 to vector<8x128xf32>
    %463 = arith.mulf %462, %461 : vector<8x128xf32>
    %464 = math.tanh %463 : vector<8x128xf32>
    %cst_140 = arith.constant 5.000000e-01 : f32
    %465 = vector.broadcast %cst_140 : f32 to vector<8x128xf32>
    %466 = arith.mulf %465, %464 : vector<8x128xf32>
    %cst_141 = arith.constant 5.000000e-01 : f32
    %467 = vector.broadcast %cst_141 : f32 to vector<8x128xf32>
    %468 = arith.addf %466, %467 : vector<8x128xf32>
    %469 = vector.extract_strided_slice %427 {offsets = [0, 128], sizes = [8, 128], strides = [1, 1]} : vector<8x512xf32> to vector<8x128xf32>
    %cst_142 = arith.constant 5.000000e-01 : f32
    %470 = vector.broadcast %cst_142 : f32 to vector<8x128xf32>
    %471 = arith.mulf %470, %469 : vector<8x128xf32>
    %472 = math.tanh %471 : vector<8x128xf32>
    %cst_143 = arith.constant 5.000000e-01 : f32
    %473 = vector.broadcast %cst_143 : f32 to vector<8x128xf32>
    %474 = arith.mulf %473, %472 : vector<8x128xf32>
    %cst_144 = arith.constant 5.000000e-01 : f32
    %475 = vector.broadcast %cst_144 : f32 to vector<8x128xf32>
    %476 = arith.addf %474, %475 : vector<8x128xf32>
    %477 = vector.extract_strided_slice %427 {offsets = [0, 256], sizes = [8, 128], strides = [1, 1]} : vector<8x512xf32> to vector<8x128xf32>
    %478 = math.tanh %477 : vector<8x128xf32>
    %479 = vector.extract_strided_slice %427 {offsets = [0, 384], sizes = [8, 128], strides = [1, 1]} : vector<8x512xf32> to vector<8x128xf32>
    %cst_145 = arith.constant 5.000000e-01 : f32
    %480 = vector.broadcast %cst_145 : f32 to vector<8x128xf32>
    %481 = arith.mulf %480, %479 : vector<8x128xf32>
    %482 = math.tanh %481 : vector<8x128xf32>
    %cst_146 = arith.constant 5.000000e-01 : f32
    %483 = vector.broadcast %cst_146 : f32 to vector<8x128xf32>
    %484 = arith.mulf %483, %482 : vector<8x128xf32>
    %cst_147 = arith.constant 5.000000e-01 : f32
    %485 = vector.broadcast %cst_147 : f32 to vector<8x128xf32>
    %486 = arith.addf %484, %485 : vector<8x128xf32>
    %487 = arith.mulf %476, %417 : vector<8x128xf32>
    %488 = arith.mulf %468, %478 : vector<8x128xf32>
    %489 = arith.addf %487, %488 : vector<8x128xf32>
    %490 = math.tanh %489 : vector<8x128xf32>
    %491 = arith.mulf %486, %490 : vector<8x128xf32>
    %492 = arith.truncf %491 : vector<8x128xf32> to vector<8x128xbf16>
    %493 = tpu.concatenate %492, %459 in 1 : vector<8x128xbf16>, vector<8x128xbf16> -> vector<8x256xbf16>
    %cst_148 = arith.constant dense<0.000000e+00> : vector<8x1024xf32>
    %494 = tpu.matmul %493, %23, %cst_148 {dimension_numbers = #tpu.dot_dimension_numbers<[1], [0], [0], [1], [0, 0, 1, 1], [], []>} : vector<8x256xbf16>, vector<256x1024xbf16>, vector<8x1024xf32> -> vector<8x1024xf32>
    %495 = vector.extract_strided_slice %494 {offsets = [0, 512], sizes = [8, 512], strides = [1, 1]} : vector<8x1024xf32> to vector<8x512xf32>
    %496 = arith.addf %495, %8 : vector<8x512xf32>
    %497 = vector.extract_strided_slice %5 {offsets = [56, 0], sizes = [8, 512], strides = [1, 1]} : vector<64x512xf32> to vector<8x512xf32>
    %498 = vector.extract_strided_slice %494 {offsets = [0, 0], sizes = [8, 512], strides = [1, 1]} : vector<8x1024xf32> to vector<8x512xf32>
    %499 = arith.addf %497, %498 : vector<8x512xf32>
    %500 = vector.extract_strided_slice %496 {offsets = [0, 0], sizes = [8, 128], strides = [1, 1]} : vector<8x512xf32> to vector<8x128xf32>
    %cst_149 = arith.constant 5.000000e-01 : f32
    %501 = vector.broadcast %cst_149 : f32 to vector<8x128xf32>
    %502 = arith.mulf %501, %500 : vector<8x128xf32>
    %503 = math.tanh %502 : vector<8x128xf32>
    %cst_150 = arith.constant 5.000000e-01 : f32
    %504 = vector.broadcast %cst_150 : f32 to vector<8x128xf32>
    %505 = arith.mulf %504, %503 : vector<8x128xf32>
    %cst_151 = arith.constant 5.000000e-01 : f32
    %506 = vector.broadcast %cst_151 : f32 to vector<8x128xf32>
    %507 = arith.addf %505, %506 : vector<8x128xf32>
    %508 = vector.extract_strided_slice %496 {offsets = [0, 128], sizes = [8, 128], strides = [1, 1]} : vector<8x512xf32> to vector<8x128xf32>
    %cst_152 = arith.constant 5.000000e-01 : f32
    %509 = vector.broadcast %cst_152 : f32 to vector<8x128xf32>
    %510 = arith.mulf %509, %508 : vector<8x128xf32>
    %511 = math.tanh %510 : vector<8x128xf32>
    %cst_153 = arith.constant 5.000000e-01 : f32
    %512 = vector.broadcast %cst_153 : f32 to vector<8x128xf32>
    %513 = arith.mulf %512, %511 : vector<8x128xf32>
    %cst_154 = arith.constant 5.000000e-01 : f32
    %514 = vector.broadcast %cst_154 : f32 to vector<8x128xf32>
    %515 = arith.addf %513, %514 : vector<8x128xf32>
    %516 = vector.extract_strided_slice %496 {offsets = [0, 256], sizes = [8, 128], strides = [1, 1]} : vector<8x512xf32> to vector<8x128xf32>
    %517 = math.tanh %516 : vector<8x128xf32>
    %518 = vector.extract_strided_slice %496 {offsets = [0, 384], sizes = [8, 128], strides = [1, 1]} : vector<8x512xf32> to vector<8x128xf32>
    %cst_155 = arith.constant 5.000000e-01 : f32
    %519 = vector.broadcast %cst_155 : f32 to vector<8x128xf32>
    %520 = arith.mulf %519, %518 : vector<8x128xf32>
    %521 = math.tanh %520 : vector<8x128xf32>
    %cst_156 = arith.constant 5.000000e-01 : f32
    %522 = vector.broadcast %cst_156 : f32 to vector<8x128xf32>
    %523 = arith.mulf %522, %521 : vector<8x128xf32>
    %cst_157 = arith.constant 5.000000e-01 : f32
    %524 = vector.broadcast %cst_157 : f32 to vector<8x128xf32>
    %525 = arith.addf %523, %524 : vector<8x128xf32>
    %526 = arith.mulf %515, %456 : vector<8x128xf32>
    %527 = arith.mulf %507, %517 : vector<8x128xf32>
    %528 = arith.addf %526, %527 : vector<8x128xf32>
    %529 = math.tanh %528 : vector<8x128xf32>
    %530 = arith.mulf %525, %529 : vector<8x128xf32>
    %531 = arith.truncf %530 : vector<8x128xf32> to vector<8x128xbf16>
    %c48 = arith.constant 48 : index
    %c0_158 = arith.constant 0 : index
    %532 = vector.load %arg10[%c48, %c0_158] : memref<64x128xbf16, #tpu.memory_space<vmem>>, vector<8x128xbf16>
    tpu.vector_store %arg10[%c48, %c0_158], %531 {strides = array<i32>} : memref<64x128xbf16, #tpu.memory_space<vmem>>, vector<8x128xbf16>,
    %533 = vector.extract_strided_slice %499 {offsets = [0, 0], sizes = [8, 128], strides = [1, 1]} : vector<8x512xf32> to vector<8x128xf32>
    %cst_159 = arith.constant 5.000000e-01 : f32
    %534 = vector.broadcast %cst_159 : f32 to vector<8x128xf32>
    %535 = arith.mulf %534, %533 : vector<8x128xf32>
    %536 = math.tanh %535 : vector<8x128xf32>
    %cst_160 = arith.constant 5.000000e-01 : f32
    %537 = vector.broadcast %cst_160 : f32 to vector<8x128xf32>
    %538 = arith.mulf %537, %536 : vector<8x128xf32>
    %cst_161 = arith.constant 5.000000e-01 : f32
    %539 = vector.broadcast %cst_161 : f32 to vector<8x128xf32>
    %540 = arith.addf %538, %539 : vector<8x128xf32>
    %541 = vector.extract_strided_slice %499 {offsets = [0, 128], sizes = [8, 128], strides = [1, 1]} : vector<8x512xf32> to vector<8x128xf32>
    %cst_162 = arith.constant 5.000000e-01 : f32
    %542 = vector.broadcast %cst_162 : f32 to vector<8x128xf32>
    %543 = arith.mulf %542, %541 : vector<8x128xf32>
    %544 = math.tanh %543 : vector<8x128xf32>
    %cst_163 = arith.constant 5.000000e-01 : f32
    %545 = vector.broadcast %cst_163 : f32 to vector<8x128xf32>
    %546 = arith.mulf %545, %544 : vector<8x128xf32>
    %cst_164 = arith.constant 5.000000e-01 : f32
    %547 = vector.broadcast %cst_164 : f32 to vector<8x128xf32>
    %548 = arith.addf %546, %547 : vector<8x128xf32>
    %549 = vector.extract_strided_slice %499 {offsets = [0, 256], sizes = [8, 128], strides = [1, 1]} : vector<8x512xf32> to vector<8x128xf32>
    %550 = math.tanh %549 : vector<8x128xf32>
    %551 = vector.extract_strided_slice %499 {offsets = [0, 384], sizes = [8, 128], strides = [1, 1]} : vector<8x512xf32> to vector<8x128xf32>
    %cst_165 = arith.constant 5.000000e-01 : f32
    %552 = vector.broadcast %cst_165 : f32 to vector<8x128xf32>
    %553 = arith.mulf %552, %551 : vector<8x128xf32>
    %554 = math.tanh %553 : vector<8x128xf32>
    %cst_166 = arith.constant 5.000000e-01 : f32
    %555 = vector.broadcast %cst_166 : f32 to vector<8x128xf32>
    %556 = arith.mulf %555, %554 : vector<8x128xf32>
    %cst_167 = arith.constant 5.000000e-01 : f32
    %557 = vector.broadcast %cst_167 : f32 to vector<8x128xf32>
    %558 = arith.addf %556, %557 : vector<8x128xf32>
    %559 = arith.mulf %548, %489 : vector<8x128xf32>
    %560 = arith.mulf %540, %550 : vector<8x128xf32>
    %561 = arith.addf %559, %560 : vector<8x128xf32>
    %562 = math.tanh %561 : vector<8x128xf32>
    %563 = arith.mulf %558, %562 : vector<8x128xf32>
    %564 = arith.truncf %563 : vector<8x128xf32> to vector<8x128xbf16>
    %565 = tpu.concatenate %564, %531 in 1 : vector<8x128xbf16>, vector<8x128xbf16> -> vector<8x256xbf16>
    %cst_168 = arith.constant dense<0.000000e+00> : vector<8x1024xf32>
    %566 = tpu.matmul %565, %23, %cst_168 {dimension_numbers = #tpu.dot_dimension_numbers<[1], [0], [0], [1], [0, 0, 1, 1], [], []>} : vector<8x256xbf16>, vector<256x1024xbf16>, vector<8x1024xf32> -> vector<8x1024xf32>
    %567 = vector.extract_strided_slice %566 {offsets = [0, 512], sizes = [8, 512], strides = [1, 1]} : vector<8x1024xf32> to vector<8x512xf32>
    %568 = arith.addf %567, %8 : vector<8x512xf32>
    %569 = vector.extract_strided_slice %568 {offsets = [0, 0], sizes = [8, 128], strides = [1, 1]} : vector<8x512xf32> to vector<8x128xf32>
    %cst_169 = arith.constant 5.000000e-01 : f32
    %570 = vector.broadcast %cst_169 : f32 to vector<8x128xf32>
    %571 = arith.mulf %570, %569 : vector<8x128xf32>
    %572 = math.tanh %571 : vector<8x128xf32>
    %cst_170 = arith.constant 5.000000e-01 : f32
    %573 = vector.broadcast %cst_170 : f32 to vector<8x128xf32>
    %574 = arith.mulf %573, %572 : vector<8x128xf32>
    %cst_171 = arith.constant 5.000000e-01 : f32
    %575 = vector.broadcast %cst_171 : f32 to vector<8x128xf32>
    %576 = arith.addf %574, %575 : vector<8x128xf32>
    %577 = vector.extract_strided_slice %568 {offsets = [0, 128], sizes = [8, 128], strides = [1, 1]} : vector<8x512xf32> to vector<8x128xf32>
    %cst_172 = arith.constant 5.000000e-01 : f32
    %578 = vector.broadcast %cst_172 : f32 to vector<8x128xf32>
    %579 = arith.mulf %578, %577 : vector<8x128xf32>
    %580 = math.tanh %579 : vector<8x128xf32>
    %cst_173 = arith.constant 5.000000e-01 : f32
    %581 = vector.broadcast %cst_173 : f32 to vector<8x128xf32>
    %582 = arith.mulf %581, %580 : vector<8x128xf32>
    %cst_174 = arith.constant 5.000000e-01 : f32
    %583 = vector.broadcast %cst_174 : f32 to vector<8x128xf32>
    %584 = arith.addf %582, %583 : vector<8x128xf32>
    %585 = vector.extract_strided_slice %568 {offsets = [0, 256], sizes = [8, 128], strides = [1, 1]} : vector<8x512xf32> to vector<8x128xf32>
    %586 = math.tanh %585 : vector<8x128xf32>
    %587 = vector.extract_strided_slice %568 {offsets = [0, 384], sizes = [8, 128], strides = [1, 1]} : vector<8x512xf32> to vector<8x128xf32>
    %cst_175 = arith.constant 5.000000e-01 : f32
    %588 = vector.broadcast %cst_175 : f32 to vector<8x128xf32>
    %589 = arith.mulf %588, %587 : vector<8x128xf32>
    %590 = math.tanh %589 : vector<8x128xf32>
    %cst_176 = arith.constant 5.000000e-01 : f32
    %591 = vector.broadcast %cst_176 : f32 to vector<8x128xf32>
    %592 = arith.mulf %591, %590 : vector<8x128xf32>
    %cst_177 = arith.constant 5.000000e-01 : f32
    %593 = vector.broadcast %cst_177 : f32 to vector<8x128xf32>
    %594 = arith.addf %592, %593 : vector<8x128xf32>
    %595 = arith.mulf %584, %528 : vector<8x128xf32>
    %596 = arith.mulf %576, %586 : vector<8x128xf32>
    %597 = arith.addf %595, %596 : vector<8x128xf32>
    %598 = math.tanh %597 : vector<8x128xf32>
    %599 = arith.mulf %594, %598 : vector<8x128xf32>
    %600 = arith.truncf %599 : vector<8x128xf32> to vector<8x128xbf16>
    %c56 = arith.constant 56 : index
    %c0_178 = arith.constant 0 : index
    %601 = vector.load %arg10[%c56, %c0_178] : memref<64x128xbf16, #tpu.memory_space<vmem>>, vector<8x128xbf16>
    tpu.vector_store %arg10[%c56, %c0_178], %600 {strides = array<i32>} : memref<64x128xbf16, #tpu.memory_space<vmem>>, vector<8x128xbf16>,
    return
  }
  func.func @transform_0(%arg0: i32) -> (i32, i32) {
    %c0_i32 = arith.constant 0 : i32
    %c0_i32_0 = arith.constant 0 : i32
    %c0_i32_1 = arith.constant 0 : i32
    return %c0_i32, %c0_i32_0 : i32, i32
  }
  func.func @transform_1(%arg0: i32) -> (i32, i32) {
    %c0_i32 = arith.constant 0 : i32
    %c0_i32_0 = arith.constant 0 : i32
    %c0_i32_1 = arith.constant 0 : i32
    return %c0_i32, %c0_i32_0 : i32, i32
  }
  func.func @transform_2(%arg0: i32) -> (i32, i32) {
    %c0_i32 = arith.constant 0 : i32
    %c0_i32_0 = arith.constant 0 : i32
    %c0_i32_1 = arith.constant 0 : i32
    return %c0_i32, %c0_i32_0 : i32, i32
  }
  func.func @transform_4(%arg0: i32) -> (i32, i32) {
    %c0_i32 = arith.constant 0 : i32
    %c0_i32_0 = arith.constant 0 : i32
    %c0_i32_1 = arith.constant 0 : i32
    return %c0_i32, %c0_i32_0 : i32, i32
  }
  func.func @transform_5(%arg0: i32) -> (i32, i32) {
    %c0_i32 = arith.constant 0 : i32
    %c0_i32_0 = arith.constant 0 : i32
    %c0_i32_1 = arith.constant 0 : i32
    return %c0_i32, %c0_i32_0 : i32, i32
  }
  func.func @transform_6(%arg0: i32) -> (i32, i32) {
    %c0_i32 = arith.constant 0 : i32
    %c0_i32_0 = arith.constant 0 : i32
    %c0_i32_1 = arith.constant 0 : i32
    return %c0_i32, %c0_i32_0 : i32, i32
  }
  func.func @transform_7(%arg0: i32) -> (i32, i32) {
    %c0_i32 = arith.constant 0 : i32
    %c0_i32_0 = arith.constant 0 : i32
    %c0_i32_1 = arith.constant 0 : i32
    return %c0_i32, %c0_i32_0 : i32, i32
  }
  func.func @transform_8(%arg0: i32) -> (i32, i32) {
    %c0_i32 = arith.constant 0 : i32
    %c0_i32_0 = arith.constant 0 : i32
    %c0_i32_1 = arith.constant 0 : i32
    return %c0_i32, %c0_i32_0 : i32, i32
  }
  func.func @transform_9(%arg0: i32) -> (i32, i32) {
    %c0_i32 = arith.constant 0 : i32
    %c0_i32_0 = arith.constant 0 : i32
    %c0_i32_1 = arith.constant 0 : i32
    return %c0_i32, %c0_i32_0 : i32, i32
  }
}

</mosaic_0001>

<bundles_post_ra>
// kernel: tpu_custom_call.1
= control target key start
LH: loop header
LB: loop body
LE: loop exit
PB: predicated region body
PF: predicated region fallthrough
CT: control target
= control target key end

     0   :  { %14 = vsyncpa [#allocation5], 0  ;;  %s4963_s0 = inlined_call_operand.vmem [shape: bf16[64,32], index: 0, kind: input, shape index: {}]   ;;  %s4964_s1 = inlined_call_operand.hbm [shape: bf16[32,512], index: 1, kind: input, shape index: {}]   ;;  %s4965_s2 = inlined_call_operand.vmem [shape: f32[1,512], index: 2, kind: input, shape index: {}]   ;;  %s4966_s3 = inlined_call_operand.hbm [shape: bf16[256,1024], index: 3, kind: input, shape index: {}]   ;;  %s4967_s4 = inlined_call_operand.vmem [shape: f32[1,512], index: 4, kind: input, shape index: {}]   ;;  %s4968_s5 = inlined_call_operand.vmem [shape: f32[1,128], index: 5, kind: input, shape index: {}]   ;;  %s4969_s6 = inlined_call_operand.vmem [shape: f32[1,128], index: 6, kind: input, shape index: {}]   ;;  %s4970_s7 = inlined_call_operand.vmem [shape: f32[1,128], index: 7, kind: input, shape index: {}]   ;;  %s4971_s8 = inlined_call_operand.vmem [shape: f32[1,128], index: 8, kind: input, shape index: {}]   ;;  %s4972_s9 = inlined_call_operand.hbm [shape: bf16[64,128], index: 9, kind: output, shape index: {}]  }
   0x1   :  { %15 = vsyncpa [#allocation6], 0  ;;  %s2757_s30 = smov [#allocation4]   ;;  %s2707_s13 = scalar_lea.hbm %s4964_s1, 1024 }
   0x2   :  { %s23_s10 = sshll.u32 %s2757_s30, 4  ;;  %p2708_p0 = scmp.ne.s32.totalorder %s4964_s1, %s2707_s13  ;;  %s24_s10 = int_to_ptr.vmem [resolvable:$true] %s23_s10 }
   0x3   :  { %p2711_p1 = scmp.lt.u32.totalorder %s2707_s13, %s4964_s1 }
   0x5   :  { %p2713_p2 = pnand %p2711_p1, %p2708_p0 }
   0x7   :  { %2716 = shalt.err (!%p2713_p2)
}
   0x8   :  { %s2717_s18 = scalar_lea.vmem %s24_s10, 1024  ;;  %p2722_p4 = scmp.lt.s32.totalorder %s24_s10, %s24_s10 }
   0x9   :  { %p2718_p3 = scmp.ne.s32.totalorder %s24_s10, %s2717_s18  ;;  %p2723_p5 = scmp.lt.s32.totalorder %s2717_s18, %s2717_s18 }
   0xb   :  { %p2724_p6 = por %p2723_p5, %p2722_p4 }
   0xd   :  { %p2725_p7 = pnand %p2724_p6, %p2718_p3 }
   0xf   :  { %2728 = shalt.err (!%p2725_p7)
}
  0x10   :  { %s2758_s19 = smov 256   ;;  %s2759_s20 = smov 16  }
  0x11   :  { %29 = dma.hbm_to_vmem [thread:$0]  %s4964_s1, 1024, %s24_s10, [#allocation5], %s2758_s19, %s2758_s19, %s2759_s20  }
  0x12   :  { %2751 = dma.done.wait [#allocation5], 1024  }
  0x13   :  { %2752 = vsyncadd [#allocation5], 4294966272  ;;  %s50_s23 = sld [smem:[#allocation0]]   ;;  %s2760_s24 = smov 1024   ;;  %v2761_v0 = vmov 0   ;;  %vm179_vm0 = vcmask 261120   ;;  %v99_v19 = vlaneseq }
  0x14   :  { %62 = sst [smem:[#allocation9]] %s2760_s24  ;;  %224 = vmatprep.mubr.bf16.mxu0 %v2761_v0  ;;  %297 = vmatprep.mubr.bf16.mxu1 %v2761_v0  ;;  %s2762_s25 = smov 8  }
  0x15   :  { %64 = sst [smem:[#allocation9 + $0x1]] %s2760_s24  ;;  %s2763_s26 = smov 64   ;;  %v100_v20 = vshrl.u32 %v99_v19, 7 }
  0x16   :  { %66 = sst [smem:[#allocation9 + $0x2]] %s2762_s25  ;;  %s2764_s27 = smov 128  }
  0x17   :  { %68 = sst [smem:[#allocation9 + $0x3]] %s2763_s26  ;;  %s2765_s28 = smov 2   ;;  %v101_v21 = vsub.s32 0, %v100_v20  ;;  %v109_v22 = vsub.s32 2, %v100_v20  ;;  %v105_v23 = vsub.s32 1, %v100_v20  ;;  %v113_v25 = vsub.s32 3, %v100_v20 }
  0x18   :  { %70 = sst [smem:[#allocation9 + $0x4]] %s2764_s27  ;;  %s2766_s1 = smov 512  }
  0x19   :  { %72 = sst [smem:[#allocation9 + $0x5]] %s2765_s28  ;;  %s2233_s29 = sshll.u32 %s50_s23, 26 }
  0x1a   :  { %74 = sst [smem:[#allocation9 + $0x6]] %s2766_s1  ;;  %s2234_s30 = sadd.s32 134217728, %s2233_s29 }
  0x1b   :  { %76 = sst [smem:[#allocation9 + $0x7]] %s2763_s26  ;;  %s2767_s10 = smov 4  }
  0x1c   :  { %78 = sst [smem:[#allocation9 + $0x8]] %s2767_s10  ;;  %s2768_s11 = smov [#allocation2]  }
  0x1d   :  { %s58_s12 = sshll.u32 %s2768_s11, 4  ;;  %s2769_s13 = smov [#allocation3]   ;;  %s59_s12 = int_to_ptr.vmem [resolvable:$true] %s58_s12 }
  0x1e   :  { %s2770_s14 = smov [#allocation8]  }
  0x1f   :  { %80 = dma.general %s4966_s3, 16384, %s59_s12, %s2769_s13, %s2770_s14, [#allocation9], %s2234_s30, 0  }
  0x20   :  { %v2255_v1 = vld [vmem:[%s4968_s5] ss:$0 sm:$0xff]  ;;  %v2275_v7 = vld [vmem:[#allocation4 + $0x4] ss:$16 sps:$4 sm:$0xff]   ;;  %v2277_v8 = vld [vmem:[#allocation4 + $0xc] ss:$16 sps:$4 sm:$0xff]  }
  0x21   :  { %v2256_v2 = vld [vmem:[%s4970_s7] ss:$0 sm:$0xff]  ;;  %v2851_v4 = vpack.c.bf16 %v2255_v1, %v2255_v1  ;;  %v2280_v10 = vld [vmem:[#allocation4 + $0x8] ss:$16 sps:$4 sm:$0xff]   ;;  %192 = vmatprep.subr.bf16.mxu0 %v2275_v7  ;;  %v2281_v11 = vld [vmem:[#allocation4 + $0x24] ss:$16 sps:$4 sm:$0xff]   ;;  %265 = vmatprep.subr.bf16.mxu1 %v2277_v8 }
  0x22   :  { %v2849_v3 = vld [vmem:[%s4969_s6] ss:$0 sm:$0xff]  ;;  %v2853_v5 = vpack.c.bf16 %v2256_v2, %v2256_v2  ;;  %v2283_v12 = vld [vmem:[#allocation4 + $0x2c] ss:$16 sps:$4 sm:$0xff]   ;;  %266 = vmatpush1.bf16.msra.mxu1 %v2280_v10  ;;  %v2286_v14 = vld [vmem:[#allocation4 + $0x28] ss:$16 sps:$4 sm:$0xff]  }
  0x23   :  { %5388 = vst [vmem:[#allocation13_spill] sm:$0xff] %v2849_v3  ;;  %v2858_v6 = vld [vmem:[%s4971_s8] ss:$0 sm:$0xff]  ;;  %267 = vmatprep.subr.bf16.mxu1 %v2283_v12  ;;  %v2288_v16 = vld [vmem:[%s4963_s0 + $0x8] sm:$0xff]   ;;  %v2289_v17 = vld [vmem:[%s4963_s0 + $0x10] sm:$0xff]  }
  0x24   :  { %5389 = vst [vmem:[#allocation14_spill] sm:$0xff] %v2858_v6  ;;  %v2279_v9 = vld [vmem:[#allocation4] ss:$16 sps:$4 sm:$0xff]   ;;  %v2290_v18 = vld [vmem:[%s4963_s0 + $0x18] sm:$0xff]  }
  0x25   :  { %193 = vmatpush1.bf16.msra.mxu0 %v2279_v9  ;;  %v2285_v13 = vld [vmem:[#allocation4 + $0x20] ss:$16 sps:$4 sm:$0xff]  }
  0x26   :  { %194 = vmatprep.subr.bf16.mxu0 %v2281_v11  ;;  %v2287_v15 = vld [vmem:[%s4963_s0] sm:$0xff]   ;;  %268 = vmatpush1.bf16.msra.mxu1 %v2286_v14 }
  0x27   :  { %v338_v24 = vld [vmem:[%s4967_s4] sm:$0xf] }
  0x28   :  { %v2883_v26 = vrot.slane %v338_v24, %v101_v21  ;;  %v2885_v27 = vrot.slane %v338_v24, %v109_v22  ;;  %v2887_v28 = vrot.slane %v338_v24, %v105_v23  ;;  %v2889_v29 = vrot.slane %v338_v24, %v113_v25  ;;  %v97_v30 = vld [vmem:[%s4965_s2] sm:$0xf] }
  0x29   :  { %195 = vmatpush1.bf16.msra.mxu0 %v2285_v13  ;;  %2251 = vmatmul.mubr.msk.bf16.vlgmr.msra.gmra.mrb[0].mxu1 %vm179_vm0, %v2287_v15  ;;  %v102_v31 = vrot.slane %v97_v30, %v101_v21  ;;  %v2894_v32 = vrot.slane %v97_v30, %v109_v22  ;;  %v2896_v33 = vrot.slane %v97_v30, %v105_v23 }
  0x2a   :  { %307 = vmatprep.mubr.bf16.mxu1 %v2761_v0  ;;  %5390 = vst [vmem:[#allocation15_spill] sm:$0xff] %v2883_v26  ;;  %5391 = vst [vmem:[#allocation16_spill] sm:$0xff] %v2885_v27  ;;  %v2898_v34 = vrot.slane %v97_v30, %v113_v25 }
  0x2b   :  { %5392 = vst [vmem:[#allocation17_spill] sm:$0xff] %v2887_v28  ;;  %5393 = vst [vmem:[#allocation18_spill] sm:$0xff] %v2889_v29 }
  0x2c   :  { %2247 = vmatmul.mubr.msk.bf16.vlgmr.msra.gmra.mrb[0].mxu0 %vm179_vm0, %v2287_v15 }
  0x2d   :  { %234 = vmatprep.mubr.bf16.mxu0 %v2761_v0 }
  0x31   :  { %2252 = vmatmul.mubr.msk.bf16.gmra.mrb[4].mxu1 %vm179_vm0, %v2288_v16 }
  0x32   :  { %317 = vmatprep.mubr.bf16.mxu1 %v2761_v0 }
  0x34   :  { %2248 = vmatmul.mubr.msk.bf16.gmra.mrb[4].mxu0 %vm179_vm0, %v2288_v16 }
  0x35   :  { %244 = vmatprep.mubr.bf16.mxu0 %v2761_v0 }
  0x39   :  { %2253 = vmatmul.mubr.msk.bf16.gmra.mrb[8].mxu1 %vm179_vm0, %v2289_v17 }
  0x3a   :  { %327 = vmatprep.mubr.bf16.mxu1 %v2761_v0 }
  0x3c   :  { %2249 = vmatmul.mubr.msk.bf16.gmra.mrb[8].mxu0 %vm179_vm0, %v2289_v17 }
  0x3d   :  { %254 = vmatprep.mubr.bf16.mxu0 %v2761_v0 }
  0x41   :  { %2254 = vmatmul.mubr.msk.bf16.gmra.mrb[12].mxu1 %vm179_vm0, %v2290_v18 }
  0x44   :  { %2250 = vmatmul.mubr.msk.bf16.gmra.mrb[12].mxu0 %vm179_vm0, %v2290_v18 }
  0xfc   :  { %v299_v37 = vpop.f32.mrb[0].mxu1 }
  0xfd   :  { %v2903_v39 = vadd.f32 %v299_v37, %v2894_v32  ;;  %v301_v41 = vpop.f32.mrb[1].mxu1 }
  0xfe   :  { %v2909_v43 = vadd.f32 %v301_v41, %v2898_v34  ;;  %v303_v45 = vpop.f32.mrb[2].mxu1 }
  0xff   :  { %v226_v35 = vpop.f32.mrb[0].mxu0  ;;  %5395 = vst [vmem:[#allocation20_spill] sm:$0xff] %v2903_v39  ;;  %v2914_v47 = vadd.f32 %v303_v45, %v2894_v32  ;;  %v305_v49 = vpop.f32.mrb[3].mxu1 }
 0x100   :  { %v2900_v36 = vadd.f32 %v226_v35, %v102_v31  ;;  %v228_v38 = vpop.f32.mrb[1].mxu0  ;;  %5397 = vst [vmem:[#allocation22_spill] sm:$0xff] %v2909_v43  ;;  %v2920_v50 = vadd.f32 %v305_v49, %v2898_v34 }
 0x101   :  { %v2906_v40 = vadd.f32 %v228_v38, %v2896_v33  ;;  %v230_v42 = vpop.f32.mrb[2].mxu0  ;;  %5399 = vst [vmem:[#allocation24_spill] sm:$0xff] %v2914_v47 }
 0x102   :  { %5394 = vst [vmem:[#allocation19_spill] sm:$0xff] %v2900_v36  ;;  %v2911_v44 = vadd.f32 %v230_v42, %v102_v31  ;;  %v232_v46 = vpop.f32.mrb[3].mxu0  ;;  %5401 = vst [vmem:[#allocation26_spill] sm:$0xff] %v2920_v50 }
 0x103   :  { %5396 = vst [vmem:[#allocation21_spill] sm:$0xff] %v2906_v40  ;;  %v2917_v48 = vadd.f32 %v232_v46, %v2896_v33 }
 0x104   :  { %5398 = vst [vmem:[#allocation23_spill] sm:$0xff] %v2911_v44  ;;  %v309_v53 = vpop.f32.mrb[4].mxu1 }
 0x105   :  { %5400 = vst [vmem:[#allocation25_spill] sm:$0xff] %v2917_v48  ;;  %v2925_v55 = vadd.f32 %v309_v53, %v2894_v32  ;;  %v311_v57 = vpop.f32.mrb[5].mxu1 }
 0x106   :  { %v2931_v59 = vadd.f32 %v311_v57, %v2898_v34  ;;  %v313_v61 = vpop.f32.mrb[6].mxu1 }
 0x107   :  { %v236_v51 = vpop.f32.mrb[4].mxu0  ;;  %5403 = vst [vmem:[#allocation28_spill] sm:$0xff] %v2925_v55  ;;  %v2936_v63 = vadd.f32 %v313_v61, %v2894_v32  ;;  %v315_v1 = vpop.f32.mrb[7].mxu1 }
 0x108   :  { %v2922_v52 = vadd.f32 %v236_v51, %v102_v31  ;;  %v238_v54 = vpop.f32.mrb[5].mxu0  ;;  %5405 = vst [vmem:[#allocation30_spill] sm:$0xff] %v2931_v59  ;;  %v2942_v2 = vadd.f32 %v315_v1, %v2898_v34 }
 0x109   :  { %v2928_v56 = vadd.f32 %v238_v54, %v2896_v33  ;;  %v240_v58 = vpop.f32.mrb[6].mxu0  ;;  %5407 = vst [vmem:[#allocation32_spill] sm:$0xff] %v2936_v63 }
 0x10a   :  { %5402 = vst [vmem:[#allocation27_spill] sm:$0xff] %v2922_v52  ;;  %v2933_v60 = vadd.f32 %v240_v58, %v102_v31  ;;  %v242_v62 = vpop.f32.mrb[7].mxu0  ;;  %5409 = vst [vmem:[#allocation34_spill] sm:$0xff] %v2942_v2 }
 0x10b   :  { %5404 = vst [vmem:[#allocation29_spill] sm:$0xff] %v2928_v56  ;;  %v2939_v0 = vadd.f32 %v242_v62, %v2896_v33 }
 0x10c   :  { %5406 = vst [vmem:[#allocation31_spill] sm:$0xff] %v2933_v60  ;;  %v319_v9 = vpop.f32.mrb[8].mxu1 }
 0x10d   :  { %5408 = vst [vmem:[#allocation33_spill] sm:$0xff] %v2939_v0  ;;  %v2947_v11 = vadd.f32 %v319_v9, %v2894_v32  ;;  %v321_v13 = vpop.f32.mrb[9].mxu1 }
 0x10e   :  { %v2953_v15 = vadd.f32 %v321_v13, %v2898_v34  ;;  %v323_v17 = vpop.f32.mrb[10].mxu1 }
 0x10f   :  { %v246_v7 = vpop.f32.mrb[8].mxu0  ;;  %5411 = vst [vmem:[#allocation36_spill] sm:$0xff] %v2947_v11  ;;  %v2958_v19 = vadd.f32 %v323_v17, %v2894_v32  ;;  %v325_v21 = vpop.f32.mrb[11].mxu1 }
 0x110   :  { %v2944_v8 = vadd.f32 %v246_v7, %v102_v31  ;;  %v248_v10 = vpop.f32.mrb[9].mxu0  ;;  %5413 = vst [vmem:[#allocation38_spill] sm:$0xff] %v2953_v15  ;;  %v2964_v22 = vadd.f32 %v325_v21, %v2898_v34 }
 0x111   :  { %v2950_v12 = vadd.f32 %v248_v10, %v2896_v33  ;;  %v250_v14 = vpop.f32.mrb[10].mxu0  ;;  %5415 = vst [vmem:[#allocation40_spill] sm:$0xff] %v2958_v19 }
 0x112   :  { %5410 = vst [vmem:[#allocation35_spill] sm:$0xff] %v2944_v8  ;;  %v2955_v16 = vadd.f32 %v250_v14, %v102_v31  ;;  %v252_v18 = vpop.f32.mrb[11].mxu0  ;;  %5417 = vst [vmem:[#allocation42_spill] sm:$0xff] %v2964_v22 }
 0x113   :  { %5412 = vst [vmem:[#allocation37_spill] sm:$0xff] %v2950_v12  ;;  %v2961_v20 = vadd.f32 %v252_v18, %v2896_v33 }
 0x114   :  { %5414 = vst [vmem:[#allocation39_spill] sm:$0xff] %v2955_v16  ;;  %v329_v25 = vpop.f32.mrb[12].mxu1 }
 0x115   :  { %5416 = vst [vmem:[#allocation41_spill] sm:$0xff] %v2961_v20  ;;  %v2969_v35 = vadd.f32 %v329_v25, %v2894_v32  ;;  %v331_v38 = vpop.f32.mrb[13].mxu1 }
 0x116   :  { %v2975_v42 = vadd.f32 %v331_v38, %v2898_v34  ;;  %v333_v46 = vpop.f32.mrb[14].mxu1 }
 0x117   :  { %v256_v23 = vpop.f32.mrb[12].mxu0  ;;  %5419 = vst [vmem:[#allocation44_spill] sm:$0xff] %v2969_v35  ;;  %v2980_v51 = vadd.f32 %v333_v46, %v2894_v32  ;;  %v335_v54 = vpop.f32.mrb[15].mxu1 }
 0x118   :  { %v2966_v24 = vadd.f32 %v256_v23, %v102_v31  ;;  %v258_v30 = vpop.f32.mrb[13].mxu0  ;;  %5421 = vst [vmem:[#allocation46_spill] sm:$0xff] %v2975_v42  ;;  %v2986_v57 = vadd.f32 %v335_v54, %v2898_v34 }
 0x119   :  { %v2972_v37 = vadd.f32 %v258_v30, %v2896_v33  ;;  %v260_v41 = vpop.f32.mrb[14].mxu0  ;;  %5423 = vst [vmem:[#allocation48_spill] sm:$0xff] %v2980_v51 }
 0x11a   :  { %5418 = vst [vmem:[#allocation43_spill] sm:$0xff] %v2966_v24  ;;  %v2977_v45 = vadd.f32 %v260_v41, %v102_v31  ;;  %v262_v49 = vpop.f32.mrb[15].mxu0  ;;  %5425 = vst [vmem:[#allocation50_spill] sm:$0xff] %v2986_v57 }
 0x11b   :  { %5420 = vst [vmem:[#allocation45_spill] sm:$0xff] %v2972_v37  ;;  %v2983_v53 = vadd.f32 %v262_v49, %v2896_v33 }
 0x11c   :  { %5422 = vst [vmem:[#allocation47_spill] sm:$0xff] %v2977_v45 }
 0x11d   :  { %5424 = vst [vmem:[#allocation49_spill] sm:$0xff] %v2983_v53 }
 0x11e   :  { %2753 = dma.done.wait [#allocation3], 16384 }
 0x11f   :  { %2754 = vsyncadd [#allocation3], 4294950912  ;;  %554 = vmatprep.mubr.bf16.mxu0 %v2853_v5  ;;  %595 = vmatprep.mubr.bf16.mxu1 %v2853_v5  ;;  %v2990_v31 = vld [vmem:[#allocation2 + $0x8] sm:$0xff]  ;;  %v2992_v58 = vld [vmem:[#allocation2] sm:$0xff]  ;;  %s2771_s2 = smov [#allocation7]  }
 0x120   :  { %v2994_v61 = vld [vmem:[#allocation2 + $0x48] sm:$0xff]  ;;  %522 = vmatprep.subr.bf16.mxu0 %v2990_v31  ;;  %v2997_v32 = vld [vmem:[#allocation2 + $0x18] sm:$0xff]  ;;  %v2999_v33 = vld [vmem:[#allocation2 + $0x10] sm:$0xff]  ;;  %s2215_s4 = sshll.u32 %s2771_s2, 4  ;;  %s2216_s4 = int_to_ptr.vmem [resolvable:$true] %s2215_s4 }
 0x121   :  { %523 = vmatpush1.bf16.msra.mxu0 %v2992_v58  ;;  %563 = vmatprep.subr.bf16.mxu1 %v2997_v32  ;;  %v3003_v34 = vld [vmem:[#allocation2 + $0x58] sm:$0xff]  ;;  %v3006_v62 = vld [vmem:[#allocation2 + $0x40] sm:$0xff]  ;;  %v3009_v1 = vld [vmem:[#allocation2 + $0x88] sm:$0xff]  ;;  %s2729_s11 = scalar_lea.vmem %s2216_s4, 512  ;;  %p2734_p9 = scmp.lt.s32.totalorder %s2216_s4, %s2216_s4 }
 0x122   :  { %524 = vmatprep.subr.bf16.mxu0 %v2994_v61  ;;  %564 = vmatpush1.bf16.msra.mxu1 %v2999_v33  ;;  %v3012_v7 = vld [vmem:[#allocation2 + $0x50] sm:$0xff]  ;;  %v3014_v9 = vld [vmem:[#allocation2 + $0x98] sm:$0xff]  ;;  %v3018_v10 = vld [vmem:[#allocation2 + $0x80] sm:$0xff]  ;;  %p2730_p8 = scmp.ne.s32.totalorder %s2216_s4, %s2729_s11  ;;  %p2735_p10 = scmp.lt.s32.totalorder %s2729_s11, %s2729_s11 }
 0x123   :  { %565 = vmatprep.subr.bf16.mxu1 %v3003_v34  ;;  %v3021_v13 = vld [vmem:[#allocation2 + $0xc8] sm:$0xff]  ;;  %v3024_v14 = vld [vmem:[#allocation2 + $0x90] sm:$0xff]  ;;  %v3026_v17 = vld [vmem:[#allocation2 + $0xd8] sm:$0xff] }
 0x124   :  { %v3030_v18 = vld [vmem:[#allocation2 + $0xc0] sm:$0xff]  ;;  %v3033_v21 = vld [vmem:[#allocation2 + $0x108] sm:$0xff]  ;;  %v3036_v23 = vld [vmem:[#allocation2 + $0xd0] sm:$0xff]  ;;  %p2736_p11 = por %p2735_p10, %p2734_p9 }
 0x125   :  { %525 = vmatpush1.bf16.msra.mxu0 %v3006_v62  ;;  %v3038_v25 = vld [vmem:[#allocation2 + $0x118] sm:$0xff]  ;;  %v3042_v30 = vld [vmem:[#allocation2 + $0x100] sm:$0xff]  ;;  %v3045_v38 = vld [vmem:[#allocation2 + $0x148] sm:$0xff] }
 0x126   :  { %526 = vmatprep.subr.bf16.mxu0 %v3009_v1  ;;  %566 = vmatpush1.bf16.msra.mxu1 %v3012_v7  ;;  %v3048_v41 = vld [vmem:[#allocation2 + $0x110] sm:$0xff]  ;;  %v3050_v46 = vld [vmem:[#allocation2 + $0x158] sm:$0xff]  ;;  %v3054_v49 = vld [vmem:[#allocation2 + $0x140] sm:$0xff]  ;;  %p2737_p12 = pnand %p2736_p11, %p2730_p8 }
 0x127   :  { %567 = vmatprep.subr.bf16.mxu1 %v3014_v9  ;;  %v3057_v54 = vld [vmem:[#allocation2 + $0x188] sm:$0xff]  ;;  %v3060_v57 = vld [vmem:[#allocation2 + $0x150] sm:$0xff]  ;;  %v3062_v51 = vld [vmem:[#allocation2 + $0x198] sm:$0xff] }
 0x128   :  { %v3066_v53 = vld [vmem:[#allocation2 + $0x180] sm:$0xff]  ;;  %v3069_v45 = vld [vmem:[#allocation2 + $0x1c8] sm:$0xff]  ;;  %v3072_v42 = vld [vmem:[#allocation2 + $0x190] sm:$0xff] }
 0x129   :  { %527 = vmatpush1.bf16.msra.mxu0 %v3018_v10  ;;  %v3074_v35 = vld [vmem:[#allocation2 + $0x1d8] sm:$0xff]  ;;  %v3078_v37 = vld [vmem:[#allocation2 + $0x1c0] sm:$0xff]  ;;  %v3081_v24 = vld [vmem:[#allocation2 + $0x208] sm:$0xff] }
 0x12a   :  { %528 = vmatprep.subr.bf16.mxu0 %v3021_v13  ;;  %568 = vmatpush1.bf16.msra.mxu1 %v3024_v14  ;;  %v3084_v22 = vld [vmem:[#allocation2 + $0x1d0] sm:$0xff]  ;;  %v3086_v19 = vld [vmem:[#allocation2 + $0x218] sm:$0xff]  ;;  %v3090_v20 = vld [vmem:[#allocation2 + $0x200] sm:$0xff] }
 0x12b   :  { %569 = vmatprep.subr.bf16.mxu1 %v3026_v17  ;;  %v3093_v16 = vld [vmem:[#allocation2 + $0x248] sm:$0xff]  ;;  %v3096_v15 = vld [vmem:[#allocation2 + $0x210] sm:$0xff]  ;;  %v3098_v11 = vld [vmem:[#allocation2 + $0x258] sm:$0xff] }
 0x12c   :  { %v3102_v12 = vld [vmem:[#allocation2 + $0x240] sm:$0xff]  ;;  %v3105_v8 = vld [vmem:[#allocation2 + $0x288] sm:$0xff]  ;;  %v3108_v2 = vld [vmem:[#allocation2 + $0x250] sm:$0xff] }
 0x12d   :  { %529 = vmatpush1.bf16.msra.mxu0 %v3030_v18  ;;  %v3110_v63 = vld [vmem:[#allocation2 + $0x298] sm:$0xff]  ;;  %v3114_v0 = vld [vmem:[#allocation2 + $0x280] sm:$0xff]  ;;  %v3117_v60 = vld [vmem:[#allocation2 + $0x2c8] sm:$0xff] }
 0x12e   :  { %530 = vmatprep.subr.bf16.mxu0 %v3033_v21  ;;  %570 = vmatpush1.bf16.msra.mxu1 %v3036_v23  ;;  %5426 = vst [vmem:[#allocation51_spill] sm:$0xff] %v3114_v0  ;;  %5427 = vst [vmem:[#allocation52_spill] sm:$0xff] %v3117_v60  ;;  %v3120_v59 = vld [vmem:[#allocation2 + $0x290] sm:$0xff]  ;;  %v3122_v55 = vld [vmem:[#allocation2 + $0x2d8] sm:$0xff] }
 0x12f   :  { %571 = vmatprep.subr.bf16.mxu1 %v3038_v25  ;;  %5428 = vst [vmem:[#allocation53_spill] sm:$0xff] %v3120_v59  ;;  %5429 = vst [vmem:[#allocation54_spill] sm:$0xff] %v3122_v55  ;;  %v3126_v56 = vld [vmem:[#allocation2 + $0x2c0] sm:$0xff]  ;;  %v3129_v52 = vld [vmem:[#allocation2 + $0x308] sm:$0xff] }
 0x130   :  { %5430 = vst [vmem:[#allocation55_spill] sm:$0xff] %v3126_v56  ;;  %5431 = vst [vmem:[#allocation56_spill] sm:$0xff] %v3129_v52  ;;  %v3132_v6 = vld [vmem:[#allocation2 + $0x2d0] sm:$0xff]  ;;  %v3134_v29 = vld [vmem:[#allocation2 + $0x318] sm:$0xff] }
 0x131   :  { %531 = vmatpush1.bf16.msra.mxu0 %v3042_v30  ;;  %5432 = vst [vmem:[#allocation57_spill] sm:$0xff] %v3132_v6  ;;  %5433 = vst [vmem:[#allocation58_spill] sm:$0xff] %v3134_v29  ;;  %v3138_v50 = vld [vmem:[#allocation2 + $0x300] sm:$0xff]  ;;  %v3141_v27 = vld [vmem:[#allocation2 + $0x348] sm:$0xff] }
 0x132   :  { %532 = vmatprep.subr.bf16.mxu0 %v3045_v38  ;;  %572 = vmatpush1.bf16.msra.mxu1 %v3048_v41  ;;  %5434 = vst [vmem:[#allocation59_spill] sm:$0xff] %v3138_v50  ;;  %5435 = vst [vmem:[#allocation60_spill] sm:$0xff] %v3141_v27  ;;  %v3144_v28 = vld [vmem:[#allocation2 + $0x310] sm:$0xff]  ;;  %v3146_v26 = vld [vmem:[#allocation2 + $0x358] sm:$0xff] }
 0x133   :  { %573 = vmatprep.subr.bf16.mxu1 %v3050_v46  ;;  %5436 = vst [vmem:[#allocation61_spill] sm:$0xff] %v3144_v28  ;;  %5437 = vst [vmem:[#allocation62_spill] sm:$0xff] %v3146_v26  ;;  %v3150_v47 = vld [vmem:[#allocation2 + $0x340] sm:$0xff]  ;;  %v3153_v48 = vld [vmem:[#allocation2 + $0x388] sm:$0xff] }
 0x134   :  { %5438 = vst [vmem:[#allocation63_spill] sm:$0xff] %v3150_v47  ;;  %5439 = vst [vmem:[#allocation64_spill] sm:$0xff] %v3153_v48  ;;  %v3156_v44 = vld [vmem:[#allocation2 + $0x350] sm:$0xff]  ;;  %v3158_v3 = vld [vmem:[#allocation2 + $0x398] sm:$0xff] }
 0x135   :  { %533 = vmatpush1.bf16.msra.mxu0 %v3054_v49  ;;  %5440 = vst [vmem:[#allocation65_spill] sm:$0xff] %v3156_v44  ;;  %5441 = vst [vmem:[#allocation66_spill] sm:$0xff] %v3158_v3  ;;  %v3162_v43 = vld [vmem:[#allocation2 + $0x380] sm:$0xff]  ;;  %v3165_v39 = vld [vmem:[#allocation2 + $0x3c8] sm:$0xff] }
 0x136   :  { %534 = vmatprep.subr.bf16.mxu0 %v3057_v54  ;;  %574 = vmatpush1.bf16.msra.mxu1 %v3060_v57  ;;  %5442 = vst [vmem:[#allocation67_spill] sm:$0xff] %v3162_v43  ;;  %5443 = vst [vmem:[#allocation68_spill] sm:$0xff] %v3165_v39  ;;  %v3168_v40 = vld [vmem:[#allocation2 + $0x390] sm:$0xff]  ;;  %v3170_v36 = vld [vmem:[#allocation2 + $0x3d8] sm:$0xff] }
 0x137   :  { %575 = vmatprep.subr.bf16.mxu1 %v3062_v51  ;;  %5444 = vst [vmem:[#allocation69_spill] sm:$0xff] %v3168_v40  ;;  %5445 = vst [vmem:[#allocation70_spill] sm:$0xff] %v3170_v36 }
 0x139   :  { %535 = vmatpush1.bf16.msra.mxu0 %v3066_v53 }
 0x13a   :  { %536 = vmatprep.subr.bf16.mxu0 %v3069_v45  ;;  %576 = vmatpush1.bf16.msra.mxu1 %v3072_v42 }
 0x13b   :  { %577 = vmatprep.subr.bf16.mxu1 %v3074_v35 }
 0x13d   :  { %537 = vmatpush1.bf16.msra.mxu0 %v3078_v37 }
 0x13e   :  { %538 = vmatprep.subr.bf16.mxu0 %v3081_v24  ;;  %578 = vmatpush1.bf16.msra.mxu1 %v3084_v22 }
 0x13f   :  { %579 = vmatprep.subr.bf16.mxu1 %v3086_v19 }
 0x141   :  { %539 = vmatpush1.bf16.msra.mxu0 %v3090_v20 }
 0x142   :  { %540 = vmatprep.subr.bf16.mxu0 %v3093_v16  ;;  %580 = vmatpush1.bf16.msra.mxu1 %v3096_v15 }
 0x143   :  { %581 = vmatprep.subr.bf16.mxu1 %v3098_v11 }
 0x145   :  { %541 = vmatpush1.bf16.msra.mxu0 %v3102_v12 }
 0x146   :  { %542 = vmatprep.subr.bf16.mxu0 %v3105_v8  ;;  %582 = vmatpush1.bf16.msra.mxu1 %v3108_v2 }
 0x147   :  { %583 = vmatprep.subr.bf16.mxu1 %v3110_v63 }
 0x149   :  { %543 = vmatpush1.bf16.msra.mxu0 %v3114_v0 }
 0x14a   :  { %544 = vmatprep.subr.bf16.mxu0 %v3117_v60  ;;  %584 = vmatpush1.bf16.msra.mxu1 %v3120_v59 }
 0x14b   :  { %585 = vmatprep.subr.bf16.mxu1 %v3122_v55 }
 0x14d   :  { %545 = vmatpush1.bf16.msra.mxu0 %v3126_v56 }
 0x14e   :  { %546 = vmatprep.subr.bf16.mxu0 %v3129_v52  ;;  %586 = vmatpush1.bf16.msra.mxu1 %v3132_v6 }
 0x14f   :  { %587 = vmatprep.subr.bf16.mxu1 %v3134_v29 }
 0x151   :  { %547 = vmatpush1.bf16.msra.mxu0 %v3138_v50 }
 0x152   :  { %548 = vmatprep.subr.bf16.mxu0 %v3141_v27  ;;  %588 = vmatpush1.bf16.msra.mxu1 %v3144_v28 }
 0x153   :  { %589 = vmatprep.subr.bf16.mxu1 %v3146_v26  ;;  %v3174_v26 = vld [vmem:[#allocation2 + $0x3c0] sm:$0xff] }
 0x154   :  { %5446 = vst [vmem:[#allocation71_spill] sm:$0xff] %v3174_v26 }
 0x155   :  { %549 = vmatpush1.bf16.msra.mxu0 %v3150_v47 }
 0x156   :  { %550 = vmatprep.subr.bf16.mxu0 %v3153_v48  ;;  %590 = vmatpush1.bf16.msra.mxu1 %v3156_v44  ;;  %v3178_v48 = vld [vmem:[#allocation2 + $0x3d0] sm:$0xff] }
 0x157   :  { %591 = vmatprep.subr.bf16.mxu1 %v3158_v3  ;;  %5447 = vst [vmem:[#allocation72_spill] sm:$0xff] %v3178_v48 }
 0x159   :  { %551 = vmatpush1.bf16.msra.mxu0 %v3162_v43 }
 0x15a   :  { %552 = vmatprep.subr.bf16.mxu0 %v3165_v39  ;;  %592 = vmatpush1.bf16.msra.mxu1 %v3168_v40 }
 0x15b   :  { %593 = vmatprep.subr.bf16.mxu1 %v3170_v36 }
 0x15d   :  { %553 = vmatpush1.bf16.msra.mxu0 %v3174_v26 }
 0x15e   :  { %594 = vmatpush1.bf16.msra.mxu1 %v3178_v48  ;;  %627 = vmatprep.subr.bf16.mxu0 %v2990_v31 }
 0x15f   :  { %668 = vmatprep.subr.bf16.mxu1 %v2997_v32 }
 0x160   :  { %555 = vmatmul.mubr.bf16.vlgmr.msra.gmra.mrb[16].mxu0 %v2851_v4 }
 0x161   :  { %596 = vmatmul.mubr.bf16.vlgmr.msra.gmra.mrb[16].mxu1 %v2851_v4  ;;  %628 = vmatpush1.bf16.msra.mxu0 %v2992_v58  ;;  %v5448_v4 = vld [vmem:[#allocation62_spill] sm:$0xff] }
 0x162   :  { %669 = vmatpush1.bf16.msra.mxu1 %v2999_v33  ;;  %629 = vmatprep.subr.bf16.mxu0 %v2994_v61 }
 0x163   :  { %670 = vmatprep.subr.bf16.mxu1 %v3003_v34  ;;  %659 = vmatprep.mubr.bf16.mxu0 %v2853_v5 }
 0x164   :  { %700 = vmatprep.mubr.bf16.mxu1 %v2853_v5 }
 0x165   :  { %630 = vmatpush1.bf16.msra.mxu0 %v3006_v62 }
 0x166   :  { %671 = vmatpush1.bf16.msra.mxu1 %v3012_v7  ;;  %631 = vmatprep.subr.bf16.mxu0 %v3009_v1 }
 0x167   :  { %672 = vmatprep.subr.bf16.mxu1 %v3014_v9 }
 0x169   :  { %632 = vmatpush1.bf16.msra.mxu0 %v3018_v10 }
 0x16a   :  { %673 = vmatpush1.bf16.msra.mxu1 %v3024_v14  ;;  %633 = vmatprep.subr.bf16.mxu0 %v3021_v13 }
 0x16b   :  { %674 = vmatprep.subr.bf16.mxu1 %v3026_v17 }
 0x16d   :  { %634 = vmatpush1.bf16.msra.mxu0 %v3030_v18 }
 0x16e   :  { %675 = vmatpush1.bf16.msra.mxu1 %v3036_v23  ;;  %635 = vmatprep.subr.bf16.mxu0 %v3033_v21 }
 0x16f   :  { %676 = vmatprep.subr.bf16.mxu1 %v3038_v25 }
 0x171   :  { %636 = vmatpush1.bf16.msra.mxu0 %v3042_v30 }
 0x172   :  { %677 = vmatpush1.bf16.msra.mxu1 %v3048_v41  ;;  %637 = vmatprep.subr.bf16.mxu0 %v3045_v38 }
 0x173   :  { %678 = vmatprep.subr.bf16.mxu1 %v3050_v46 }
 0x175   :  { %638 = vmatpush1.bf16.msra.mxu0 %v3054_v49 }
 0x176   :  { %679 = vmatpush1.bf16.msra.mxu1 %v3060_v57  ;;  %639 = vmatprep.subr.bf16.mxu0 %v3057_v54 }
 0x177   :  { %680 = vmatprep.subr.bf16.mxu1 %v3062_v51 }
 0x179   :  { %640 = vmatpush1.bf16.msra.mxu0 %v3066_v53 }
 0x17a   :  { %681 = vmatpush1.bf16.msra.mxu1 %v3072_v42  ;;  %641 = vmatprep.subr.bf16.mxu0 %v3069_v45 }
 0x17b   :  { %682 = vmatprep.subr.bf16.mxu1 %v3074_v35 }
 0x17d   :  { %642 = vmatpush1.bf16.msra.mxu0 %v3078_v37 }
 0x17e   :  { %683 = vmatpush1.bf16.msra.mxu1 %v3084_v22  ;;  %643 = vmatprep.subr.bf16.mxu0 %v3081_v24 }
 0x17f   :  { %684 = vmatprep.subr.bf16.mxu1 %v3086_v19 }
 0x181   :  { %644 = vmatpush1.bf16.msra.mxu0 %v3090_v20 }
 0x182   :  { %685 = vmatpush1.bf16.msra.mxu1 %v3096_v15  ;;  %645 = vmatprep.subr.bf16.mxu0 %v3093_v16 }
 0x183   :  { %686 = vmatprep.subr.bf16.mxu1 %v3098_v11 }
 0x185   :  { %646 = vmatpush1.bf16.msra.mxu0 %v3102_v12 }
 0x186   :  { %687 = vmatpush1.bf16.msra.mxu1 %v3108_v2  ;;  %647 = vmatprep.subr.bf16.mxu0 %v3105_v8 }
 0x187   :  { %688 = vmatprep.subr.bf16.mxu1 %v3110_v63 }
 0x189   :  { %648 = vmatpush1.bf16.msra.mxu0 %v3114_v0 }
 0x18a   :  { %689 = vmatpush1.bf16.msra.mxu1 %v3120_v59  ;;  %649 = vmatprep.subr.bf16.mxu0 %v3117_v60 }
 0x18b   :  { %690 = vmatprep.subr.bf16.mxu1 %v3122_v55  ;;  %v5449_v55 = vld [vmem:[#allocation64_spill] sm:$0xff] }
 0x18d   :  { %650 = vmatpush1.bf16.msra.mxu0 %v3126_v56 }
 0x18e   :  { %691 = vmatpush1.bf16.msra.mxu1 %v3132_v6  ;;  %651 = vmatprep.subr.bf16.mxu0 %v3129_v52 }
 0x18f   :  { %692 = vmatprep.subr.bf16.mxu1 %v3134_v29 }
 0x191   :  { %652 = vmatpush1.bf16.msra.mxu0 %v3138_v50 }
 0x192   :  { %693 = vmatpush1.bf16.msra.mxu1 %v3144_v28  ;;  %653 = vmatprep.subr.bf16.mxu0 %v3141_v27 }
 0x193   :  { %694 = vmatprep.subr.bf16.mxu1 %v5448_v4  ;;  %v3250_v4 = vld [vmem:[#allocation2 + $0x28] sm:$0xff] }
 0x194   :  { %5450 = vst [vmem:[#allocation73_spill] sm:$0xff] %v3250_v4 }
 0x195   :  { %654 = vmatpush1.bf16.msra.mxu0 %v3150_v47  ;;  %v3252_v47 = vld [vmem:[#allocation2 + $0x38] sm:$0xff] }
 0x196   :  { %695 = vmatpush1.bf16.msra.mxu1 %v3156_v44  ;;  %655 = vmatprep.subr.bf16.mxu0 %v5449_v55  ;;  %5451 = vst [vmem:[#allocation74_spill] sm:$0xff] %v3252_v47 }
 0x197   :  { %696 = vmatprep.subr.bf16.mxu1 %v3158_v3 }
 0x199   :  { %656 = vmatpush1.bf16.msra.mxu0 %v3162_v43  ;;  %v5452_v43 = vld [vmem:[#allocation19_spill] sm:$0xff] }
 0x19a   :  { %697 = vmatpush1.bf16.msra.mxu1 %v3168_v40  ;;  %657 = vmatprep.subr.bf16.mxu0 %v3165_v39  ;;  %v5453_v39 = vld [vmem:[#allocation21_spill] sm:$0xff] }
 0x19b   :  { %698 = vmatprep.subr.bf16.mxu1 %v3170_v36 }
 0x19d   :  { %658 = vmatpush1.bf16.msra.mxu0 %v3174_v26 }
 0x19e   :  { %699 = vmatpush1.bf16.msra.mxu1 %v3178_v48  ;;  %709 = vmatprep.subr.bf16.mxu0 %v3250_v4  ;;  %v5454_v48 = vld [vmem:[#allocation20_spill] sm:$0xff] }
 0x19f   :  { %750 = vmatprep.subr.bf16.mxu1 %v3252_v47  ;;  %v5455_v47 = vld [vmem:[#allocation22_spill] sm:$0xff] }
 0x233   :  { %v556_v3 = vpop.f32.mrb[16].mxu0 }
 0x234   :  { %v604_v55 = vadd.f32 %v556_v3, %v5452_v43  ;;  %v558_v40 = vpop.f32.mrb[17].mxu0  ;;  %v597_v44 = vpop.f32.mrb[16].mxu1 }
 0x235   :  { %v605_v27 = vadd.f32 %v558_v40, %v5453_v39  ;;  %v560_v36 = vpop.f32.mrb[18].mxu0  ;;  %v599_v28 = vpop.f32.mrb[17].mxu1  ;;  %v606_v29 = vadd.f32 %v597_v44, %v5454_v48 }
 0x236   :  { %v608_v26 = vmul.f32 0.5, %v604_v55  ;;  %v561_v50 = vpop.f32.mrb[19].mxu0  ;;  %v601_v52 = vpop.f32.mrb[18].mxu1  ;;  %v607_v4 = vadd.f32 %v599_v28, %v5455_v47  ;;  %v5456_v55 = vld [vmem:[#allocation13_spill] sm:$0xff] }
 0x237   :  { %v612_v6 = vmul.f32 0.5, %v605_v27  ;;  %v602_v56 = vpop.f32.mrb[19].mxu1  ;;  %v3266_v52 = vld [vmem:[#allocation2 + $0x20] sm:$0xff] }
 0x238   :  { %2291 = vtanh.f32 %v608_v26  ;;  %v617_v60 = vmul.f32 0.5, %v607_v4  ;;  %v3268_v56 = vld [vmem:[#allocation2 + $0x30] sm:$0xff] }
 0x239   :  { %2293 = vtanh.f32 %v612_v6  ;;  %v3282_v4 = vld [vmem:[#allocation2 + $0x70] sm:$0xff] }
 0x23a   :  { %2295 = vtanh.f32 %v606_v29 }
 0x23b   :  { %2297 = vtanh.f32 %v617_v60  ;;  %v3272_v60 = vld [vmem:[#allocation2 + $0x78] sm:$0xff] }
 0x242   :  { %v2292_v3 = vpop.eup %2291 }
 0x243   :  { %v2294_v43 = vpop.eup %2293  ;;  %v610_v59 = vmul.f32 0.5, %v2292_v3  ;;  %v3284_v3 = vld [vmem:[#allocation2 + $0xa8] sm:$0xff] }
 0x244   :  { %v2296_v0 = vpop.eup %2295  ;;  %v614_v39 = vmul.f32 0.5, %v2294_v43  ;;  %v3286_v43 = vld [vmem:[#allocation2 + $0xb8] sm:$0xff] }
 0x245   :  { %v611_v36 = vadd.f32 0.5, %v610_v59  ;;  %v2298_v6 = vpop.eup %2297  ;;  %v3270_v59 = vld [vmem:[#allocation2 + $0x68] sm:$0xff] }
 0x246   :  { %v615_v40 = vadd.f32 0.5, %v614_v39  ;;  %v619_v26 = vmul.f32 0.5, %v2298_v6  ;;  %v3294_v39 = vld [vmem:[#allocation2 + $0xa0] sm:$0xff]  ;;  %v3312_v6 = vld [vmem:[#allocation2 + $0x138] sm:$0xff] }
 0x247   :  { %v622_v50 = vmul.f32 %v2296_v0, %v611_v36  ;;  %v3280_v0 = vld [vmem:[#allocation2 + $0x60] sm:$0xff]  ;;  %v3296_v36 = vld [vmem:[#allocation2 + $0xb0] sm:$0xff]  ;;  %5460 = vst [vmem:[#allocation22_spill] sm:$0xff] %v3312_v6 }
 0x248   :  { %v621_v44 = vmul.f32 %v5456_v55, %v615_v40  ;;  %v620_v27 = vadd.f32 0.5, %v619_v26  ;;  %v3298_v40 = vld [vmem:[#allocation2 + $0xe8] sm:$0xff]  ;;  %v3308_v55 = vld [vmem:[#allocation2 + $0xf0] sm:$0xff]  ;;  %v3318_v26 = vld [vmem:[#allocation2 + $0x120] sm:$0xff] }
 0x249   :  { %5458 = vst [vmem:[#allocation21_spill] sm:$0xff] %v3308_v55  ;;  %5461 = vst [vmem:[#allocation13_spill] sm:$0xff] %v3318_v26 }
 0x24a   :  { %v3261_v48 = vadd.f32 %v622_v50, %v621_v44  ;;  %v3300_v50 = vld [vmem:[#allocation2 + $0xf8] sm:$0xff]  ;;  %v3310_v44 = vld [vmem:[#allocation2 + $0x128] sm:$0xff] }
 0x24b   :  { %5459 = vst [vmem:[#allocation20_spill] sm:$0xff] %v3310_v44 }
 0x24c   :  { %2299 = vtanh.f32 %v3261_v48 }
 0x256   :  { %v2300_v28 = vpop.eup %2299 }
 0x257   :  { %v625_v29 = vmul.f32 %v2300_v28, %v620_v27  ;;  %v3320_v27 = vld [vmem:[#allocation2 + $0x130] sm:$0xff]  ;;  %v3322_v28 = vld [vmem:[#allocation2 + $0x168] sm:$0xff] }
 0x258   :  { %5462 = vst [vmem:[#allocation75_spill] sm:$0xff] %v3320_v27  ;;  %5463 = vst [vmem:[#allocation76_spill] sm:$0xff] %v3322_v28 }
 0x259   :  { %v3264_v47 = vpack.c.bf16 %v625_v29, %v625_v29  ;;  %v3324_v29 = vld [vmem:[#allocation2 + $0x178] sm:$0xff] }
 0x25a   :  { %5464 = vst [vmem:[#allocation77_spill] sm:$0xff] %v3324_v29 }
 0x25b   :  { %660 = vmatmul.mubr.bf16.vlgmr.msra.gmra.mrb[20].mxu0 %v3264_v47  ;;  %701 = vmatmul.mubr.bf16.vlgmr.msra.gmra.mrb[20].mxu1 %v3264_v47 }
 0x25c   :  { %710 = vmatpush1.bf16.msra.mxu0 %v3266_v52  ;;  %751 = vmatpush1.bf16.msra.mxu1 %v3268_v56 }
 0x25d   :  { %711 = vmatprep.subr.bf16.mxu0 %v3270_v59  ;;  %752 = vmatprep.subr.bf16.mxu1 %v3272_v60 }
 0x25e   :  { %741 = vmatprep.mubr.bf16.mxu0 %v2853_v5  ;;  %782 = vmatprep.mubr.bf16.mxu1 %v2853_v5  ;;  %v3306_v5 = vld [vmem:[#allocation2 + $0xe0] sm:$0xff] }
 0x25f   :  { %5457 = vst [vmem:[#allocation19_spill] sm:$0xff] %v3306_v5 }
 0x260   :  { %712 = vmatpush1.bf16.msra.mxu0 %v3280_v0  ;;  %753 = vmatpush1.bf16.msra.mxu1 %v3282_v4 }
 0x261   :  { %713 = vmatprep.subr.bf16.mxu0 %v3284_v3  ;;  %754 = vmatprep.subr.bf16.mxu1 %v3286_v43 }
 0x264   :  { %714 = vmatpush1.bf16.msra.mxu0 %v3294_v39  ;;  %755 = vmatpush1.bf16.msra.mxu1 %v3296_v36 }
 0x265   :  { %715 = vmatprep.subr.bf16.mxu0 %v3298_v40  ;;  %756 = vmatprep.subr.bf16.mxu1 %v3300_v50 }
 0x268   :  { %716 = vmatpush1.bf16.msra.mxu0 %v3306_v5  ;;  %757 = vmatpush1.bf16.msra.mxu1 %v3308_v55  ;;  %v3330_v55 = vld [vmem:[#allocation2 + $0x160] sm:$0xff]  ;;  %v3336_v5 = vld [vmem:[#allocation2 + $0x1b8] sm:$0xff] }
 0x269   :  { %717 = vmatprep.subr.bf16.mxu0 %v3310_v44  ;;  %758 = vmatprep.subr.bf16.mxu1 %v3312_v6  ;;  %5465 = vst [vmem:[#allocation78_spill] sm:$0xff] %v3330_v55  ;;  %v3332_v44 = vld [vmem:[#allocation2 + $0x170] sm:$0xff]  ;;  %v3334_v6 = vld [vmem:[#allocation2 + $0x1a8] sm:$0xff]  ;;  %5468 = vst [vmem:[#allocation81_spill] sm:$0xff] %v3336_v5 }
 0x26a   :  { %5466 = vst [vmem:[#allocation79_spill] sm:$0xff] %v3332_v44  ;;  %5467 = vst [vmem:[#allocation80_spill] sm:$0xff] %v3334_v6 }
 0x26c   :  { %718 = vmatpush1.bf16.msra.mxu0 %v3318_v26  ;;  %759 = vmatpush1.bf16.msra.mxu1 %v3320_v27  ;;  %v3342_v27 = vld [vmem:[#allocation2 + $0x1a0] sm:$0xff]  ;;  %v3348_v26 = vld [vmem:[#allocation2 + $0x1f8] sm:$0xff] }
 0x26d   :  { %719 = vmatprep.subr.bf16.mxu0 %v3322_v28  ;;  %760 = vmatprep.subr.bf16.mxu1 %v3324_v29  ;;  %5469 = vst [vmem:[#allocation82_spill] sm:$0xff] %v3342_v27  ;;  %v3344_v28 = vld [vmem:[#allocation2 + $0x1b0] sm:$0xff]  ;;  %v3346_v29 = vld [vmem:[#allocation2 + $0x1e8] sm:$0xff]  ;;  %5472 = vst [vmem:[#allocation85_spill] sm:$0xff] %v3348_v26 }
 0x26e   :  { %5470 = vst [vmem:[#allocation83_spill] sm:$0xff] %v3344_v28  ;;  %5471 = vst [vmem:[#allocation84_spill] sm:$0xff] %v3346_v29 }
 0x270   :  { %720 = vmatpush1.bf16.msra.mxu0 %v3330_v55  ;;  %761 = vmatpush1.bf16.msra.mxu1 %v3332_v44  ;;  %v3354_v44 = vld [vmem:[#allocation2 + $0x1e0] sm:$0xff]  ;;  %v3360_v55 = vld [vmem:[#allocation2 + $0x238] sm:$0xff] }
 0x271   :  { %721 = vmatprep.subr.bf16.mxu0 %v3334_v6  ;;  %762 = vmatprep.subr.bf16.mxu1 %v3336_v5  ;;  %5473 = vst [vmem:[#allocation86_spill] sm:$0xff] %v3354_v44  ;;  %v3356_v6 = vld [vmem:[#allocation2 + $0x1f0] sm:$0xff]  ;;  %v3358_v5 = vld [vmem:[#allocation2 + $0x228] sm:$0xff]  ;;  %5476 = vst [vmem:[#allocation89_spill] sm:$0xff] %v3360_v55 }
 0x272   :  { %5474 = vst [vmem:[#allocation87_spill] sm:$0xff] %v3356_v6  ;;  %5475 = vst [vmem:[#allocation88_spill] sm:$0xff] %v3358_v5 }
 0x274   :  { %722 = vmatpush1.bf16.msra.mxu0 %v3342_v27  ;;  %763 = vmatpush1.bf16.msra.mxu1 %v3344_v28  ;;  %v3366_v28 = vld [vmem:[#allocation2 + $0x220] sm:$0xff]  ;;  %v3372_v27 = vld [vmem:[#allocation2 + $0x278] sm:$0xff] }
 0x275   :  { %723 = vmatprep.subr.bf16.mxu0 %v3346_v29  ;;  %764 = vmatprep.subr.bf16.mxu1 %v3348_v26  ;;  %5477 = vst [vmem:[#allocation90_spill] sm:$0xff] %v3366_v28  ;;  %v3368_v29 = vld [vmem:[#allocation2 + $0x230] sm:$0xff]  ;;  %v3370_v26 = vld [vmem:[#allocation2 + $0x268] sm:$0xff]  ;;  %5480 = vst [vmem:[#allocation93_spill] sm:$0xff] %v3372_v27 }
 0x276   :  { %5478 = vst [vmem:[#allocation91_spill] sm:$0xff] %v3368_v29  ;;  %5479 = vst [vmem:[#allocation92_spill] sm:$0xff] %v3370_v26 }
 0x278   :  { %724 = vmatpush1.bf16.msra.mxu0 %v3354_v44  ;;  %765 = vmatpush1.bf16.msra.mxu1 %v3356_v6  ;;  %v3378_v6 = vld [vmem:[#allocation2 + $0x260] sm:$0xff]  ;;  %v3384_v44 = vld [vmem:[#allocation2 + $0x2b8] sm:$0xff] }
 0x279   :  { %725 = vmatprep.subr.bf16.mxu0 %v3358_v5  ;;  %766 = vmatprep.subr.bf16.mxu1 %v3360_v55  ;;  %5481 = vst [vmem:[#allocation94_spill] sm:$0xff] %v3378_v6  ;;  %v3380_v5 = vld [vmem:[#allocation2 + $0x270] sm:$0xff]  ;;  %v3382_v55 = vld [vmem:[#allocation2 + $0x2a8] sm:$0xff]  ;;  %5484 = vst [vmem:[#allocation97_spill] sm:$0xff] %v3384_v44 }
 0x27a   :  { %5482 = vst [vmem:[#allocation95_spill] sm:$0xff] %v3380_v5  ;;  %5483 = vst [vmem:[#allocation96_spill] sm:$0xff] %v3382_v55 }
 0x27c   :  { %726 = vmatpush1.bf16.msra.mxu0 %v3366_v28  ;;  %767 = vmatpush1.bf16.msra.mxu1 %v3368_v29  ;;  %v3390_v29 = vld [vmem:[#allocation2 + $0x2a0] sm:$0xff]  ;;  %v3396_v28 = vld [vmem:[#allocation2 + $0x2f8] sm:$0xff] }
 0x27d   :  { %727 = vmatprep.subr.bf16.mxu0 %v3370_v26  ;;  %768 = vmatprep.subr.bf16.mxu1 %v3372_v27  ;;  %5485 = vst [vmem:[#allocation98_spill] sm:$0xff] %v3390_v29  ;;  %v3392_v26 = vld [vmem:[#allocation2 + $0x2b0] sm:$0xff]  ;;  %v3394_v27 = vld [vmem:[#allocation2 + $0x2e8] sm:$0xff]  ;;  %5488 = vst [vmem:[#allocation101_spill] sm:$0xff] %v3396_v28 }
 0x27e   :  { %5486 = vst [vmem:[#allocation99_spill] sm:$0xff] %v3392_v26  ;;  %5487 = vst [vmem:[#allocation100_spill] sm:$0xff] %v3394_v27 }
 0x280   :  { %728 = vmatpush1.bf16.msra.mxu0 %v3378_v6  ;;  %769 = vmatpush1.bf16.msra.mxu1 %v3380_v5  ;;  %v3402_v5 = vld [vmem:[#allocation2 + $0x2e0] sm:$0xff]  ;;  %v3408_v6 = vld [vmem:[#allocation2 + $0x338] sm:$0xff] }
 0x281   :  { %729 = vmatprep.subr.bf16.mxu0 %v3382_v55  ;;  %770 = vmatprep.subr.bf16.mxu1 %v3384_v44  ;;  %5489 = vst [vmem:[#allocation102_spill] sm:$0xff] %v3402_v5  ;;  %v3404_v55 = vld [vmem:[#allocation2 + $0x2f0] sm:$0xff]  ;;  %v3406_v44 = vld [vmem:[#allocation2 + $0x328] sm:$0xff]  ;;  %5492 = vst [vmem:[#allocation105_spill] sm:$0xff] %v3408_v6 }
 0x282   :  { %5490 = vst [vmem:[#allocation103_spill] sm:$0xff] %v3404_v55  ;;  %5491 = vst [vmem:[#allocation104_spill] sm:$0xff] %v3406_v44 }
 0x284   :  { %730 = vmatpush1.bf16.msra.mxu0 %v3390_v29  ;;  %771 = vmatpush1.bf16.msra.mxu1 %v3392_v26  ;;  %v3414_v26 = vld [vmem:[#allocation2 + $0x320] sm:$0xff]  ;;  %v3420_v29 = vld [vmem:[#allocation2 + $0x378] sm:$0xff] }
 0x285   :  { %731 = vmatprep.subr.bf16.mxu0 %v3394_v27  ;;  %772 = vmatprep.subr.bf16.mxu1 %v3396_v28  ;;  %5493 = vst [vmem:[#allocation106_spill] sm:$0xff] %v3414_v26  ;;  %v3416_v27 = vld [vmem:[#allocation2 + $0x330] sm:$0xff]  ;;  %v3418_v28 = vld [vmem:[#allocation2 + $0x368] sm:$0xff]  ;;  %5496 = vst [vmem:[#allocation109_spill] sm:$0xff] %v3420_v29 }
 0x286   :  { %5494 = vst [vmem:[#allocation107_spill] sm:$0xff] %v3416_v27  ;;  %5495 = vst [vmem:[#allocation108_spill] sm:$0xff] %v3418_v28 }
 0x288   :  { %732 = vmatpush1.bf16.msra.mxu0 %v3402_v5  ;;  %773 = vmatpush1.bf16.msra.mxu1 %v3404_v55  ;;  %v3426_v55 = vld [vmem:[#allocation2 + $0x360] sm:$0xff]  ;;  %v3432_v5 = vld [vmem:[#allocation2 + $0x3b8] sm:$0xff] }
 0x289   :  { %733 = vmatprep.subr.bf16.mxu0 %v3406_v44  ;;  %774 = vmatprep.subr.bf16.mxu1 %v3408_v6  ;;  %5497 = vst [vmem:[#allocation110_spill] sm:$0xff] %v3426_v55  ;;  %v3428_v44 = vld [vmem:[#allocation2 + $0x370] sm:$0xff]  ;;  %v3430_v6 = vld [vmem:[#allocation2 + $0x3a8] sm:$0xff]  ;;  %5500 = vst [vmem:[#allocation113_spill] sm:$0xff] %v3432_v5 }
 0x28a   :  { %5498 = vst [vmem:[#allocation111_spill] sm:$0xff] %v3428_v44  ;;  %5499 = vst [vmem:[#allocation112_spill] sm:$0xff] %v3430_v6 }
 0x28c   :  { %734 = vmatpush1.bf16.msra.mxu0 %v3414_v26  ;;  %775 = vmatpush1.bf16.msra.mxu1 %v3416_v27  ;;  %v3438_v27 = vld [vmem:[#allocation2 + $0x3a0] sm:$0xff]  ;;  %v3444_v26 = vld [vmem:[#allocation2 + $0x3f8] sm:$0xff] }
 0x28d   :  { %735 = vmatprep.subr.bf16.mxu0 %v3418_v28  ;;  %776 = vmatprep.subr.bf16.mxu1 %v3420_v29  ;;  %5501 = vst [vmem:[#allocation114_spill] sm:$0xff] %v3438_v27  ;;  %v3440_v28 = vld [vmem:[#allocation2 + $0x3b0] sm:$0xff]  ;;  %v3442_v29 = vld [vmem:[#allocation2 + $0x3e8] sm:$0xff]  ;;  %5504 = vst [vmem:[#allocation117_spill] sm:$0xff] %v3444_v26 }
 0x28e   :  { %5502 = vst [vmem:[#allocation115_spill] sm:$0xff] %v3440_v28  ;;  %5503 = vst [vmem:[#allocation116_spill] sm:$0xff] %v3442_v29 }
 0x290   :  { %736 = vmatpush1.bf16.msra.mxu0 %v3426_v55  ;;  %777 = vmatpush1.bf16.msra.mxu1 %v3428_v44  ;;  %v3450_v44 = vld [vmem:[#allocation2 + $0x3e0] sm:$0xff] }
 0x291   :  { %737 = vmatprep.subr.bf16.mxu0 %v3430_v6  ;;  %778 = vmatprep.subr.bf16.mxu1 %v3432_v5  ;;  %5505 = vst [vmem:[#allocation118_spill] sm:$0xff] %v3450_v44  ;;  %v3452_v6 = vld [vmem:[#allocation2 + $0x3f0] sm:$0xff] }
 0x292   :  { %5506 = vst [vmem:[#allocation119_spill] sm:$0xff] %v3452_v6 }
 0x294   :  { %738 = vmatpush1.bf16.msra.mxu0 %v3438_v27  ;;  %779 = vmatpush1.bf16.msra.mxu1 %v3440_v28 }
 0x295   :  { %739 = vmatprep.subr.bf16.mxu0 %v3442_v29  ;;  %780 = vmatprep.subr.bf16.mxu1 %v3444_v26 }
 0x298   :  { %740 = vmatpush1.bf16.msra.mxu0 %v3450_v44  ;;  %781 = vmatpush1.bf16.msra.mxu1 %v3452_v6 }
 0x299   :  { %838 = vmatprep.subr.bf16.mxu0 %v2990_v31  ;;  %879 = vmatprep.subr.bf16.mxu1 %v2997_v32  ;;  %v5525_v31 = vld [vmem:[#allocation68_spill] sm:$0xff] }
 0x29a   :  { %v5528_v32 = vld [vmem:[#allocation72_spill] sm:$0xff] }
 0x29b   :  { %742 = vmatmul.mubr.bf16.vlgmr.msra.gmra.mrb[24].mxu0 %v3264_v47  ;;  %783 = vmatmul.mubr.bf16.vlgmr.msra.gmra.mrb[24].mxu1 %v3264_v47 }
 0x29c   :  { %839 = vmatpush1.bf16.msra.mxu0 %v2992_v58  ;;  %880 = vmatpush1.bf16.msra.mxu1 %v2999_v33  ;;  %v5526_v58 = vld [vmem:[#allocation70_spill] sm:$0xff]  ;;  %v5529_v33 = vld [vmem:[#allocation73_spill] sm:$0xff] }
 0x29d   :  { %840 = vmatprep.subr.bf16.mxu0 %v2994_v61  ;;  %881 = vmatprep.subr.bf16.mxu1 %v3003_v34  ;;  %v5527_v61 = vld [vmem:[#allocation71_spill] sm:$0xff]  ;;  %v5530_v34 = vld [vmem:[#allocation74_spill] sm:$0xff] }
 0x2a0   :  { %841 = vmatpush1.bf16.msra.mxu0 %v3006_v62  ;;  %882 = vmatpush1.bf16.msra.mxu1 %v3012_v7  ;;  %v5531_v7 = vld [vmem:[#allocation23_spill] sm:$0xff] }
 0x2a1   :  { %842 = vmatprep.subr.bf16.mxu0 %v3009_v1  ;;  %883 = vmatprep.subr.bf16.mxu1 %v3014_v9 }
 0x2a4   :  { %843 = vmatpush1.bf16.msra.mxu0 %v3018_v10  ;;  %884 = vmatpush1.bf16.msra.mxu1 %v3024_v14  ;;  %v5532_v14 = vld [vmem:[#allocation25_spill] sm:$0xff] }
 0x2a5   :  { %844 = vmatprep.subr.bf16.mxu0 %v3021_v13  ;;  %885 = vmatprep.subr.bf16.mxu1 %v3026_v17 }
 0x2a8   :  { %845 = vmatpush1.bf16.msra.mxu0 %v3030_v18  ;;  %886 = vmatpush1.bf16.msra.mxu1 %v3036_v23 }
 0x2a9   :  { %846 = vmatprep.subr.bf16.mxu0 %v3033_v21  ;;  %887 = vmatprep.subr.bf16.mxu1 %v3038_v25 }
 0x2ac   :  { %847 = vmatpush1.bf16.msra.mxu0 %v3042_v30  ;;  %888 = vmatpush1.bf16.msra.mxu1 %v3048_v41  ;;  %v5533_v41 = vld [vmem:[#allocation24_spill] sm:$0xff] }
 0x2ad   :  { %848 = vmatprep.subr.bf16.mxu0 %v3045_v38  ;;  %889 = vmatprep.subr.bf16.mxu1 %v3050_v46 }
 0x2b0   :  { %849 = vmatpush1.bf16.msra.mxu0 %v3054_v49  ;;  %890 = vmatpush1.bf16.msra.mxu1 %v3060_v57  ;;  %v5524_v57 = vld [vmem:[#allocation69_spill] sm:$0xff] }
 0x2b1   :  { %850 = vmatprep.subr.bf16.mxu0 %v3057_v54  ;;  %891 = vmatprep.subr.bf16.mxu1 %v3062_v51  ;;  %v5522_v51 = vld [vmem:[#allocation66_spill] sm:$0xff] }
 0x2b4   :  { %851 = vmatpush1.bf16.msra.mxu0 %v3066_v53  ;;  %892 = vmatpush1.bf16.msra.mxu1 %v3072_v42  ;;  %v5520_v42 = vld [vmem:[#allocation65_spill] sm:$0xff]  ;;  %v5523_v53 = vld [vmem:[#allocation67_spill] sm:$0xff] }
 0x2b5   :  { %852 = vmatprep.subr.bf16.mxu0 %v3069_v45  ;;  %893 = vmatprep.subr.bf16.mxu1 %v3074_v35  ;;  %v5518_v35 = vld [vmem:[#allocation62_spill] sm:$0xff]  ;;  %v5521_v45 = vld [vmem:[#allocation64_spill] sm:$0xff] }
 0x2b8   :  { %853 = vmatpush1.bf16.msra.mxu0 %v3078_v37  ;;  %894 = vmatpush1.bf16.msra.mxu1 %v3084_v22  ;;  %v5507_v22 = vld [vmem:[#allocation51_spill] sm:$0xff] }
 0x2b9   :  { %854 = vmatprep.subr.bf16.mxu0 %v3081_v24  ;;  %895 = vmatprep.subr.bf16.mxu1 %v3086_v19  ;;  %v5508_v24 = vld [vmem:[#allocation53_spill] sm:$0xff]  ;;  %v5509_v19 = vld [vmem:[#allocation52_spill] sm:$0xff]  ;;  %v5519_v37 = vld [vmem:[#allocation63_spill] sm:$0xff] }
 0x2bc   :  { %855 = vmatpush1.bf16.msra.mxu0 %v3090_v20  ;;  %896 = vmatpush1.bf16.msra.mxu1 %v3096_v15  ;;  %v5510_v20 = vld [vmem:[#allocation54_spill] sm:$0xff]  ;;  %v5511_v15 = vld [vmem:[#allocation55_spill] sm:$0xff] }
 0x2bd   :  { %856 = vmatprep.subr.bf16.mxu0 %v3093_v16  ;;  %897 = vmatprep.subr.bf16.mxu1 %v3098_v11  ;;  %v5512_v16 = vld [vmem:[#allocation57_spill] sm:$0xff]  ;;  %v5513_v11 = vld [vmem:[#allocation56_spill] sm:$0xff] }
 0x2c0   :  { %857 = vmatpush1.bf16.msra.mxu0 %v3102_v12  ;;  %898 = vmatpush1.bf16.msra.mxu1 %v3108_v2  ;;  %v5514_v12 = vld [vmem:[#allocation58_spill] sm:$0xff]  ;;  %v5515_v2 = vld [vmem:[#allocation59_spill] sm:$0xff] }
 0x2c1   :  { %858 = vmatprep.subr.bf16.mxu0 %v3105_v8  ;;  %899 = vmatprep.subr.bf16.mxu1 %v3110_v63  ;;  %v5516_v8 = vld [vmem:[#allocation61_spill] sm:$0xff]  ;;  %v5517_v63 = vld [vmem:[#allocation60_spill] sm:$0xff] }
 0x2c4   :  { %859 = vmatpush1.bf16.msra.mxu0 %v5507_v22  ;;  %900 = vmatpush1.bf16.msra.mxu1 %v5508_v24 }
 0x2c5   :  { %860 = vmatprep.subr.bf16.mxu0 %v5509_v19  ;;  %901 = vmatprep.subr.bf16.mxu1 %v5510_v20 }
 0x2c8   :  { %861 = vmatpush1.bf16.msra.mxu0 %v5511_v15  ;;  %902 = vmatpush1.bf16.msra.mxu1 %v5512_v16 }
 0x2c9   :  { %862 = vmatprep.subr.bf16.mxu0 %v5513_v11  ;;  %903 = vmatprep.subr.bf16.mxu1 %v5514_v12 }
 0x2cc   :  { %863 = vmatpush1.bf16.msra.mxu0 %v5515_v2  ;;  %904 = vmatpush1.bf16.msra.mxu1 %v5516_v8  ;;  %v5534_v8 = vld [vmem:[#allocation15_spill] sm:$0xff] }
 0x2cd   :  { %864 = vmatprep.subr.bf16.mxu0 %v5517_v63  ;;  %905 = vmatprep.subr.bf16.mxu1 %v5518_v35 }
 0x2d0   :  { %865 = vmatpush1.bf16.msra.mxu0 %v5519_v37  ;;  %906 = vmatpush1.bf16.msra.mxu1 %v5520_v42  ;;  %v5535_v42 = vld [vmem:[#allocation17_spill] sm:$0xff] }
 0x2d1   :  { %866 = vmatprep.subr.bf16.mxu0 %v5521_v45  ;;  %907 = vmatprep.subr.bf16.mxu1 %v5522_v51 }
 0x2d4   :  { %867 = vmatpush1.bf16.msra.mxu0 %v5523_v53  ;;  %908 = vmatpush1.bf16.msra.mxu1 %v5524_v57 }
 0x2d5   :  { %868 = vmatprep.subr.bf16.mxu0 %v5525_v31  ;;  %909 = vmatprep.subr.bf16.mxu1 %v5526_v58 }
 0x2d8   :  { %869 = vmatpush1.bf16.msra.mxu0 %v5527_v61  ;;  %910 = vmatpush1.bf16.msra.mxu1 %v5528_v32  ;;  %v5536_v32 = vld [vmem:[#allocation16_spill] sm:$0xff] }
 0x2d9   :  { %920 = vmatprep.subr.bf16.mxu0 %v5529_v33  ;;  %961 = vmatprep.subr.bf16.mxu1 %v5530_v34 }
 0x32e   :  { %v661_v62 = vpop.f32.mrb[20].mxu0  ;;  %v702_v1 = vpop.f32.mrb[20].mxu1 }
 0x32f   :  { %v795_v9 = vadd.f32 %v661_v62, %v5531_v7  ;;  %v663_v10 = vpop.f32.mrb[21].mxu0  ;;  %v704_v13 = vpop.f32.mrb[21].mxu1  ;;  %v797_v46 = vadd.f32 %v702_v1, %v5533_v41  ;;  %v5538_v7 = vld [vmem:[#allocation18_spill] sm:$0xff] }
 0x330   :  { %v796_v17 = vadd.f32 %v663_v10, %v5532_v14  ;;  %v665_v18 = vpop.f32.mrb[22].mxu0  ;;  %v706_v21 = vpop.f32.mrb[22].mxu1 }
 0x331   :  { %v819_v23 = vmul.f32 0.5, %v795_v9  ;;  %v666_v25 = vpop.f32.mrb[23].mxu0  ;;  %v707_v30 = vpop.f32.mrb[23].mxu1 }
 0x332   :  { %v823_v38 = vmul.f32 0.5, %v796_v17 }
 0x333   :  { %2301 = vtanh.f32 %v819_v23 }
 0x334   :  { %2303 = vtanh.f32 %v823_v38 }
 0x335   :  { %2305 = vtanh.f32 %v797_v46  ;;  %v5539_v46 = vld [vmem:[#allocation14_spill] sm:$0xff] }
 0x33d   :  { %v2302_v49 = vpop.eup %2301 }
 0x33e   :  { %v2304_v54 = vpop.eup %2303  ;;  %v821_v47 = vmul.f32 0.5, %v2302_v49 }
 0x33f   :  { %v825_v22 = vmul.f32 0.5, %v2304_v54  ;;  %v2306_v19 = vpop.eup %2305 }
 0x340   :  { %v822_v24 = vadd.f32 0.5, %v821_v47 }
 0x341   :  { %v826_v20 = vadd.f32 0.5, %v825_v22 }
 0x342   :  { %v833_v15 = vmul.f32 %v2306_v19, %v822_v24 }
 0x343   :  { %v832_v16 = vmul.f32 %v826_v20, %v3261_v48  ;;  %v5537_v48 = vld [vmem:[#allocation26_spill] sm:$0xff] }
 0x344   :  { %v798_v1 = vadd.f32 %v704_v13, %v5537_v48  ;;  %v5549_v48 = vld [vmem:[#allocation79_spill] sm:$0xff] }
 0x345   :  { %v3528_v11 = vadd.f32 %v833_v15, %v832_v16 }
 0x346   :  { %v828_v10 = vmul.f32 0.5, %v798_v1  ;;  %v5550_v1 = vld [vmem:[#allocation80_spill] sm:$0xff] }
 0x36e   :  { %v743_v12 = vpop.f32.mrb[24].mxu0  ;;  %v784_v2 = vpop.f32.mrb[24].mxu1 }
 0x36f   :  { %v791_v63 = vadd.f32 %v743_v12, %v5534_v8  ;;  %v745_v35 = vpop.f32.mrb[25].mxu0  ;;  %v786_v37 = vpop.f32.mrb[25].mxu1  ;;  %v793_v62 = vadd.f32 %v784_v2, %v5536_v32 }
 0x370   :  { %v792_v45 = vadd.f32 %v745_v35, %v5535_v42  ;;  %v747_v51 = vpop.f32.mrb[26].mxu0  ;;  %v788_v53 = vpop.f32.mrb[26].mxu1  ;;  %v794_v9 = vadd.f32 %v786_v37, %v5538_v7  ;;  %v5540_v37 = vld [vmem:[#allocation19_spill] sm:$0xff] }
 0x371   :  { %v799_v57 = vmul.f32 0.5, %v791_v63  ;;  %v748_v31 = vpop.f32.mrb[27].mxu0  ;;  %v789_v58 = vpop.f32.mrb[27].mxu1  ;;  %v5542_v51 = vld [vmem:[#allocation20_spill] sm:$0xff]  ;;  %v5543_v53 = vld [vmem:[#allocation22_spill] sm:$0xff] }
 0x372   :  { %v803_v61 = vmul.f32 0.5, %v792_v45  ;;  %v808_v14 = vmul.f32 0.5, %v794_v9  ;;  %v5541_v45 = vld [vmem:[#allocation21_spill] sm:$0xff]  ;;  %v5545_v31 = vld [vmem:[#allocation75_spill] sm:$0xff]  ;;  %v5546_v58 = vld [vmem:[#allocation76_spill] sm:$0xff] }
 0x373   :  { %2307 = vtanh.f32 %v799_v57  ;;  %v5544_v57 = vld [vmem:[#allocation13_spill] sm:$0xff] }
 0x374   :  { %2309 = vtanh.f32 %v803_v61  ;;  %v5547_v61 = vld [vmem:[#allocation77_spill] sm:$0xff] }
 0x375   :  { %2311 = vtanh.f32 %v793_v62  ;;  %v5548_v62 = vld [vmem:[#allocation78_spill] sm:$0xff]  ;;  %v5551_v9 = vld [vmem:[#allocation81_spill] sm:$0xff] }
 0x376   :  { %2313 = vtanh.f32 %v828_v10  ;;  %v5552_v10 = vld [vmem:[#allocation82_spill] sm:$0xff] }
 0x377   :  { %2315 = vtanh.f32 %v808_v14  ;;  %v5553_v14 = vld [vmem:[#allocation83_spill] sm:$0xff] }
 0x378   :  { %2317 = vtanh.f32 %v3528_v11 }
 0x37d   :  { %v2308_v17 = vpop.eup %2307 }
 0x37e   :  { %v2310_v18 = vpop.eup %2309  ;;  %v801_v21 = vmul.f32 0.5, %v2308_v17  ;;  %v5554_v17 = vld [vmem:[#allocation84_spill] sm:$0xff] }
 0x37f   :  { %v805_v23 = vmul.f32 0.5, %v2310_v18  ;;  %v2312_v30 = vpop.eup %2311  ;;  %v5555_v18 = vld [vmem:[#allocation85_spill] sm:$0xff] }
 0x380   :  { %v802_v25 = vadd.f32 0.5, %v801_v21  ;;  %v2314_v54 = vpop.eup %2313  ;;  %v5556_v21 = vld [vmem:[#allocation86_spill] sm:$0xff] }
 0x381   :  { %v806_v38 = vadd.f32 0.5, %v805_v23  ;;  %v2316_v47 = vpop.eup %2315  ;;  %v830_v22 = vmul.f32 0.5, %v2314_v54  ;;  %v5557_v23 = vld [vmem:[#allocation87_spill] sm:$0xff]  ;;  %v5564_v54 = vld [vmem:[#allocation94_spill] sm:$0xff] }
 0x382   :  { %v813_v41 = vmul.f32 %v2312_v30, %v802_v25  ;;  %v810_v24 = vmul.f32 0.5, %v2316_v47  ;;  %v2318_v19 = vpop.eup %2317  ;;  %v5558_v25 = vld [vmem:[#allocation88_spill] sm:$0xff]  ;;  %v5559_v30 = vld [vmem:[#allocation89_spill] sm:$0xff]  ;;  %v5565_v47 = vld [vmem:[#allocation95_spill] sm:$0xff] }
 0x383   :  { %v812_v49 = vmul.f32 %v5539_v46, %v806_v38  ;;  %v831_v20 = vadd.f32 0.5, %v830_v22  ;;  %v5560_v38 = vld [vmem:[#allocation90_spill] sm:$0xff]  ;;  %v5562_v46 = vld [vmem:[#allocation92_spill] sm:$0xff] }
 0x384   :  { %v811_v15 = vadd.f32 0.5, %v810_v24  ;;  %v5566_v22 = vld [vmem:[#allocation96_spill] sm:$0xff]  ;;  %v5567_v24 = vld [vmem:[#allocation97_spill] sm:$0xff] }
 0x385   :  { %v3537_v13 = vadd.f32 %v813_v41, %v812_v49  ;;  %v836_v12 = vmul.f32 %v2318_v19, %v831_v20  ;;  %v5561_v41 = vld [vmem:[#allocation91_spill] sm:$0xff]  ;;  %v5563_v49 = vld [vmem:[#allocation93_spill] sm:$0xff]  ;;  %v5568_v19 = vld [vmem:[#allocation98_spill] sm:$0xff] }
 0x386   :  { %v5569_v20 = vld [vmem:[#allocation99_spill] sm:$0xff] }
 0x387   :  { %2319 = vtanh.f32 %v3537_v13  ;;  %v3540_v35 = vpack.c.bf16 %v836_v12, %v836_v12  ;;  %v5572_v12 = vld [vmem:[#allocation102_spill] sm:$0xff] }
 0x391   :  { %v2320_v16 = vpop.eup %2319 }
 0x392   :  { %v816_v2 = vmul.f32 %v2320_v16, %v811_v15  ;;  %v5570_v15 = vld [vmem:[#allocation100_spill] sm:$0xff]  ;;  %v5571_v16 = vld [vmem:[#allocation101_spill] sm:$0xff] }
 0x394   :  { %v817_v63 = vpack.c.bf16 %v816_v2, %v816_v2  ;;  %v5573_v2 = vld [vmem:[#allocation103_spill] sm:$0xff] }
 0x396   :  { %818 = vst [vmem:[#allocation7] sm:$0xf] %v817_v63  ;;  %870 = vmatprep.mubr.bf16.mxu0 %v817_v63  ;;  %911 = vmatprep.mubr.bf16.mxu1 %v817_v63 }
 0x397   :  { %871 = vmatmul.mubr.bf16.vlgmr.msra.gmra.mrb[28].mxu0 %v3540_v35  ;;  %912 = vmatmul.mubr.bf16.vlgmr.msra.gmra.mrb[28].mxu1 %v3540_v35 }
 0x398   :  { %921 = vmatpush1.bf16.msra.mxu0 %v3266_v52  ;;  %962 = vmatpush1.bf16.msra.mxu1 %v3268_v56 }
 0x399   :  { %952 = vmatprep.mubr.bf16.mxu0 %v817_v63  ;;  %993 = vmatprep.mubr.bf16.mxu1 %v817_v63  ;;  %v5574_v63 = vld [vmem:[#allocation104_spill] sm:$0xff] }
 0x39a   :  { %922 = vmatprep.subr.bf16.mxu0 %v3270_v59  ;;  %963 = vmatprep.subr.bf16.mxu1 %v3272_v60 }
 0x39c   :  { %923 = vmatpush1.bf16.msra.mxu0 %v3280_v0  ;;  %964 = vmatpush1.bf16.msra.mxu1 %v3282_v4 }
 0x39d   :  { %924 = vmatprep.subr.bf16.mxu0 %v3284_v3  ;;  %965 = vmatprep.subr.bf16.mxu1 %v3286_v43 }
 0x3a0   :  { %925 = vmatpush1.bf16.msra.mxu0 %v3294_v39  ;;  %966 = vmatpush1.bf16.msra.mxu1 %v3296_v36 }
 0x3a1   :  { %926 = vmatprep.subr.bf16.mxu0 %v3298_v40  ;;  %967 = vmatprep.subr.bf16.mxu1 %v3300_v50 }
 0x3a4   :  { %927 = vmatpush1.bf16.msra.mxu0 %v5540_v37  ;;  %968 = vmatpush1.bf16.msra.mxu1 %v5541_v45 }
 0x3a5   :  { %928 = vmatprep.subr.bf16.mxu0 %v5542_v51  ;;  %969 = vmatprep.subr.bf16.mxu1 %v5543_v53 }
 0x3a8   :  { %929 = vmatpush1.bf16.msra.mxu0 %v5544_v57  ;;  %970 = vmatpush1.bf16.msra.mxu1 %v5545_v31 }
 0x3a9   :  { %930 = vmatprep.subr.bf16.mxu0 %v5546_v58  ;;  %971 = vmatprep.subr.bf16.mxu1 %v5547_v61 }
 0x3ac   :  { %931 = vmatpush1.bf16.msra.mxu0 %v5548_v62  ;;  %972 = vmatpush1.bf16.msra.mxu1 %v5549_v48 }
 0x3ad   :  { %932 = vmatprep.subr.bf16.mxu0 %v5550_v1  ;;  %973 = vmatprep.subr.bf16.mxu1 %v5551_v9 }
 0x3b0   :  { %933 = vmatpush1.bf16.msra.mxu0 %v5552_v10  ;;  %974 = vmatpush1.bf16.msra.mxu1 %v5553_v14 }
 0x3b1   :  { %934 = vmatprep.subr.bf16.mxu0 %v5554_v17  ;;  %975 = vmatprep.subr.bf16.mxu1 %v5555_v18 }
 0x3b4   :  { %935 = vmatpush1.bf16.msra.mxu0 %v5556_v21  ;;  %976 = vmatpush1.bf16.msra.mxu1 %v5557_v23 }
 0x3b5   :  { %936 = vmatprep.subr.bf16.mxu0 %v5558_v25  ;;  %977 = vmatprep.subr.bf16.mxu1 %v5559_v30 }
 0x3b8   :  { %937 = vmatpush1.bf16.msra.mxu0 %v5560_v38  ;;  %978 = vmatpush1.bf16.msra.mxu1 %v5561_v41 }
 0x3b9   :  { %938 = vmatprep.subr.bf16.mxu0 %v5562_v46  ;;  %979 = vmatprep.subr.bf16.mxu1 %v5563_v49 }
 0x3bc   :  { %939 = vmatpush1.bf16.msra.mxu0 %v5564_v54  ;;  %980 = vmatpush1.bf16.msra.mxu1 %v5565_v47  ;;  %v5575_v54 = vld [vmem:[#allocation105_spill] sm:$0xff]  ;;  %v5576_v47 = vld [vmem:[#allocation106_spill] sm:$0xff] }
 0x3bd   :  { %940 = vmatprep.subr.bf16.mxu0 %v5566_v22  ;;  %981 = vmatprep.subr.bf16.mxu1 %v5567_v24  ;;  %v5577_v22 = vld [vmem:[#allocation107_spill] sm:$0xff]  ;;  %v5578_v24 = vld [vmem:[#allocation108_spill] sm:$0xff] }
 0x3c0   :  { %941 = vmatpush1.bf16.msra.mxu0 %v5568_v19  ;;  %982 = vmatpush1.bf16.msra.mxu1 %v5569_v20  ;;  %v5579_v19 = vld [vmem:[#allocation109_spill] sm:$0xff] }
 0x3c1   :  { %942 = vmatprep.subr.bf16.mxu0 %v5570_v15  ;;  %983 = vmatprep.subr.bf16.mxu1 %v5571_v16  ;;  %v5580_v15 = vld [vmem:[#allocation111_spill] sm:$0xff]  ;;  %v5581_v16 = vld [vmem:[#allocation112_spill] sm:$0xff] }
 0x3c4   :  { %943 = vmatpush1.bf16.msra.mxu0 %v5572_v12  ;;  %984 = vmatpush1.bf16.msra.mxu1 %v5573_v2 }
 0x3c5   :  { %944 = vmatprep.subr.bf16.mxu0 %v5574_v63  ;;  %985 = vmatprep.subr.bf16.mxu1 %v5575_v54 }
 0x3c8   :  { %945 = vmatpush1.bf16.msra.mxu0 %v5576_v47  ;;  %986 = vmatpush1.bf16.msra.mxu1 %v5577_v22 }
 0x3c9   :  { %946 = vmatprep.subr.bf16.mxu0 %v5578_v24  ;;  %987 = vmatprep.subr.bf16.mxu1 %v5579_v19  ;;  %v3606_v19 = vld [vmem:[#allocation2 + $0x8] sm:$0xff] }
 0x3ca   :  { %5582 = vst [vmem:[#allocation51_spill] sm:$0xff] %v3606_v19 }
 0x3cc   :  { %947 = vmatpush1.bf16.msra.mxu0 %v3426_v55  ;;  %988 = vmatpush1.bf16.msra.mxu1 %v5580_v15  ;;  %v3609_v15 = vld [vmem:[#allocation2 + $0x18] sm:$0xff] }
 0x3cd   :  { %948 = vmatprep.subr.bf16.mxu0 %v5581_v16  ;;  %989 = vmatprep.subr.bf16.mxu1 %v3432_v5  ;;  %5583 = vst [vmem:[#allocation53_spill] sm:$0xff] %v3609_v15  ;;  %v5647_v5 = vld [vmem:[#allocation29_spill] sm:$0xff] }
 0x3d0   :  { %949 = vmatpush1.bf16.msra.mxu0 %v3438_v27  ;;  %990 = vmatpush1.bf16.msra.mxu1 %v3440_v28  ;;  %v3614_v28 = vld [vmem:[#allocation2] sm:$0xff] }
 0x3d1   :  { %950 = vmatprep.subr.bf16.mxu0 %v3442_v29  ;;  %991 = vmatprep.subr.bf16.mxu1 %v3444_v26  ;;  %5584 = vst [vmem:[#allocation52_spill] sm:$0xff] %v3614_v28  ;;  %v3617_v26 = vld [vmem:[#allocation2 + $0x10] sm:$0xff] }
 0x3d2   :  { %5585 = vst [vmem:[#allocation54_spill] sm:$0xff] %v3617_v26 }
 0x3d4   :  { %951 = vmatpush1.bf16.msra.mxu0 %v3450_v44  ;;  %992 = vmatpush1.bf16.msra.mxu1 %v3452_v6  ;;  %v3620_v6 = vld [vmem:[#allocation2 + $0x48] sm:$0xff]  ;;  %v5646_v44 = vld [vmem:[#allocation27_spill] sm:$0xff] }
 0x3d5   :  { %1049 = vmatprep.subr.bf16.mxu0 %v3606_v19  ;;  %1090 = vmatprep.subr.bf16.mxu1 %v3609_v15  ;;  %5586 = vst [vmem:[#allocation55_spill] sm:$0xff] %v3620_v6  ;;  %v3623_v19 = vld [vmem:[#allocation2 + $0x58] sm:$0xff]  ;;  %v3626_v15 = vld [vmem:[#allocation2 + $0x40] sm:$0xff] }
 0x3d6   :  { %5587 = vst [vmem:[#allocation57_spill] sm:$0xff] %v3623_v19  ;;  %5588 = vst [vmem:[#allocation56_spill] sm:$0xff] %v3626_v15 }
 0x3d7   :  { %953 = vmatmul.mubr.bf16.vlgmr.msra.gmra.mrb[32].mxu0 %v3540_v35  ;;  %994 = vmatmul.mubr.bf16.vlgmr.msra.gmra.mrb[32].mxu1 %v3540_v35  ;;  %v3629_v35 = vld [vmem:[#allocation2 + $0x50] sm:$0xff] }
 0x3d8   :  { %1050 = vmatpush1.bf16.msra.mxu0 %v3614_v28  ;;  %1091 = vmatpush1.bf16.msra.mxu1 %v3617_v26  ;;  %5589 = vst [vmem:[#allocation58_spill] sm:$0xff] %v3629_v35  ;;  %v3632_v28 = vld [vmem:[#allocation2 + $0x88] sm:$0xff]  ;;  %v3635_v26 = vld [vmem:[#allocation2 + $0x98] sm:$0xff] }
 0x3d9   :  { %1051 = vmatprep.subr.bf16.mxu0 %v3620_v6  ;;  %1092 = vmatprep.subr.bf16.mxu1 %v3623_v19  ;;  %5590 = vst [vmem:[#allocation59_spill] sm:$0xff] %v3632_v28  ;;  %5591 = vst [vmem:[#allocation61_spill] sm:$0xff] %v3635_v26  ;;  %v3638_v6 = vld [vmem:[#allocation2 + $0x80] sm:$0xff]  ;;  %v3641_v19 = vld [vmem:[#allocation2 + $0x90] sm:$0xff] }
 0x3da   :  { %5592 = vst [vmem:[#allocation60_spill] sm:$0xff] %v3638_v6  ;;  %5593 = vst [vmem:[#allocation62_spill] sm:$0xff] %v3641_v19 }
 0x3dc   :  { %1052 = vmatpush1.bf16.msra.mxu0 %v3626_v15  ;;  %1093 = vmatpush1.bf16.msra.mxu1 %v3629_v35  ;;  %v3644_v15 = vld [vmem:[#allocation2 + $0xc8] sm:$0xff]  ;;  %v3647_v35 = vld [vmem:[#allocation2 + $0xd8] sm:$0xff] }
 0x3dd   :  { %1053 = vmatprep.subr.bf16.mxu0 %v3632_v28  ;;  %1094 = vmatprep.subr.bf16.mxu1 %v3635_v26  ;;  %5594 = vst [vmem:[#allocation63_spill] sm:$0xff] %v3644_v15  ;;  %5595 = vst [vmem:[#allocation65_spill] sm:$0xff] %v3647_v35  ;;  %v3650_v28 = vld [vmem:[#allocation2 + $0xc0] sm:$0xff]  ;;  %v3653_v26 = vld [vmem:[#allocation2 + $0xd0] sm:$0xff] }
 0x3de   :  { %5596 = vst [vmem:[#allocation64_spill] sm:$0xff] %v3650_v28  ;;  %5597 = vst [vmem:[#allocation66_spill] sm:$0xff] %v3653_v26 }
 0x3e0   :  { %1054 = vmatpush1.bf16.msra.mxu0 %v3638_v6  ;;  %1095 = vmatpush1.bf16.msra.mxu1 %v3641_v19  ;;  %v3656_v6 = vld [vmem:[#allocation2 + $0x108] sm:$0xff]  ;;  %v3659_v19 = vld [vmem:[#allocation2 + $0x118] sm:$0xff] }
 0x3e1   :  { %1055 = vmatprep.subr.bf16.mxu0 %v3644_v15  ;;  %1096 = vmatprep.subr.bf16.mxu1 %v3647_v35  ;;  %5598 = vst [vmem:[#allocation67_spill] sm:$0xff] %v3656_v6  ;;  %5599 = vst [vmem:[#allocation69_spill] sm:$0xff] %v3659_v19  ;;  %v3662_v15 = vld [vmem:[#allocation2 + $0x100] sm:$0xff]  ;;  %v3665_v35 = vld [vmem:[#allocation2 + $0x110] sm:$0xff] }
 0x3e2   :  { %5600 = vst [vmem:[#allocation68_spill] sm:$0xff] %v3662_v15  ;;  %5601 = vst [vmem:[#allocation70_spill] sm:$0xff] %v3665_v35 }
 0x3e4   :  { %1056 = vmatpush1.bf16.msra.mxu0 %v3650_v28  ;;  %1097 = vmatpush1.bf16.msra.mxu1 %v3653_v26  ;;  %v3668_v28 = vld [vmem:[#allocation2 + $0x148] sm:$0xff]  ;;  %v3671_v26 = vld [vmem:[#allocation2 + $0x158] sm:$0xff] }
 0x3e5   :  { %1057 = vmatprep.subr.bf16.mxu0 %v3656_v6  ;;  %1098 = vmatprep.subr.bf16.mxu1 %v3659_v19  ;;  %5602 = vst [vmem:[#allocation71_spill] sm:$0xff] %v3668_v28  ;;  %5603 = vst [vmem:[#allocation72_spill] sm:$0xff] %v3671_v26  ;;  %v3674_v6 = vld [vmem:[#allocation2 + $0x140] sm:$0xff]  ;;  %v3677_v19 = vld [vmem:[#allocation2 + $0x150] sm:$0xff] }
 0x3e6   :  { %5604 = vst [vmem:[#allocation73_spill] sm:$0xff] %v3674_v6  ;;  %5605 = vst [vmem:[#allocation74_spill] sm:$0xff] %v3677_v19 }
 0x3e8   :  { %1058 = vmatpush1.bf16.msra.mxu0 %v3662_v15  ;;  %1099 = vmatpush1.bf16.msra.mxu1 %v3665_v35  ;;  %v3680_v15 = vld [vmem:[#allocation2 + $0x188] sm:$0xff]  ;;  %v3683_v35 = vld [vmem:[#allocation2 + $0x198] sm:$0xff] }
 0x3e9   :  { %1059 = vmatprep.subr.bf16.mxu0 %v3668_v28  ;;  %1100 = vmatprep.subr.bf16.mxu1 %v3671_v26  ;;  %5606 = vst [vmem:[#allocation23_spill] sm:$0xff] %v3680_v15  ;;  %5607 = vst [vmem:[#allocation25_spill] sm:$0xff] %v3683_v35  ;;  %v3686_v28 = vld [vmem:[#allocation2 + $0x180] sm:$0xff]  ;;  %v3689_v26 = vld [vmem:[#allocation2 + $0x190] sm:$0xff] }
 0x3ea   :  { %5608 = vst [vmem:[#allocation24_spill] sm:$0xff] %v3686_v28  ;;  %5609 = vst [vmem:[#allocation26_spill] sm:$0xff] %v3689_v26 }
 0x3ec   :  { %1060 = vmatpush1.bf16.msra.mxu0 %v3674_v6  ;;  %1101 = vmatpush1.bf16.msra.mxu1 %v3677_v19  ;;  %v3692_v6 = vld [vmem:[#allocation2 + $0x1c8] sm:$0xff]  ;;  %v3695_v19 = vld [vmem:[#allocation2 + $0x1d8] sm:$0xff] }
 0x3ed   :  { %1061 = vmatprep.subr.bf16.mxu0 %v3680_v15  ;;  %1102 = vmatprep.subr.bf16.mxu1 %v3683_v35  ;;  %5610 = vst [vmem:[#allocation14_spill] sm:$0xff] %v3692_v6  ;;  %5611 = vst [vmem:[#allocation19_spill] sm:$0xff] %v3695_v19  ;;  %v3698_v15 = vld [vmem:[#allocation2 + $0x1c0] sm:$0xff]  ;;  %v3701_v35 = vld [vmem:[#allocation2 + $0x1d0] sm:$0xff] }
 0x3ee   :  { %5612 = vst [vmem:[#allocation21_spill] sm:$0xff] %v3698_v15  ;;  %5613 = vst [vmem:[#allocation20_spill] sm:$0xff] %v3701_v35 }
 0x3f0   :  { %1062 = vmatpush1.bf16.msra.mxu0 %v3686_v28  ;;  %1103 = vmatpush1.bf16.msra.mxu1 %v3689_v26  ;;  %v3704_v28 = vld [vmem:[#allocation2 + $0x208] sm:$0xff]  ;;  %v3707_v26 = vld [vmem:[#allocation2 + $0x218] sm:$0xff] }
 0x3f1   :  { %1063 = vmatprep.subr.bf16.mxu0 %v3692_v6  ;;  %1104 = vmatprep.subr.bf16.mxu1 %v3695_v19  ;;  %5614 = vst [vmem:[#allocation22_spill] sm:$0xff] %v3704_v28  ;;  %5615 = vst [vmem:[#allocation13_spill] sm:$0xff] %v3707_v26  ;;  %v3710_v6 = vld [vmem:[#allocation2 + $0x200] sm:$0xff]  ;;  %v3713_v19 = vld [vmem:[#allocation2 + $0x210] sm:$0xff] }
 0x3f2   :  { %5616 = vst [vmem:[#allocation75_spill] sm:$0xff] %v3710_v6  ;;  %5617 = vst [vmem:[#allocation76_spill] sm:$0xff] %v3713_v19 }
 0x3f4   :  { %1064 = vmatpush1.bf16.msra.mxu0 %v3698_v15  ;;  %1105 = vmatpush1.bf16.msra.mxu1 %v3701_v35  ;;  %v3716_v15 = vld [vmem:[#allocation2 + $0x248] sm:$0xff]  ;;  %v3719_v35 = vld [vmem:[#allocation2 + $0x258] sm:$0xff] }
 0x3f5   :  { %1065 = vmatprep.subr.bf16.mxu0 %v3704_v28  ;;  %1106 = vmatprep.subr.bf16.mxu1 %v3707_v26  ;;  %5618 = vst [vmem:[#allocation77_spill] sm:$0xff] %v3716_v15  ;;  %5619 = vst [vmem:[#allocation78_spill] sm:$0xff] %v3719_v35  ;;  %v3722_v28 = vld [vmem:[#allocation2 + $0x240] sm:$0xff]  ;;  %v3725_v26 = vld [vmem:[#allocation2 + $0x250] sm:$0xff] }
 0x3f6   :  { %5620 = vst [vmem:[#allocation79_spill] sm:$0xff] %v3722_v28  ;;  %5621 = vst [vmem:[#allocation80_spill] sm:$0xff] %v3725_v26 }
 0x3f8   :  { %1066 = vmatpush1.bf16.msra.mxu0 %v3710_v6  ;;  %1107 = vmatpush1.bf16.msra.mxu1 %v3713_v19  ;;  %v3728_v6 = vld [vmem:[#allocation2 + $0x288] sm:$0xff]  ;;  %v3731_v19 = vld [vmem:[#allocation2 + $0x298] sm:$0xff] }
 0x3f9   :  { %1067 = vmatprep.subr.bf16.mxu0 %v3716_v15  ;;  %1108 = vmatprep.subr.bf16.mxu1 %v3719_v35  ;;  %5622 = vst [vmem:[#allocation81_spill] sm:$0xff] %v3728_v6  ;;  %5623 = vst [vmem:[#allocation82_spill] sm:$0xff] %v3731_v19  ;;  %v3734_v15 = vld [vmem:[#allocation2 + $0x280] sm:$0xff]  ;;  %v3737_v35 = vld [vmem:[#allocation2 + $0x290] sm:$0xff] }
 0x3fa   :  { %5624 = vst [vmem:[#allocation83_spill] sm:$0xff] %v3734_v15  ;;  %5625 = vst [vmem:[#allocation84_spill] sm:$0xff] %v3737_v35 }
 0x3fc   :  { %1068 = vmatpush1.bf16.msra.mxu0 %v3722_v28  ;;  %1109 = vmatpush1.bf16.msra.mxu1 %v3725_v26  ;;  %v3740_v28 = vld [vmem:[#allocation2 + $0x2c8] sm:$0xff]  ;;  %v3743_v26 = vld [vmem:[#allocation2 + $0x2d8] sm:$0xff] }
 0x3fd   :  { %1069 = vmatprep.subr.bf16.mxu0 %v3728_v6  ;;  %1110 = vmatprep.subr.bf16.mxu1 %v3731_v19  ;;  %5626 = vst [vmem:[#allocation85_spill] sm:$0xff] %v3740_v28  ;;  %5627 = vst [vmem:[#allocation86_spill] sm:$0xff] %v3743_v26  ;;  %v3746_v6 = vld [vmem:[#allocation2 + $0x2c0] sm:$0xff]  ;;  %v3749_v19 = vld [vmem:[#allocation2 + $0x2d0] sm:$0xff] }
 0x3fe   :  { %5628 = vst [vmem:[#allocation87_spill] sm:$0xff] %v3746_v6  ;;  %5629 = vst [vmem:[#allocation88_spill] sm:$0xff] %v3749_v19 }
 0x400   :  { %1070 = vmatpush1.bf16.msra.mxu0 %v3734_v15  ;;  %1111 = vmatpush1.bf16.msra.mxu1 %v3737_v35  ;;  %v3752_v15 = vld [vmem:[#allocation2 + $0x308] sm:$0xff]  ;;  %v3755_v35 = vld [vmem:[#allocation2 + $0x318] sm:$0xff] }
 0x401   :  { %1071 = vmatprep.subr.bf16.mxu0 %v3740_v28  ;;  %1112 = vmatprep.subr.bf16.mxu1 %v3743_v26  ;;  %5630 = vst [vmem:[#allocation89_spill] sm:$0xff] %v3752_v15  ;;  %5631 = vst [vmem:[#allocation90_spill] sm:$0xff] %v3755_v35  ;;  %v3758_v28 = vld [vmem:[#allocation2 + $0x300] sm:$0xff]  ;;  %v3761_v26 = vld [vmem:[#allocation2 + $0x310] sm:$0xff] }
 0x402   :  { %5632 = vst [vmem:[#allocation91_spill] sm:$0xff] %v3758_v28  ;;  %5633 = vst [vmem:[#allocation92_spill] sm:$0xff] %v3761_v26 }
 0x404   :  { %1072 = vmatpush1.bf16.msra.mxu0 %v3746_v6  ;;  %1113 = vmatpush1.bf16.msra.mxu1 %v3749_v19  ;;  %v3764_v6 = vld [vmem:[#allocation2 + $0x348] sm:$0xff]  ;;  %v3767_v19 = vld [vmem:[#allocation2 + $0x358] sm:$0xff] }
 0x405   :  { %1073 = vmatprep.subr.bf16.mxu0 %v3752_v15  ;;  %1114 = vmatprep.subr.bf16.mxu1 %v3755_v35  ;;  %5634 = vst [vmem:[#allocation93_spill] sm:$0xff] %v3764_v6  ;;  %5635 = vst [vmem:[#allocation120_spill] sm:$0xff] %v3767_v19  ;;  %v3770_v15 = vld [vmem:[#allocation2 + $0x340] sm:$0xff]  ;;  %v3773_v35 = vld [vmem:[#allocation2 + $0x350] sm:$0xff] }
 0x406   :  { %5636 = vst [vmem:[#allocation121_spill] sm:$0xff] %v3770_v15  ;;  %5637 = vst [vmem:[#allocation122_spill] sm:$0xff] %v3773_v35 }
 0x408   :  { %1074 = vmatpush1.bf16.msra.mxu0 %v3758_v28  ;;  %1115 = vmatpush1.bf16.msra.mxu1 %v3761_v26  ;;  %v3776_v28 = vld [vmem:[#allocation2 + $0x388] sm:$0xff]  ;;  %v3779_v26 = vld [vmem:[#allocation2 + $0x398] sm:$0xff] }
 0x409   :  { %1075 = vmatprep.subr.bf16.mxu0 %v3764_v6  ;;  %1116 = vmatprep.subr.bf16.mxu1 %v3767_v19  ;;  %5638 = vst [vmem:[#allocation123_spill] sm:$0xff] %v3776_v28  ;;  %5639 = vst [vmem:[#allocation124_spill] sm:$0xff] %v3779_v26  ;;  %v3782_v6 = vld [vmem:[#allocation2 + $0x380] sm:$0xff]  ;;  %v3785_v19 = vld [vmem:[#allocation2 + $0x390] sm:$0xff] }
 0x40a   :  { %5640 = vst [vmem:[#allocation125_spill] sm:$0xff] %v3782_v6  ;;  %5641 = vst [vmem:[#allocation126_spill] sm:$0xff] %v3785_v19 }
 0x40c   :  { %1076 = vmatpush1.bf16.msra.mxu0 %v3770_v15  ;;  %1117 = vmatpush1.bf16.msra.mxu1 %v3773_v35  ;;  %v3788_v15 = vld [vmem:[#allocation2 + $0x3c8] sm:$0xff]  ;;  %v3791_v35 = vld [vmem:[#allocation2 + $0x3d8] sm:$0xff] }
 0x40d   :  { %1077 = vmatprep.subr.bf16.mxu0 %v3776_v28  ;;  %1118 = vmatprep.subr.bf16.mxu1 %v3779_v26  ;;  %5642 = vst [vmem:[#allocation127_spill] sm:$0xff] %v3788_v15  ;;  %5643 = vst [vmem:[#allocation128_spill] sm:$0xff] %v3791_v35  ;;  %v3794_v28 = vld [vmem:[#allocation2 + $0x3c0] sm:$0xff]  ;;  %v3797_v26 = vld [vmem:[#allocation2 + $0x3d0] sm:$0xff] }
 0x40e   :  { %5644 = vst [vmem:[#allocation129_spill] sm:$0xff] %v3794_v28  ;;  %5645 = vst [vmem:[#allocation130_spill] sm:$0xff] %v3797_v26 }
 0x410   :  { %1078 = vmatpush1.bf16.msra.mxu0 %v3782_v6  ;;  %1119 = vmatpush1.bf16.msra.mxu1 %v3785_v19 }
 0x411   :  { %1079 = vmatprep.subr.bf16.mxu0 %v3788_v15  ;;  %1120 = vmatprep.subr.bf16.mxu1 %v3791_v35 }
 0x414   :  { %1080 = vmatpush1.bf16.msra.mxu0 %v3794_v28  ;;  %1121 = vmatpush1.bf16.msra.mxu1 %v3797_v26  ;;  %v5648_v26 = vld [vmem:[#allocation28_spill] sm:$0xff] }
 0x415   :  { %1131 = vmatprep.subr.bf16.mxu0 %v5529_v33  ;;  %1172 = vmatprep.subr.bf16.mxu1 %v5530_v34 }
 0x46a   :  { %v872_v19 = vpop.f32.mrb[28].mxu0  ;;  %v913_v6 = vpop.f32.mrb[28].mxu1 }
 0x46b   :  { %v1006_v15 = vadd.f32 %v872_v19, %v5646_v44  ;;  %v874_v29 = vpop.f32.mrb[29].mxu0  ;;  %v915_v27 = vpop.f32.mrb[29].mxu1  ;;  %v1008_v54 = vadd.f32 %v913_v6, %v5648_v26 }
 0x46c   :  { %v1007_v35 = vadd.f32 %v874_v29, %v5647_v5  ;;  %v876_v16 = vpop.f32.mrb[30].mxu0  ;;  %v917_v55 = vpop.f32.mrb[30].mxu1 }
 0x46d   :  { %v1030_v24 = vmul.f32 0.5, %v1006_v15  ;;  %v877_v28 = vpop.f32.mrb[31].mxu0  ;;  %v918_v22 = vpop.f32.mrb[31].mxu1 }
 0x46e   :  { %v1034_v47 = vmul.f32 0.5, %v1007_v35 }
 0x46f   :  { %2321 = vtanh.f32 %v1030_v24 }
 0x470   :  { %2323 = vtanh.f32 %v1034_v47 }
 0x471   :  { %2325 = vtanh.f32 %v1008_v54 }
 0x479   :  { %v2322_v33 = vpop.eup %2321 }
 0x47a   :  { %v2324_v34 = vpop.eup %2323  ;;  %v1032_v63 = vmul.f32 0.5, %v2322_v33 }
 0x47b   :  { %v1036_v2 = vmul.f32 0.5, %v2324_v34  ;;  %v2326_v19 = vpop.eup %2325 }
 0x47c   :  { %v1033_v44 = vadd.f32 0.5, %v1032_v63 }
 0x47d   :  { %v1037_v12 = vadd.f32 0.5, %v1036_v2 }
 0x47e   :  { %v1044_v20 = vmul.f32 %v2326_v19, %v1033_v44 }
 0x47f   :  { %v1043_v5 = vmul.f32 %v1037_v12, %v3528_v11  ;;  %v5649_v11 = vld [vmem:[#allocation30_spill] sm:$0xff] }
 0x481   :  { %v3806_v55 = vadd.f32 %v1044_v20, %v1043_v5  ;;  %v1009_v20 = vadd.f32 %v915_v27, %v5649_v11 }
 0x483   :  { %v1039_v33 = vmul.f32 0.5, %v1009_v20 }
 0x4aa   :  { %v954_v28 = vpop.f32.mrb[32].mxu0  ;;  %v995_v29 = vpop.f32.mrb[32].mxu1 }
 0x4ab   :  { %v1002_v22 = vadd.f32 %v954_v28, %v5534_v8  ;;  %v956_v24 = vpop.f32.mrb[33].mxu0  ;;  %v997_v6 = vpop.f32.mrb[33].mxu1  ;;  %v1004_v2 = vadd.f32 %v995_v29, %v5536_v32 }
 0x4ac   :  { %v1003_v26 = vadd.f32 %v956_v24, %v5535_v42  ;;  %v958_v54 = vpop.f32.mrb[34].mxu0  ;;  %v999_v47 = vpop.f32.mrb[34].mxu1  ;;  %v1005_v12 = vadd.f32 %v997_v6, %v5538_v7 }
 0x4ad   :  { %v1010_v15 = vmul.f32 0.5, %v1002_v22  ;;  %v959_v16 = vpop.f32.mrb[35].mxu0  ;;  %v1000_v63 = vpop.f32.mrb[35].mxu1 }
 0x4ae   :  { %v1014_v35 = vmul.f32 0.5, %v1003_v26  ;;  %v1019_v34 = vmul.f32 0.5, %v1005_v12 }
 0x4af   :  { %2327 = vtanh.f32 %v1010_v15 }
 0x4b0   :  { %2329 = vtanh.f32 %v1014_v35 }
 0x4b1   :  { %2331 = vtanh.f32 %v1004_v2 }
 0x4b2   :  { %2333 = vtanh.f32 %v1039_v33 }
 0x4b3   :  { %2335 = vtanh.f32 %v1019_v34 }
 0x4b4   :  { %2337 = vtanh.f32 %v3806_v55 }
 0x4b9   :  { %v2328_v44 = vpop.eup %2327 }
 0x4ba   :  { %v2330_v19 = vpop.eup %2329  ;;  %v1012_v5 = vmul.f32 0.5, %v2328_v44  ;;  %v5687_v44 = vld [vmem:[#allocation62_spill] sm:$0xff] }
 0x4bb   :  { %v1016_v28 = vmul.f32 0.5, %v2330_v19  ;;  %v2332_v24 = vpop.eup %2331  ;;  %v5688_v19 = vld [vmem:[#allocation63_spill] sm:$0xff] }
 0x4bc   :  { %v1013_v22 = vadd.f32 0.5, %v1012_v5  ;;  %v2334_v6 = vpop.eup %2333  ;;  %v5689_v5 = vld [vmem:[#allocation65_spill] sm:$0xff] }
 0x4bd   :  { %v1017_v26 = vadd.f32 0.5, %v1016_v28  ;;  %v2336_v47 = vpop.eup %2335  ;;  %v1041_v15 = vmul.f32 0.5, %v2334_v6  ;;  %v5690_v28 = vld [vmem:[#allocation64_spill] sm:$0xff]  ;;  %v5696_v6 = vld [vmem:[#allocation71_spill] sm:$0xff] }
 0x4be   :  { %v1024_v54 = vmul.f32 %v2332_v24, %v1013_v22  ;;  %v1021_v16 = vmul.f32 0.5, %v2336_v47  ;;  %v2338_v63 = vpop.eup %2337  ;;  %v5691_v22 = vld [vmem:[#allocation66_spill] sm:$0xff]  ;;  %v5692_v24 = vld [vmem:[#allocation67_spill] sm:$0xff]  ;;  %v5697_v47 = vld [vmem:[#allocation72_spill] sm:$0xff] }
 0x4bf   :  { %v1023_v29 = vmul.f32 %v1017_v26, %v3537_v13  ;;  %v1042_v35 = vadd.f32 0.5, %v1041_v15  ;;  %v5662_v13 = vld [vmem:[#allocation106_spill] sm:$0xff]  ;;  %v5693_v26 = vld [vmem:[#allocation69_spill] sm:$0xff] }
 0x4c0   :  { %v1022_v2 = vadd.f32 0.5, %v1021_v16  ;;  %v5698_v15 = vld [vmem:[#allocation73_spill] sm:$0xff]  ;;  %v5699_v16 = vld [vmem:[#allocation74_spill] sm:$0xff] }
 0x4c1   :  { %v3815_v27 = vadd.f32 %v1024_v54, %v1023_v29  ;;  %v1047_v20 = vmul.f32 %v2338_v63, %v1042_v35  ;;  %v5694_v54 = vld [vmem:[#allocation68_spill] sm:$0xff]  ;;  %v5695_v29 = vld [vmem:[#allocation70_spill] sm:$0xff]  ;;  %v5700_v63 = vld [vmem:[#allocation23_spill] sm:$0xff] }
 0x4c2   :  { %v5701_v35 = vld [vmem:[#allocation25_spill] sm:$0xff] }
 0x4c3   :  { %2339 = vtanh.f32 %v3815_v27  ;;  %v3818_v34 = vpack.c.bf16 %v1047_v20, %v1047_v20  ;;  %v5704_v20 = vld [vmem:[#allocation14_spill] sm:$0xff] }
 0x4cd   :  { %v2340_v11 = vpop.eup %2339 }
 0x4ce   :  { %v1027_v12 = vmul.f32 %v2340_v11, %v1022_v2  ;;  %v5702_v2 = vld [vmem:[#allocation24_spill] sm:$0xff]  ;;  %v5703_v11 = vld [vmem:[#allocation26_spill] sm:$0xff] }
 0x4d0   :  { %v1028_v33 = vpack.c.bf16 %v1027_v12, %v1027_v12  ;;  %v5705_v12 = vld [vmem:[#allocation19_spill] sm:$0xff] }
 0x4d2   :  { %1029 = vst [vmem:[#allocation7 + $0x4] sm:$0xf] %v1028_v33  ;;  %1081 = vmatprep.mubr.bf16.mxu0 %v1028_v33  ;;  %1122 = vmatprep.mubr.bf16.mxu1 %v1028_v33 }
 0x4d3   :  { %1082 = vmatmul.mubr.bf16.vlgmr.msra.gmra.mrb[36].mxu0 %v3818_v34  ;;  %1123 = vmatmul.mubr.bf16.vlgmr.msra.gmra.mrb[36].mxu1 %v3818_v34 }
 0x4d4   :  { %1132 = vmatpush1.bf16.msra.mxu0 %v3266_v52  ;;  %1173 = vmatpush1.bf16.msra.mxu1 %v3268_v56  ;;  %v5650_v52 = vld [vmem:[#allocation94_spill] sm:$0xff]  ;;  %v5651_v56 = vld [vmem:[#allocation95_spill] sm:$0xff] }
 0x4d5   :  { %1163 = vmatprep.mubr.bf16.mxu0 %v1028_v33  ;;  %1204 = vmatprep.mubr.bf16.mxu1 %v1028_v33  ;;  %v5706_v33 = vld [vmem:[#allocation21_spill] sm:$0xff] }
 0x4d6   :  { %1133 = vmatprep.subr.bf16.mxu0 %v3270_v59  ;;  %1174 = vmatprep.subr.bf16.mxu1 %v3272_v60  ;;  %v5652_v59 = vld [vmem:[#allocation96_spill] sm:$0xff]  ;;  %v5653_v60 = vld [vmem:[#allocation97_spill] sm:$0xff] }
 0x4d8   :  { %1134 = vmatpush1.bf16.msra.mxu0 %v3280_v0  ;;  %1175 = vmatpush1.bf16.msra.mxu1 %v3282_v4  ;;  %v5654_v0 = vld [vmem:[#allocation98_spill] sm:$0xff]  ;;  %v5655_v4 = vld [vmem:[#allocation99_spill] sm:$0xff] }
 0x4d9   :  { %1135 = vmatprep.subr.bf16.mxu0 %v3284_v3  ;;  %1176 = vmatprep.subr.bf16.mxu1 %v3286_v43  ;;  %v5656_v3 = vld [vmem:[#allocation100_spill] sm:$0xff]  ;;  %v5657_v43 = vld [vmem:[#allocation101_spill] sm:$0xff] }
 0x4dc   :  { %1136 = vmatpush1.bf16.msra.mxu0 %v3294_v39  ;;  %1177 = vmatpush1.bf16.msra.mxu1 %v3296_v36  ;;  %v5658_v39 = vld [vmem:[#allocation102_spill] sm:$0xff]  ;;  %v5659_v36 = vld [vmem:[#allocation103_spill] sm:$0xff] }
 0x4dd   :  { %1137 = vmatprep.subr.bf16.mxu0 %v3298_v40  ;;  %1178 = vmatprep.subr.bf16.mxu1 %v3300_v50  ;;  %v5660_v40 = vld [vmem:[#allocation104_spill] sm:$0xff]  ;;  %v5661_v50 = vld [vmem:[#allocation105_spill] sm:$0xff] }
 0x4e0   :  { %1138 = vmatpush1.bf16.msra.mxu0 %v5540_v37  ;;  %1179 = vmatpush1.bf16.msra.mxu1 %v5541_v45  ;;  %v5663_v37 = vld [vmem:[#allocation107_spill] sm:$0xff]  ;;  %v5664_v45 = vld [vmem:[#allocation108_spill] sm:$0xff] }
 0x4e1   :  { %1139 = vmatprep.subr.bf16.mxu0 %v5542_v51  ;;  %1180 = vmatprep.subr.bf16.mxu1 %v5543_v53  ;;  %v5665_v51 = vld [vmem:[#allocation109_spill] sm:$0xff]  ;;  %v5666_v53 = vld [vmem:[#allocation110_spill] sm:$0xff] }
 0x4e4   :  { %1140 = vmatpush1.bf16.msra.mxu0 %v5544_v57  ;;  %1181 = vmatpush1.bf16.msra.mxu1 %v5545_v31  ;;  %v5667_v57 = vld [vmem:[#allocation111_spill] sm:$0xff]  ;;  %v5668_v31 = vld [vmem:[#allocation112_spill] sm:$0xff] }
 0x4e5   :  { %1141 = vmatprep.subr.bf16.mxu0 %v5546_v58  ;;  %1182 = vmatprep.subr.bf16.mxu1 %v5547_v61  ;;  %v5669_v58 = vld [vmem:[#allocation113_spill] sm:$0xff]  ;;  %v5670_v61 = vld [vmem:[#allocation114_spill] sm:$0xff] }
 0x4e8   :  { %1142 = vmatpush1.bf16.msra.mxu0 %v5548_v62  ;;  %1183 = vmatpush1.bf16.msra.mxu1 %v5549_v48  ;;  %v5671_v62 = vld [vmem:[#allocation115_spill] sm:$0xff]  ;;  %v5672_v48 = vld [vmem:[#allocation116_spill] sm:$0xff] }
 0x4e9   :  { %1143 = vmatprep.subr.bf16.mxu0 %v5550_v1  ;;  %1184 = vmatprep.subr.bf16.mxu1 %v5551_v9  ;;  %v5673_v1 = vld [vmem:[#allocation117_spill] sm:$0xff]  ;;  %v5674_v9 = vld [vmem:[#allocation118_spill] sm:$0xff] }
 0x4ec   :  { %1144 = vmatpush1.bf16.msra.mxu0 %v5552_v10  ;;  %1185 = vmatpush1.bf16.msra.mxu1 %v5553_v14  ;;  %v5675_v10 = vld [vmem:[#allocation119_spill] sm:$0xff] }
 0x4ed   :  { %1145 = vmatprep.subr.bf16.mxu0 %v5554_v17  ;;  %1186 = vmatprep.subr.bf16.mxu1 %v5555_v18  ;;  %v5676_v14 = vld [vmem:[#allocation51_spill] sm:$0xff]  ;;  %v5677_v17 = vld [vmem:[#allocation53_spill] sm:$0xff]  ;;  %v5678_v18 = vld [vmem:[#allocation52_spill] sm:$0xff] }
 0x4f0   :  { %1146 = vmatpush1.bf16.msra.mxu0 %v5556_v21  ;;  %1187 = vmatpush1.bf16.msra.mxu1 %v5557_v23  ;;  %v5679_v21 = vld [vmem:[#allocation54_spill] sm:$0xff]  ;;  %v5680_v23 = vld [vmem:[#allocation55_spill] sm:$0xff] }
 0x4f1   :  { %1147 = vmatprep.subr.bf16.mxu0 %v5558_v25  ;;  %1188 = vmatprep.subr.bf16.mxu1 %v5559_v30  ;;  %v5681_v25 = vld [vmem:[#allocation57_spill] sm:$0xff]  ;;  %v5682_v30 = vld [vmem:[#allocation56_spill] sm:$0xff] }
 0x4f4   :  { %1148 = vmatpush1.bf16.msra.mxu0 %v5560_v38  ;;  %1189 = vmatpush1.bf16.msra.mxu1 %v5561_v41  ;;  %v5683_v38 = vld [vmem:[#allocation58_spill] sm:$0xff]  ;;  %v5684_v41 = vld [vmem:[#allocation59_spill] sm:$0xff] }
 0x4f5   :  { %1149 = vmatprep.subr.bf16.mxu0 %v5562_v46  ;;  %1190 = vmatprep.subr.bf16.mxu1 %v5563_v49  ;;  %v5685_v46 = vld [vmem:[#allocation61_spill] sm:$0xff]  ;;  %v5686_v49 = vld [vmem:[#allocation60_spill] sm:$0xff] }
 0x4f8   :  { %1150 = vmatpush1.bf16.msra.mxu0 %v5650_v52  ;;  %1191 = vmatpush1.bf16.msra.mxu1 %v5651_v56  ;;  %v5708_v52 = vld [vmem:[#allocation22_spill] sm:$0xff]  ;;  %v5709_v56 = vld [vmem:[#allocation13_spill] sm:$0xff] }
 0x4f9   :  { %1151 = vmatprep.subr.bf16.mxu0 %v5652_v59  ;;  %1192 = vmatprep.subr.bf16.mxu1 %v5653_v60  ;;  %v5710_v59 = vld [vmem:[#allocation75_spill] sm:$0xff]  ;;  %v5711_v60 = vld [vmem:[#allocation76_spill] sm:$0xff] }
 0x4fc   :  { %1152 = vmatpush1.bf16.msra.mxu0 %v5654_v0  ;;  %1193 = vmatpush1.bf16.msra.mxu1 %v5655_v4  ;;  %v5712_v0 = vld [vmem:[#allocation77_spill] sm:$0xff]  ;;  %v5713_v4 = vld [vmem:[#allocation78_spill] sm:$0xff] }
 0x4fd   :  { %1153 = vmatprep.subr.bf16.mxu0 %v5656_v3  ;;  %1194 = vmatprep.subr.bf16.mxu1 %v5657_v43  ;;  %v5714_v3 = vld [vmem:[#allocation79_spill] sm:$0xff]  ;;  %v5715_v43 = vld [vmem:[#allocation80_spill] sm:$0xff] }
 0x500   :  { %1154 = vmatpush1.bf16.msra.mxu0 %v5658_v39  ;;  %1195 = vmatpush1.bf16.msra.mxu1 %v5659_v36  ;;  %v5716_v39 = vld [vmem:[#allocation81_spill] sm:$0xff]  ;;  %v5717_v36 = vld [vmem:[#allocation82_spill] sm:$0xff] }
 0x501   :  { %1155 = vmatprep.subr.bf16.mxu0 %v5660_v40  ;;  %1196 = vmatprep.subr.bf16.mxu1 %v5661_v50  ;;  %v5718_v40 = vld [vmem:[#allocation83_spill] sm:$0xff]  ;;  %v5719_v50 = vld [vmem:[#allocation84_spill] sm:$0xff] }
 0x504   :  { %1156 = vmatpush1.bf16.msra.mxu0 %v5662_v13  ;;  %1197 = vmatpush1.bf16.msra.mxu1 %v5663_v37  ;;  %v5720_v13 = vld [vmem:[#allocation85_spill] sm:$0xff]  ;;  %v5721_v37 = vld [vmem:[#allocation86_spill] sm:$0xff] }
 0x505   :  { %1157 = vmatprep.subr.bf16.mxu0 %v5664_v45  ;;  %1198 = vmatprep.subr.bf16.mxu1 %v5665_v51  ;;  %v5722_v45 = vld [vmem:[#allocation87_spill] sm:$0xff]  ;;  %v5723_v51 = vld [vmem:[#allocation88_spill] sm:$0xff] }
 0x508   :  { %1158 = vmatpush1.bf16.msra.mxu0 %v5666_v53  ;;  %1199 = vmatpush1.bf16.msra.mxu1 %v5667_v57  ;;  %v5724_v53 = vld [vmem:[#allocation89_spill] sm:$0xff]  ;;  %v5725_v57 = vld [vmem:[#allocation90_spill] sm:$0xff] }
 0x509   :  { %1159 = vmatprep.subr.bf16.mxu0 %v5668_v31  ;;  %1200 = vmatprep.subr.bf16.mxu1 %v5669_v58  ;;  %v5726_v31 = vld [vmem:[#allocation91_spill] sm:$0xff]  ;;  %v5727_v58 = vld [vmem:[#allocation92_spill] sm:$0xff] }
 0x50c   :  { %1160 = vmatpush1.bf16.msra.mxu0 %v5670_v61  ;;  %1201 = vmatpush1.bf16.msra.mxu1 %v5671_v62  ;;  %v5728_v61 = vld [vmem:[#allocation93_spill] sm:$0xff]  ;;  %v5729_v62 = vld [vmem:[#allocation120_spill] sm:$0xff] }
 0x50d   :  { %1161 = vmatprep.subr.bf16.mxu0 %v5672_v48  ;;  %1202 = vmatprep.subr.bf16.mxu1 %v5673_v1  ;;  %v5730_v48 = vld [vmem:[#allocation121_spill] sm:$0xff]  ;;  %v5731_v1 = vld [vmem:[#allocation122_spill] sm:$0xff] }
 0x510   :  { %1162 = vmatpush1.bf16.msra.mxu0 %v5674_v9  ;;  %1203 = vmatpush1.bf16.msra.mxu1 %v5675_v10  ;;  %v5732_v9 = vld [vmem:[#allocation123_spill] sm:$0xff]  ;;  %v5733_v10 = vld [vmem:[#allocation124_spill] sm:$0xff] }
 0x511   :  { %1260 = vmatprep.subr.bf16.mxu0 %v5676_v14  ;;  %1301 = vmatprep.subr.bf16.mxu1 %v5677_v17 }
 0x513   :  { %1164 = vmatmul.mubr.bf16.vlgmr.msra.gmra.mrb[40].mxu0 %v3818_v34  ;;  %1205 = vmatmul.mubr.bf16.vlgmr.msra.gmra.mrb[40].mxu1 %v3818_v34  ;;  %v5707_v34 = vld [vmem:[#allocation20_spill] sm:$0xff] }
 0x514   :  { %1261 = vmatpush1.bf16.msra.mxu0 %v5678_v18  ;;  %1302 = vmatpush1.bf16.msra.mxu1 %v5679_v21 }
 0x515   :  { %1262 = vmatprep.subr.bf16.mxu0 %v5680_v23  ;;  %1303 = vmatprep.subr.bf16.mxu1 %v5681_v25 }
 0x518   :  { %1263 = vmatpush1.bf16.msra.mxu0 %v5682_v30  ;;  %1304 = vmatpush1.bf16.msra.mxu1 %v5683_v38 }
 0x519   :  { %1264 = vmatprep.subr.bf16.mxu0 %v5684_v41  ;;  %1305 = vmatprep.subr.bf16.mxu1 %v5685_v46 }
 0x51c   :  { %1265 = vmatpush1.bf16.msra.mxu0 %v5686_v49  ;;  %1306 = vmatpush1.bf16.msra.mxu1 %v5687_v44 }
 0x51d   :  { %1266 = vmatprep.subr.bf16.mxu0 %v5688_v19  ;;  %1307 = vmatprep.subr.bf16.mxu1 %v5689_v5 }
 0x520   :  { %1267 = vmatpush1.bf16.msra.mxu0 %v5690_v28  ;;  %1308 = vmatpush1.bf16.msra.mxu1 %v5691_v22 }
 0x521   :  { %1268 = vmatprep.subr.bf16.mxu0 %v5692_v24  ;;  %1309 = vmatprep.subr.bf16.mxu1 %v5693_v26 }
 0x524   :  { %1269 = vmatpush1.bf16.msra.mxu0 %v5694_v54  ;;  %1310 = vmatpush1.bf16.msra.mxu1 %v5695_v29 }
 0x525   :  { %1270 = vmatprep.subr.bf16.mxu0 %v5696_v6  ;;  %1311 = vmatprep.subr.bf16.mxu1 %v5697_v47 }
 0x528   :  { %1271 = vmatpush1.bf16.msra.mxu0 %v5698_v15  ;;  %1312 = vmatpush1.bf16.msra.mxu1 %v5699_v16 }
 0x529   :  { %1272 = vmatprep.subr.bf16.mxu0 %v5700_v63  ;;  %1313 = vmatprep.subr.bf16.mxu1 %v5701_v35 }
 0x52c   :  { %1273 = vmatpush1.bf16.msra.mxu0 %v5702_v2  ;;  %1314 = vmatpush1.bf16.msra.mxu1 %v5703_v11 }
 0x52d   :  { %1274 = vmatprep.subr.bf16.mxu0 %v5704_v20  ;;  %1315 = vmatprep.subr.bf16.mxu1 %v5705_v12 }
 0x530   :  { %1275 = vmatpush1.bf16.msra.mxu0 %v5706_v33  ;;  %1316 = vmatpush1.bf16.msra.mxu1 %v5707_v34 }
 0x531   :  { %1276 = vmatprep.subr.bf16.mxu0 %v5708_v52  ;;  %1317 = vmatprep.subr.bf16.mxu1 %v5709_v56 }
 0x534   :  { %1277 = vmatpush1.bf16.msra.mxu0 %v5710_v59  ;;  %1318 = vmatpush1.bf16.msra.mxu1 %v5711_v60 }
 0x535   :  { %1278 = vmatprep.subr.bf16.mxu0 %v5712_v0  ;;  %1319 = vmatprep.subr.bf16.mxu1 %v5713_v4 }
 0x538   :  { %1279 = vmatpush1.bf16.msra.mxu0 %v5714_v3  ;;  %1320 = vmatpush1.bf16.msra.mxu1 %v5715_v43 }
 0x539   :  { %1280 = vmatprep.subr.bf16.mxu0 %v5716_v39  ;;  %1321 = vmatprep.subr.bf16.mxu1 %v5717_v36 }
 0x53c   :  { %1281 = vmatpush1.bf16.msra.mxu0 %v5718_v40  ;;  %1322 = vmatpush1.bf16.msra.mxu1 %v5719_v50 }
 0x53d   :  { %1282 = vmatprep.subr.bf16.mxu0 %v5720_v13  ;;  %1323 = vmatprep.subr.bf16.mxu1 %v5721_v37 }
 0x540   :  { %1283 = vmatpush1.bf16.msra.mxu0 %v5722_v45  ;;  %1324 = vmatpush1.bf16.msra.mxu1 %v5723_v51  ;;  %v5734_v51 = vld [vmem:[#allocation125_spill] sm:$0xff] }
 0x541   :  { %1284 = vmatprep.subr.bf16.mxu0 %v5724_v53  ;;  %1325 = vmatprep.subr.bf16.mxu1 %v5725_v57  ;;  %v5735_v53 = vld [vmem:[#allocation126_spill] sm:$0xff]  ;;  %v5736_v57 = vld [vmem:[#allocation127_spill] sm:$0xff]  ;;  %v5743_v45 = vld [vmem:[#allocation33_spill] sm:$0xff] }
 0x544   :  { %1285 = vmatpush1.bf16.msra.mxu0 %v5726_v31  ;;  %1326 = vmatpush1.bf16.msra.mxu1 %v5727_v58  ;;  %v5737_v31 = vld [vmem:[#allocation128_spill] sm:$0xff]  ;;  %v5738_v58 = vld [vmem:[#allocation129_spill] sm:$0xff] }
 0x545   :  { %1286 = vmatprep.subr.bf16.mxu0 %v5728_v61  ;;  %1327 = vmatprep.subr.bf16.mxu1 %v5729_v62  ;;  %v5739_v61 = vld [vmem:[#allocation130_spill] sm:$0xff] }
 0x546   :  { %v3950_v62 = vld [vmem:[#allocation2 + $0x28] sm:$0xff] }
 0x547   :  { %5740 = vst [vmem:[#allocation27_spill] sm:$0xff] %v3950_v62 }
 0x548   :  { %1287 = vmatpush1.bf16.msra.mxu0 %v5730_v48  ;;  %1328 = vmatpush1.bf16.msra.mxu1 %v5731_v1  ;;  %v3953_v1 = vld [vmem:[#allocation2 + $0x38] sm:$0xff] }
 0x549   :  { %1288 = vmatprep.subr.bf16.mxu0 %v5732_v9  ;;  %1329 = vmatprep.subr.bf16.mxu1 %v5733_v10  ;;  %5741 = vst [vmem:[#allocation29_spill] sm:$0xff] %v3953_v1  ;;  %v5742_v9 = vld [vmem:[#allocation31_spill] sm:$0xff] }
 0x54c   :  { %1289 = vmatpush1.bf16.msra.mxu0 %v5734_v51  ;;  %1330 = vmatpush1.bf16.msra.mxu1 %v5735_v53 }
 0x54d   :  { %1290 = vmatprep.subr.bf16.mxu0 %v5736_v57  ;;  %1331 = vmatprep.subr.bf16.mxu1 %v5737_v31 }
 0x550   :  { %1291 = vmatpush1.bf16.msra.mxu0 %v5738_v58  ;;  %1332 = vmatpush1.bf16.msra.mxu1 %v5739_v61 }
 0x551   :  { %1342 = vmatprep.subr.bf16.mxu0 %v3950_v62  ;;  %1383 = vmatprep.subr.bf16.mxu1 %v3953_v1  ;;  %v5744_v62 = vld [vmem:[#allocation32_spill] sm:$0xff] }
 0x5a6   :  { %v1083_v10 = vpop.f32.mrb[36].mxu0  ;;  %v1124_v51 = vpop.f32.mrb[36].mxu1 }
 0x5a7   :  { %v1217_v53 = vadd.f32 %v1083_v10, %v5742_v9  ;;  %v1085_v48 = vpop.f32.mrb[37].mxu0  ;;  %v1126_v57 = vpop.f32.mrb[37].mxu1  ;;  %v1219_v36 = vadd.f32 %v1124_v51, %v5744_v62 }
 0x5a8   :  { %v1218_v31 = vadd.f32 %v1085_v48, %v5743_v45  ;;  %v1087_v37 = vpop.f32.mrb[38].mxu0  ;;  %v1128_v58 = vpop.f32.mrb[38].mxu1 }
 0x5a9   :  { %v1241_v13 = vmul.f32 0.5, %v1217_v53  ;;  %v1088_v61 = vpop.f32.mrb[39].mxu0  ;;  %v1129_v50 = vpop.f32.mrb[39].mxu1 }
 0x5aa   :  { %v1245_v40 = vmul.f32 0.5, %v1218_v31 }
 0x5ab   :  { %2341 = vtanh.f32 %v1241_v13 }
 0x5ac   :  { %2343 = vtanh.f32 %v1245_v40 }
 0x5ad   :  { %2345 = vtanh.f32 %v1219_v36 }
 0x5b5   :  { %v2342_v1 = vpop.eup %2341 }
 0x5b6   :  { %v2344_v39 = vpop.eup %2343  ;;  %v1243_v43 = vmul.f32 0.5, %v2342_v1 }
 0x5b7   :  { %v1247_v3 = vmul.f32 0.5, %v2344_v39  ;;  %v2346_v10 = vpop.eup %2345 }
 0x5b8   :  { %v1244_v9 = vadd.f32 0.5, %v1243_v43 }
 0x5b9   :  { %v1248_v4 = vadd.f32 0.5, %v1247_v3 }
 0x5ba   :  { %v1255_v0 = vmul.f32 %v2346_v10, %v1244_v9 }
 0x5bb   :  { %v1254_v37 = vmul.f32 %v1248_v4, %v3806_v55  ;;  %v5745_v55 = vld [vmem:[#allocation34_spill] sm:$0xff] }
 0x5bd   :  { %v3960_v45 = vadd.f32 %v1255_v0, %v1254_v37  ;;  %v1220_v0 = vadd.f32 %v1126_v57, %v5745_v55 }
 0x5bf   :  { %v1250_v48 = vmul.f32 0.5, %v1220_v0 }
 0x5e6   :  { %v1165_v53 = vpop.f32.mrb[40].mxu0  ;;  %v1206_v50 = vpop.f32.mrb[40].mxu1 }
 0x5e7   :  { %v1213_v13 = vadd.f32 %v1165_v53, %v5534_v8  ;;  %v1167_v31 = vpop.f32.mrb[41].mxu0  ;;  %v1208_v51 = vpop.f32.mrb[41].mxu1  ;;  %v1215_v3 = vadd.f32 %v1206_v50, %v5536_v32 }
 0x5e8   :  { %v1214_v36 = vadd.f32 %v1167_v31, %v5535_v42  ;;  %v1169_v40 = vpop.f32.mrb[42].mxu0  ;;  %v1210_v58 = vpop.f32.mrb[42].mxu1  ;;  %v1216_v4 = vadd.f32 %v1208_v51, %v5538_v7 }
 0x5e9   :  { %v1221_v61 = vmul.f32 0.5, %v1213_v13  ;;  %v1170_v39 = vpop.f32.mrb[43].mxu0  ;;  %v1211_v43 = vpop.f32.mrb[43].mxu1 }
 0x5ea   :  { %v1225_v62 = vmul.f32 0.5, %v1214_v36  ;;  %v1230_v1 = vmul.f32 0.5, %v1216_v4 }
 0x5eb   :  { %2347 = vtanh.f32 %v1221_v61 }
 0x5ec   :  { %2349 = vtanh.f32 %v1225_v62 }
 0x5ed   :  { %2351 = vtanh.f32 %v1215_v3 }
 0x5ee   :  { %2353 = vtanh.f32 %v1250_v48 }
 0x5ef   :  { %2355 = vtanh.f32 %v1230_v1 }
 0x5f0   :  { %2357 = vtanh.f32 %v3960_v45 }
 0x5f5   :  { %v2348_v9 = vpop.eup %2347 }
 0x5f6   :  { %v2350_v10 = vpop.eup %2349  ;;  %v1223_v37 = vmul.f32 0.5, %v2348_v9  ;;  %v3979_v9 = vld [vmem:[#allocation2 + $0x30] sm:$0xff] }
 0x5f7   :  { %v1227_v53 = vmul.f32 0.5, %v2350_v10  ;;  %v2352_v31 = vpop.eup %2351  ;;  %v3982_v10 = vld [vmem:[#allocation2 + $0x68] sm:$0xff] }
 0x5f8   :  { %v1224_v13 = vadd.f32 0.5, %v1223_v37  ;;  %v2354_v51 = vpop.eup %2353  ;;  %v3985_v37 = vld [vmem:[#allocation2 + $0x78] sm:$0xff] }
 0x5f9   :  { %v1228_v36 = vadd.f32 0.5, %v1227_v53  ;;  %v2356_v58 = vpop.eup %2355  ;;  %v1252_v61 = vmul.f32 0.5, %v2354_v51  ;;  %v3988_v53 = vld [vmem:[#allocation2 + $0x60] sm:$0xff]  ;;  %v4006_v51 = vld [vmem:[#allocation2 + $0xe8] sm:$0xff] }
 0x5fa   :  { %v1235_v40 = vmul.f32 %v2352_v31, %v1224_v13  ;;  %v1232_v39 = vmul.f32 0.5, %v2356_v58  ;;  %v2358_v43 = vpop.eup %2357  ;;  %v3991_v13 = vld [vmem:[#allocation2 + $0x70] sm:$0xff]  ;;  %v3994_v31 = vld [vmem:[#allocation2 + $0xa8] sm:$0xff]  ;;  %v4009_v58 = vld [vmem:[#allocation2 + $0xf8] sm:$0xff] }
 0x5fb   :  { %v1234_v50 = vmul.f32 %v1228_v36, %v3815_v27  ;;  %v1253_v62 = vadd.f32 0.5, %v1252_v61  ;;  %v3976_v27 = vld [vmem:[#allocation2 + $0x20] sm:$0xff]  ;;  %v3997_v36 = vld [vmem:[#allocation2 + $0xb8] sm:$0xff] }
 0x5fc   :  { %v1233_v3 = vadd.f32 0.5, %v1232_v39  ;;  %v4012_v61 = vld [vmem:[#allocation2 + $0xe0] sm:$0xff]  ;;  %v4015_v39 = vld [vmem:[#allocation2 + $0xf0] sm:$0xff] }
 0x5fd   :  { %v3969_v57 = vadd.f32 %v1235_v40, %v1234_v50  ;;  %v1258_v0 = vmul.f32 %v2358_v43, %v1253_v62  ;;  %v4000_v40 = vld [vmem:[#allocation2 + $0xa0] sm:$0xff]  ;;  %v4003_v50 = vld [vmem:[#allocation2 + $0xb0] sm:$0xff]  ;;  %v4018_v43 = vld [vmem:[#allocation2 + $0x128] sm:$0xff] }
 0x5fe   :  { %v4021_v62 = vld [vmem:[#allocation2 + $0x138] sm:$0xff] }
 0x5ff   :  { %2359 = vtanh.f32 %v3969_v57  ;;  %v3972_v1 = vpack.c.bf16 %v1258_v0, %v1258_v0  ;;  %5746 = vst [vmem:[#allocation28_spill] sm:$0xff] %v4021_v62  ;;  %v4030_v0 = vld [vmem:[#allocation2 + $0x168] sm:$0xff] }
 0x600   :  { %5749 = vst [vmem:[#allocation95_spill] sm:$0xff] %v4030_v0 }
 0x609   :  { %v2360_v55 = vpop.eup %2359 }
 0x60a   :  { %v1238_v4 = vmul.f32 %v2360_v55, %v1233_v3  ;;  %v4024_v3 = vld [vmem:[#allocation2 + $0x120] sm:$0xff]  ;;  %v4027_v55 = vld [vmem:[#allocation2 + $0x130] sm:$0xff] }
 0x60b   :  { %5747 = vst [vmem:[#allocation30_spill] sm:$0xff] %v4024_v3  ;;  %5748 = vst [vmem:[#allocation94_spill] sm:$0xff] %v4027_v55 }
 0x60c   :  { %v1239_v48 = vpack.c.bf16 %v1238_v4, %v1238_v4  ;;  %v4033_v4 = vld [vmem:[#allocation2 + $0x178] sm:$0xff] }
 0x60d   :  { %5750 = vst [vmem:[#allocation96_spill] sm:$0xff] %v4033_v4 }
 0x60e   :  { %1240 = vst [vmem:[#allocation7 + $0x8] sm:$0xf] %v1239_v48  ;;  %1292 = vmatprep.mubr.bf16.mxu0 %v1239_v48  ;;  %1333 = vmatprep.mubr.bf16.mxu1 %v1239_v48 }
 0x60f   :  { %1293 = vmatmul.mubr.bf16.vlgmr.msra.gmra.mrb[44].mxu0 %v3972_v1  ;;  %1334 = vmatmul.mubr.bf16.vlgmr.msra.gmra.mrb[44].mxu1 %v3972_v1 }
 0x610   :  { %1343 = vmatpush1.bf16.msra.mxu0 %v3976_v27  ;;  %1384 = vmatpush1.bf16.msra.mxu1 %v3979_v9 }
 0x611   :  { %1374 = vmatprep.mubr.bf16.mxu0 %v1239_v48  ;;  %1415 = vmatprep.mubr.bf16.mxu1 %v1239_v48  ;;  %v4036_v48 = vld [vmem:[#allocation2 + $0x160] sm:$0xff] }
 0x612   :  { %1344 = vmatprep.subr.bf16.mxu0 %v3982_v10  ;;  %1385 = vmatprep.subr.bf16.mxu1 %v3985_v37  ;;  %5751 = vst [vmem:[#allocation97_spill] sm:$0xff] %v4036_v48 }
 0x614   :  { %1345 = vmatpush1.bf16.msra.mxu0 %v3988_v53  ;;  %1386 = vmatpush1.bf16.msra.mxu1 %v3991_v13 }
 0x615   :  { %1346 = vmatprep.subr.bf16.mxu0 %v3994_v31  ;;  %1387 = vmatprep.subr.bf16.mxu1 %v3997_v36 }
 0x618   :  { %1347 = vmatpush1.bf16.msra.mxu0 %v4000_v40  ;;  %1388 = vmatpush1.bf16.msra.mxu1 %v4003_v50 }
 0x619   :  { %1348 = vmatprep.subr.bf16.mxu0 %v4006_v51  ;;  %1389 = vmatprep.subr.bf16.mxu1 %v4009_v58 }
 0x61c   :  { %1349 = vmatpush1.bf16.msra.mxu0 %v4012_v61  ;;  %1390 = vmatpush1.bf16.msra.mxu1 %v4015_v39 }
 0x61d   :  { %1350 = vmatprep.subr.bf16.mxu0 %v4018_v43  ;;  %1391 = vmatprep.subr.bf16.mxu1 %v4021_v62  ;;  %v4039_v62 = vld [vmem:[#allocation2 + $0x170] sm:$0xff] }
 0x61e   :  { %5752 = vst [vmem:[#allocation98_spill] sm:$0xff] %v4039_v62 }
 0x620   :  { %1351 = vmatpush1.bf16.msra.mxu0 %v4024_v3  ;;  %1392 = vmatpush1.bf16.msra.mxu1 %v4027_v55  ;;  %v4042_v3 = vld [vmem:[#allocation2 + $0x1a8] sm:$0xff]  ;;  %v4045_v55 = vld [vmem:[#allocation2 + $0x1b8] sm:$0xff] }
 0x621   :  { %1352 = vmatprep.subr.bf16.mxu0 %v4030_v0  ;;  %1393 = vmatprep.subr.bf16.mxu1 %v4033_v4  ;;  %5753 = vst [vmem:[#allocation99_spill] sm:$0xff] %v4042_v3  ;;  %5754 = vst [vmem:[#allocation100_spill] sm:$0xff] %v4045_v55  ;;  %v4048_v0 = vld [vmem:[#allocation2 + $0x1a0] sm:$0xff]  ;;  %v4051_v4 = vld [vmem:[#allocation2 + $0x1b0] sm:$0xff] }
 0x622   :  { %5755 = vst [vmem:[#allocation101_spill] sm:$0xff] %v4048_v0  ;;  %5756 = vst [vmem:[#allocation102_spill] sm:$0xff] %v4051_v4 }
 0x624   :  { %1353 = vmatpush1.bf16.msra.mxu0 %v4036_v48  ;;  %1394 = vmatpush1.bf16.msra.mxu1 %v4039_v62  ;;  %v4054_v48 = vld [vmem:[#allocation2 + $0x1e8] sm:$0xff]  ;;  %v4057_v62 = vld [vmem:[#allocation2 + $0x1f8] sm:$0xff] }
 0x625   :  { %1354 = vmatprep.subr.bf16.mxu0 %v4042_v3  ;;  %1395 = vmatprep.subr.bf16.mxu1 %v4045_v55  ;;  %5757 = vst [vmem:[#allocation103_spill] sm:$0xff] %v4054_v48  ;;  %5758 = vst [vmem:[#allocation104_spill] sm:$0xff] %v4057_v62  ;;  %v4060_v3 = vld [vmem:[#allocation2 + $0x1e0] sm:$0xff]  ;;  %v4063_v55 = vld [vmem:[#allocation2 + $0x1f0] sm:$0xff] }
 0x626   :  { %5759 = vst [vmem:[#allocation105_spill] sm:$0xff] %v4060_v3  ;;  %5760 = vst [vmem:[#allocation106_spill] sm:$0xff] %v4063_v55 }
 0x628   :  { %1355 = vmatpush1.bf16.msra.mxu0 %v4048_v0  ;;  %1396 = vmatpush1.bf16.msra.mxu1 %v4051_v4  ;;  %v4066_v0 = vld [vmem:[#allocation2 + $0x228] sm:$0xff]  ;;  %v4069_v4 = vld [vmem:[#allocation2 + $0x238] sm:$0xff] }
 0x629   :  { %1356 = vmatprep.subr.bf16.mxu0 %v4054_v48  ;;  %1397 = vmatprep.subr.bf16.mxu1 %v4057_v62  ;;  %5761 = vst [vmem:[#allocation107_spill] sm:$0xff] %v4066_v0  ;;  %5762 = vst [vmem:[#allocation108_spill] sm:$0xff] %v4069_v4  ;;  %v4072_v48 = vld [vmem:[#allocation2 + $0x220] sm:$0xff]  ;;  %v4075_v62 = vld [vmem:[#allocation2 + $0x230] sm:$0xff] }
 0x62a   :  { %5763 = vst [vmem:[#allocation109_spill] sm:$0xff] %v4072_v48  ;;  %5764 = vst [vmem:[#allocation110_spill] sm:$0xff] %v4075_v62 }
 0x62c   :  { %1357 = vmatpush1.bf16.msra.mxu0 %v4060_v3  ;;  %1398 = vmatpush1.bf16.msra.mxu1 %v4063_v55  ;;  %v4078_v3 = vld [vmem:[#allocation2 + $0x268] sm:$0xff]  ;;  %v4081_v55 = vld [vmem:[#allocation2 + $0x278] sm:$0xff] }
 0x62d   :  { %1358 = vmatprep.subr.bf16.mxu0 %v4066_v0  ;;  %1399 = vmatprep.subr.bf16.mxu1 %v4069_v4  ;;  %5765 = vst [vmem:[#allocation111_spill] sm:$0xff] %v4078_v3  ;;  %5766 = vst [vmem:[#allocation112_spill] sm:$0xff] %v4081_v55  ;;  %v4084_v0 = vld [vmem:[#allocation2 + $0x260] sm:$0xff]  ;;  %v4087_v4 = vld [vmem:[#allocation2 + $0x270] sm:$0xff] }
 0x62e   :  { %5767 = vst [vmem:[#allocation113_spill] sm:$0xff] %v4084_v0  ;;  %5768 = vst [vmem:[#allocation114_spill] sm:$0xff] %v4087_v4 }
 0x630   :  { %1359 = vmatpush1.bf16.msra.mxu0 %v4072_v48  ;;  %1400 = vmatpush1.bf16.msra.mxu1 %v4075_v62  ;;  %v4090_v48 = vld [vmem:[#allocation2 + $0x2a8] sm:$0xff]  ;;  %v4093_v62 = vld [vmem:[#allocation2 + $0x2b8] sm:$0xff] }
 0x631   :  { %1360 = vmatprep.subr.bf16.mxu0 %v4078_v3  ;;  %1401 = vmatprep.subr.bf16.mxu1 %v4081_v55  ;;  %5769 = vst [vmem:[#allocation115_spill] sm:$0xff] %v4090_v48  ;;  %5770 = vst [vmem:[#allocation116_spill] sm:$0xff] %v4093_v62  ;;  %v4096_v3 = vld [vmem:[#allocation2 + $0x2a0] sm:$0xff]  ;;  %v4099_v55 = vld [vmem:[#allocation2 + $0x2b0] sm:$0xff] }
 0x632   :  { %5771 = vst [vmem:[#allocation117_spill] sm:$0xff] %v4096_v3  ;;  %5772 = vst [vmem:[#allocation118_spill] sm:$0xff] %v4099_v55 }
 0x634   :  { %1361 = vmatpush1.bf16.msra.mxu0 %v4084_v0  ;;  %1402 = vmatpush1.bf16.msra.mxu1 %v4087_v4  ;;  %v4102_v0 = vld [vmem:[#allocation2 + $0x2e8] sm:$0xff]  ;;  %v4105_v4 = vld [vmem:[#allocation2 + $0x2f8] sm:$0xff] }
 0x635   :  { %1362 = vmatprep.subr.bf16.mxu0 %v4090_v48  ;;  %1403 = vmatprep.subr.bf16.mxu1 %v4093_v62  ;;  %5773 = vst [vmem:[#allocation119_spill] sm:$0xff] %v4102_v0  ;;  %5774 = vst [vmem:[#allocation51_spill] sm:$0xff] %v4105_v4  ;;  %v4108_v48 = vld [vmem:[#allocation2 + $0x2e0] sm:$0xff]  ;;  %v4111_v62 = vld [vmem:[#allocation2 + $0x2f0] sm:$0xff] }
 0x636   :  { %5775 = vst [vmem:[#allocation53_spill] sm:$0xff] %v4108_v48  ;;  %5776 = vst [vmem:[#allocation52_spill] sm:$0xff] %v4111_v62 }
 0x638   :  { %1363 = vmatpush1.bf16.msra.mxu0 %v4096_v3  ;;  %1404 = vmatpush1.bf16.msra.mxu1 %v4099_v55  ;;  %v4114_v3 = vld [vmem:[#allocation2 + $0x328] sm:$0xff]  ;;  %v4117_v55 = vld [vmem:[#allocation2 + $0x338] sm:$0xff] }
 0x639   :  { %1364 = vmatprep.subr.bf16.mxu0 %v4102_v0  ;;  %1405 = vmatprep.subr.bf16.mxu1 %v4105_v4  ;;  %5777 = vst [vmem:[#allocation54_spill] sm:$0xff] %v4114_v3  ;;  %5778 = vst [vmem:[#allocation55_spill] sm:$0xff] %v4117_v55  ;;  %v4120_v0 = vld [vmem:[#allocation2 + $0x320] sm:$0xff]  ;;  %v4123_v4 = vld [vmem:[#allocation2 + $0x330] sm:$0xff] }
 0x63a   :  { %5779 = vst [vmem:[#allocation57_spill] sm:$0xff] %v4120_v0  ;;  %5780 = vst [vmem:[#allocation56_spill] sm:$0xff] %v4123_v4 }
 0x63c   :  { %1365 = vmatpush1.bf16.msra.mxu0 %v4108_v48  ;;  %1406 = vmatpush1.bf16.msra.mxu1 %v4111_v62  ;;  %v4126_v48 = vld [vmem:[#allocation2 + $0x368] sm:$0xff]  ;;  %v4129_v62 = vld [vmem:[#allocation2 + $0x378] sm:$0xff] }
 0x63d   :  { %1366 = vmatprep.subr.bf16.mxu0 %v4114_v3  ;;  %1407 = vmatprep.subr.bf16.mxu1 %v4117_v55  ;;  %5781 = vst [vmem:[#allocation58_spill] sm:$0xff] %v4126_v48  ;;  %5782 = vst [vmem:[#allocation59_spill] sm:$0xff] %v4129_v62  ;;  %v4132_v3 = vld [vmem:[#allocation2 + $0x360] sm:$0xff]  ;;  %v4135_v55 = vld [vmem:[#allocation2 + $0x370] sm:$0xff] }
 0x63e   :  { %5783 = vst [vmem:[#allocation61_spill] sm:$0xff] %v4132_v3  ;;  %5784 = vst [vmem:[#allocation60_spill] sm:$0xff] %v4135_v55 }
 0x640   :  { %1367 = vmatpush1.bf16.msra.mxu0 %v4120_v0  ;;  %1408 = vmatpush1.bf16.msra.mxu1 %v4123_v4  ;;  %v4138_v0 = vld [vmem:[#allocation2 + $0x3a8] sm:$0xff]  ;;  %v4141_v4 = vld [vmem:[#allocation2 + $0x3b8] sm:$0xff] }
 0x641   :  { %1368 = vmatprep.subr.bf16.mxu0 %v4126_v48  ;;  %1409 = vmatprep.subr.bf16.mxu1 %v4129_v62  ;;  %5785 = vst [vmem:[#allocation62_spill] sm:$0xff] %v4138_v0  ;;  %5786 = vst [vmem:[#allocation63_spill] sm:$0xff] %v4141_v4  ;;  %v4144_v48 = vld [vmem:[#allocation2 + $0x3a0] sm:$0xff]  ;;  %v4147_v62 = vld [vmem:[#allocation2 + $0x3b0] sm:$0xff] }
 0x642   :  { %5787 = vst [vmem:[#allocation65_spill] sm:$0xff] %v4144_v48  ;;  %5788 = vst [vmem:[#allocation64_spill] sm:$0xff] %v4147_v62 }
 0x644   :  { %1369 = vmatpush1.bf16.msra.mxu0 %v4132_v3  ;;  %1410 = vmatpush1.bf16.msra.mxu1 %v4135_v55  ;;  %v4150_v3 = vld [vmem:[#allocation2 + $0x3e8] sm:$0xff]  ;;  %v4153_v55 = vld [vmem:[#allocation2 + $0x3f8] sm:$0xff] }
 0x645   :  { %1370 = vmatprep.subr.bf16.mxu0 %v4138_v0  ;;  %1411 = vmatprep.subr.bf16.mxu1 %v4141_v4  ;;  %5789 = vst [vmem:[#allocation66_spill] sm:$0xff] %v4150_v3  ;;  %5790 = vst [vmem:[#allocation67_spill] sm:$0xff] %v4153_v55  ;;  %v4156_v0 = vld [vmem:[#allocation2 + $0x3e0] sm:$0xff]  ;;  %v4159_v4 = vld [vmem:[#allocation2 + $0x3f0] sm:$0xff] }
 0x646   :  { %5791 = vst [vmem:[#allocation69_spill] sm:$0xff] %v4156_v0  ;;  %5792 = vst [vmem:[#allocation68_spill] sm:$0xff] %v4159_v4 }
 0x648   :  { %1371 = vmatpush1.bf16.msra.mxu0 %v4144_v48  ;;  %1412 = vmatpush1.bf16.msra.mxu1 %v4147_v62 }
 0x649   :  { %1372 = vmatprep.subr.bf16.mxu0 %v4150_v3  ;;  %1413 = vmatprep.subr.bf16.mxu1 %v4153_v55 }
 0x64c   :  { %1373 = vmatpush1.bf16.msra.mxu0 %v4156_v0  ;;  %1414 = vmatpush1.bf16.msra.mxu1 %v4159_v4 }
 0x64d   :  { %1471 = vmatprep.subr.bf16.mxu0 %v5676_v14  ;;  %1512 = vmatprep.subr.bf16.mxu1 %v5677_v17  ;;  %v5793_v14 = vld [vmem:[#allocation77_spill] sm:$0xff]  ;;  %v5794_v17 = vld [vmem:[#allocation78_spill] sm:$0xff] }
 0x64f   :  { %1375 = vmatmul.mubr.bf16.vlgmr.msra.gmra.mrb[48].mxu0 %v3972_v1  ;;  %1416 = vmatmul.mubr.bf16.vlgmr.msra.gmra.mrb[48].mxu1 %v3972_v1  ;;  %v5824_v1 = vld [vmem:[#allocation37_spill] sm:$0xff] }
 0x650   :  { %1472 = vmatpush1.bf16.msra.mxu0 %v5678_v18  ;;  %1513 = vmatpush1.bf16.msra.mxu1 %v5679_v21  ;;  %v5795_v18 = vld [vmem:[#allocation79_spill] sm:$0xff]  ;;  %v5796_v21 = vld [vmem:[#allocation80_spill] sm:$0xff] }
 0x651   :  { %1473 = vmatprep.subr.bf16.mxu0 %v5680_v23  ;;  %1514 = vmatprep.subr.bf16.mxu1 %v5681_v25  ;;  %v5797_v23 = vld [vmem:[#allocation81_spill] sm:$0xff]  ;;  %v5798_v25 = vld [vmem:[#allocation82_spill] sm:$0xff] }
 0x654   :  { %1474 = vmatpush1.bf16.msra.mxu0 %v5682_v30  ;;  %1515 = vmatpush1.bf16.msra.mxu1 %v5683_v38  ;;  %v5799_v30 = vld [vmem:[#allocation83_spill] sm:$0xff]  ;;  %v5800_v38 = vld [vmem:[#allocation84_spill] sm:$0xff] }
 0x655   :  { %1475 = vmatprep.subr.bf16.mxu0 %v5684_v41  ;;  %1516 = vmatprep.subr.bf16.mxu1 %v5685_v46  ;;  %v5801_v41 = vld [vmem:[#allocation85_spill] sm:$0xff]  ;;  %v5802_v46 = vld [vmem:[#allocation86_spill] sm:$0xff] }
 0x658   :  { %1476 = vmatpush1.bf16.msra.mxu0 %v5686_v49  ;;  %1517 = vmatpush1.bf16.msra.mxu1 %v5687_v44  ;;  %v5803_v49 = vld [vmem:[#allocation87_spill] sm:$0xff]  ;;  %v5804_v44 = vld [vmem:[#allocation88_spill] sm:$0xff] }
 0x659   :  { %1477 = vmatprep.subr.bf16.mxu0 %v5688_v19  ;;  %1518 = vmatprep.subr.bf16.mxu1 %v5689_v5  ;;  %v5805_v19 = vld [vmem:[#allocation89_spill] sm:$0xff]  ;;  %v5806_v5 = vld [vmem:[#allocation90_spill] sm:$0xff] }
 0x65c   :  { %1478 = vmatpush1.bf16.msra.mxu0 %v5690_v28  ;;  %1519 = vmatpush1.bf16.msra.mxu1 %v5691_v22  ;;  %v5807_v28 = vld [vmem:[#allocation91_spill] sm:$0xff]  ;;  %v5808_v22 = vld [vmem:[#allocation92_spill] sm:$0xff] }
 0x65d   :  { %1479 = vmatprep.subr.bf16.mxu0 %v5692_v24  ;;  %1520 = vmatprep.subr.bf16.mxu1 %v5693_v26  ;;  %v5809_v24 = vld [vmem:[#allocation93_spill] sm:$0xff]  ;;  %v5810_v26 = vld [vmem:[#allocation120_spill] sm:$0xff] }
 0x660   :  { %1480 = vmatpush1.bf16.msra.mxu0 %v5694_v54  ;;  %1521 = vmatpush1.bf16.msra.mxu1 %v5695_v29  ;;  %v5811_v54 = vld [vmem:[#allocation121_spill] sm:$0xff]  ;;  %v5812_v29 = vld [vmem:[#allocation122_spill] sm:$0xff] }
 0x661   :  { %1481 = vmatprep.subr.bf16.mxu0 %v5696_v6  ;;  %1522 = vmatprep.subr.bf16.mxu1 %v5697_v47  ;;  %v5813_v6 = vld [vmem:[#allocation123_spill] sm:$0xff]  ;;  %v5814_v47 = vld [vmem:[#allocation124_spill] sm:$0xff] }
 0x664   :  { %1482 = vmatpush1.bf16.msra.mxu0 %v5698_v15  ;;  %1523 = vmatpush1.bf16.msra.mxu1 %v5699_v16  ;;  %v5815_v15 = vld [vmem:[#allocation125_spill] sm:$0xff]  ;;  %v5816_v16 = vld [vmem:[#allocation126_spill] sm:$0xff] }
 0x665   :  { %1483 = vmatprep.subr.bf16.mxu0 %v5700_v63  ;;  %1524 = vmatprep.subr.bf16.mxu1 %v5701_v35  ;;  %v5817_v63 = vld [vmem:[#allocation127_spill] sm:$0xff]  ;;  %v5818_v35 = vld [vmem:[#allocation128_spill] sm:$0xff] }
 0x668   :  { %1484 = vmatpush1.bf16.msra.mxu0 %v5702_v2  ;;  %1525 = vmatpush1.bf16.msra.mxu1 %v5703_v11  ;;  %v5819_v2 = vld [vmem:[#allocation129_spill] sm:$0xff]  ;;  %v5820_v11 = vld [vmem:[#allocation130_spill] sm:$0xff] }
 0x669   :  { %1485 = vmatprep.subr.bf16.mxu0 %v5704_v20  ;;  %1526 = vmatprep.subr.bf16.mxu1 %v5705_v12  ;;  %v5821_v20 = vld [vmem:[#allocation27_spill] sm:$0xff]  ;;  %v5822_v12 = vld [vmem:[#allocation29_spill] sm:$0xff] }
 0x66c   :  { %1486 = vmatpush1.bf16.msra.mxu0 %v5706_v33  ;;  %1527 = vmatpush1.bf16.msra.mxu1 %v5707_v34 }
 0x66d   :  { %1487 = vmatprep.subr.bf16.mxu0 %v5708_v52  ;;  %1528 = vmatprep.subr.bf16.mxu1 %v5709_v56  ;;  %v5823_v52 = vld [vmem:[#allocation35_spill] sm:$0xff] }
 0x670   :  { %1488 = vmatpush1.bf16.msra.mxu0 %v5710_v59  ;;  %1529 = vmatpush1.bf16.msra.mxu1 %v5711_v60 }
 0x671   :  { %1489 = vmatprep.subr.bf16.mxu0 %v5793_v14  ;;  %1530 = vmatprep.subr.bf16.mxu1 %v5794_v17 }
 0x674   :  { %1490 = vmatpush1.bf16.msra.mxu0 %v5795_v18  ;;  %1531 = vmatpush1.bf16.msra.mxu1 %v5796_v21 }
 0x675   :  { %1491 = vmatprep.subr.bf16.mxu0 %v5797_v23  ;;  %1532 = vmatprep.subr.bf16.mxu1 %v5798_v25 }
 0x678   :  { %1492 = vmatpush1.bf16.msra.mxu0 %v5799_v30  ;;  %1533 = vmatpush1.bf16.msra.mxu1 %v5800_v38  ;;  %v5825_v38 = vld [vmem:[#allocation36_spill] sm:$0xff] }
 0x679   :  { %1493 = vmatprep.subr.bf16.mxu0 %v5801_v41  ;;  %1534 = vmatprep.subr.bf16.mxu1 %v5802_v46 }
 0x67c   :  { %1494 = vmatpush1.bf16.msra.mxu0 %v5803_v49  ;;  %1535 = vmatpush1.bf16.msra.mxu1 %v5804_v44 }
 0x67d   :  { %1495 = vmatprep.subr.bf16.mxu0 %v5805_v19  ;;  %1536 = vmatprep.subr.bf16.mxu1 %v5806_v5 }
 0x680   :  { %1496 = vmatpush1.bf16.msra.mxu0 %v5807_v28  ;;  %1537 = vmatpush1.bf16.msra.mxu1 %v5808_v22 }
 0x681   :  { %1497 = vmatprep.subr.bf16.mxu0 %v5809_v24  ;;  %1538 = vmatprep.subr.bf16.mxu1 %v5810_v26 }
 0x684   :  { %1498 = vmatpush1.bf16.msra.mxu0 %v5811_v54  ;;  %1539 = vmatpush1.bf16.msra.mxu1 %v5812_v29 }
 0x685   :  { %1499 = vmatprep.subr.bf16.mxu0 %v5813_v6  ;;  %1540 = vmatprep.subr.bf16.mxu1 %v5814_v47 }
 0x688   :  { %1500 = vmatpush1.bf16.msra.mxu0 %v5815_v15  ;;  %1541 = vmatpush1.bf16.msra.mxu1 %v5816_v16 }
 0x689   :  { %1501 = vmatprep.subr.bf16.mxu0 %v5817_v63  ;;  %1542 = vmatprep.subr.bf16.mxu1 %v5818_v35 }
 0x68c   :  { %1502 = vmatpush1.bf16.msra.mxu0 %v5819_v2  ;;  %1543 = vmatpush1.bf16.msra.mxu1 %v5820_v11 }
 0x68d   :  { %1553 = vmatprep.subr.bf16.mxu0 %v5821_v20  ;;  %1594 = vmatprep.subr.bf16.mxu1 %v5822_v12 }
 0x6e2   :  { %v1294_v33 = vpop.f32.mrb[44].mxu0  ;;  %v1335_v34 = vpop.f32.mrb[44].mxu1 }
 0x6e3   :  { %v1428_v56 = vadd.f32 %v1294_v33, %v5823_v52  ;;  %v1296_v59 = vpop.f32.mrb[45].mxu0  ;;  %v1337_v60 = vpop.f32.mrb[45].mxu1  ;;  %v1430_v41 = vadd.f32 %v1335_v34, %v5825_v38 }
 0x6e4   :  { %v1429_v14 = vadd.f32 %v1296_v59, %v5824_v1  ;;  %v1298_v17 = vpop.f32.mrb[46].mxu0  ;;  %v1339_v18 = vpop.f32.mrb[46].mxu1 }
 0x6e5   :  { %v1452_v21 = vmul.f32 0.5, %v1428_v56  ;;  %v1299_v23 = vpop.f32.mrb[47].mxu0  ;;  %v1340_v25 = vpop.f32.mrb[47].mxu1 }
 0x6e6   :  { %v1456_v30 = vmul.f32 0.5, %v1429_v14 }
 0x6e7   :  { %2361 = vtanh.f32 %v1452_v21 }
 0x6e8   :  { %2363 = vtanh.f32 %v1456_v30 }
 0x6e9   :  { %2365 = vtanh.f32 %v1430_v41 }
 0x6f1   :  { %v2362_v46 = vpop.eup %2361 }
 0x6f2   :  { %v2364_v49 = vpop.eup %2363  ;;  %v1454_v44 = vmul.f32 0.5, %v2362_v46 }
 0x6f3   :  { %v1458_v19 = vmul.f32 0.5, %v2364_v49  ;;  %v2366_v28 = vpop.eup %2365 }
 0x6f4   :  { %v1455_v5 = vadd.f32 0.5, %v1454_v44 }
 0x6f5   :  { %v1459_v22 = vadd.f32 0.5, %v1458_v19 }
 0x6f6   :  { %v1466_v24 = vmul.f32 %v2366_v28, %v1455_v5 }
 0x6f7   :  { %v1465_v26 = vmul.f32 %v1459_v22, %v3960_v45  ;;  %v5826_v45 = vld [vmem:[#allocation38_spill] sm:$0xff] }
 0x6f8   :  { %v1431_v59 = vadd.f32 %v1337_v60, %v5826_v45  ;;  %v5836_v45 = vld [vmem:[#allocation101_spill] sm:$0xff] }
 0x6f9   :  { %v4234_v54 = vadd.f32 %v1466_v24, %v1465_v26 }
 0x6fa   :  { %v1461_v14 = vmul.f32 0.5, %v1431_v59  ;;  %v5837_v59 = vld [vmem:[#allocation102_spill] sm:$0xff] }
 0x722   :  { %v1376_v29 = vpop.f32.mrb[48].mxu0  ;;  %v1417_v6 = vpop.f32.mrb[48].mxu1 }
 0x723   :  { %v1424_v47 = vadd.f32 %v1376_v29, %v5534_v8  ;;  %v1378_v15 = vpop.f32.mrb[49].mxu0  ;;  %v1419_v16 = vpop.f32.mrb[49].mxu1  ;;  %v1426_v56 = vadd.f32 %v1417_v6, %v5536_v32 }
 0x724   :  { %v1425_v63 = vadd.f32 %v1378_v15, %v5535_v42  ;;  %v1380_v35 = vpop.f32.mrb[50].mxu0  ;;  %v1421_v2 = vpop.f32.mrb[50].mxu1  ;;  %v1427_v1 = vadd.f32 %v1419_v16, %v5538_v7 }
 0x725   :  { %v1432_v11 = vmul.f32 0.5, %v1424_v47  ;;  %v1381_v33 = vpop.f32.mrb[51].mxu0  ;;  %v1422_v34 = vpop.f32.mrb[51].mxu1  ;;  %v5829_v35 = vld [vmem:[#allocation94_spill] sm:$0xff]  ;;  %v5830_v2 = vld [vmem:[#allocation95_spill] sm:$0xff] }
 0x726   :  { %v1436_v52 = vmul.f32 0.5, %v1425_v63  ;;  %v1441_v17 = vmul.f32 0.5, %v1427_v1  ;;  %v5828_v63 = vld [vmem:[#allocation30_spill] sm:$0xff]  ;;  %v5832_v33 = vld [vmem:[#allocation97_spill] sm:$0xff]  ;;  %v5838_v1 = vld [vmem:[#allocation103_spill] sm:$0xff] }
 0x727   :  { %2367 = vtanh.f32 %v1432_v11  ;;  %v5831_v11 = vld [vmem:[#allocation96_spill] sm:$0xff]  ;;  %v5833_v34 = vld [vmem:[#allocation98_spill] sm:$0xff] }
 0x728   :  { %2369 = vtanh.f32 %v1436_v52  ;;  %v5834_v52 = vld [vmem:[#allocation99_spill] sm:$0xff] }
 0x729   :  { %2371 = vtanh.f32 %v1426_v56  ;;  %v5835_v56 = vld [vmem:[#allocation100_spill] sm:$0xff] }
 0x72a   :  { %2373 = vtanh.f32 %v1461_v14  ;;  %v5839_v14 = vld [vmem:[#allocation104_spill] sm:$0xff] }
 0x72b   :  { %2375 = vtanh.f32 %v1441_v17  ;;  %v5840_v17 = vld [vmem:[#allocation105_spill] sm:$0xff] }
 0x72c   :  { %2377 = vtanh.f32 %v4234_v54 }
 0x731   :  { %v2368_v18 = vpop.eup %2367 }
 0x732   :  { %v2370_v21 = vpop.eup %2369  ;;  %v1434_v23 = vmul.f32 0.5, %v2368_v18  ;;  %v5841_v18 = vld [vmem:[#allocation106_spill] sm:$0xff] }
 0x733   :  { %v1438_v25 = vmul.f32 0.5, %v2370_v21  ;;  %v2372_v38 = vpop.eup %2371  ;;  %v5842_v21 = vld [vmem:[#allocation107_spill] sm:$0xff] }
 0x734   :  { %v1435_v30 = vadd.f32 0.5, %v1434_v23  ;;  %v2374_v44 = vpop.eup %2373  ;;  %v5843_v23 = vld [vmem:[#allocation108_spill] sm:$0xff] }
 0x735   :  { %v1439_v41 = vadd.f32 0.5, %v1438_v25  ;;  %v2376_v19 = vpop.eup %2375  ;;  %v1463_v5 = vmul.f32 0.5, %v2374_v44  ;;  %v5844_v25 = vld [vmem:[#allocation109_spill] sm:$0xff]  ;;  %v5850_v44 = vld [vmem:[#allocation115_spill] sm:$0xff] }
 0x736   :  { %v1446_v46 = vmul.f32 %v2372_v38, %v1435_v30  ;;  %v1443_v28 = vmul.f32 0.5, %v2376_v19  ;;  %v2378_v22 = vpop.eup %2377  ;;  %v5845_v30 = vld [vmem:[#allocation110_spill] sm:$0xff]  ;;  %v5846_v38 = vld [vmem:[#allocation111_spill] sm:$0xff]  ;;  %v5851_v19 = vld [vmem:[#allocation116_spill] sm:$0xff] }
 0x737   :  { %v1445_v49 = vmul.f32 %v1439_v41, %v3969_v57  ;;  %v1464_v24 = vadd.f32 0.5, %v1463_v5  ;;  %v5827_v57 = vld [vmem:[#allocation28_spill] sm:$0xff]  ;;  %v5852_v5 = vld [vmem:[#allocation117_spill] sm:$0xff] }
 0x738   :  { %v1444_v26 = vadd.f32 0.5, %v1443_v28  ;;  %v5847_v41 = vld [vmem:[#allocation112_spill] sm:$0xff]  ;;  %v5853_v28 = vld [vmem:[#allocation118_spill] sm:$0xff] }
 0x739   :  { %v4243_v60 = vadd.f32 %v1446_v46, %v1445_v49  ;;  %v1469_v6 = vmul.f32 %v2378_v22, %v1464_v24  ;;  %v5848_v46 = vld [vmem:[#allocation113_spill] sm:$0xff]  ;;  %v5849_v49 = vld [vmem:[#allocation114_spill] sm:$0xff]  ;;  %v5854_v22 = vld [vmem:[#allocation119_spill] sm:$0xff] }
 0x73a   :  { %v5855_v24 = vld [vmem:[#allocation51_spill] sm:$0xff] }
 0x73b   :  { %2379 = vtanh.f32 %v4243_v60  ;;  %v4246_v16 = vpack.c.bf16 %v1469_v6, %v1469_v6  ;;  %v5858_v6 = vld [vmem:[#allocation54_spill] sm:$0xff] }
 0x745   :  { %v2380_v29 = vpop.eup %2379 }
 0x746   :  { %v1449_v47 = vmul.f32 %v2380_v29, %v1444_v26  ;;  %v5856_v26 = vld [vmem:[#allocation53_spill] sm:$0xff]  ;;  %v5857_v29 = vld [vmem:[#allocation52_spill] sm:$0xff] }
 0x748   :  { %v1450_v15 = vpack.c.bf16 %v1449_v47, %v1449_v47  ;;  %v5859_v47 = vld [vmem:[#allocation55_spill] sm:$0xff] }
 0x74a   :  { %1451 = vst [vmem:[#allocation7 + $0xc] sm:$0xf] %v1450_v15  ;;  %1503 = vmatprep.mubr.bf16.mxu0 %v1450_v15  ;;  %1544 = vmatprep.mubr.bf16.mxu1 %v1450_v15 }
 0x74b   :  { %1504 = vmatmul.mubr.bf16.vlgmr.msra.gmra.mrb[52].mxu0 %v4246_v16  ;;  %1545 = vmatmul.mubr.bf16.vlgmr.msra.gmra.mrb[52].mxu1 %v4246_v16 }
 0x74c   :  { %1554 = vmatpush1.bf16.msra.mxu0 %v3976_v27  ;;  %1595 = vmatpush1.bf16.msra.mxu1 %v3979_v9 }
 0x74d   :  { %1585 = vmatprep.mubr.bf16.mxu0 %v1450_v15  ;;  %1626 = vmatprep.mubr.bf16.mxu1 %v1450_v15  ;;  %v5860_v15 = vld [vmem:[#allocation57_spill] sm:$0xff] }
 0x74e   :  { %1555 = vmatprep.subr.bf16.mxu0 %v3982_v10  ;;  %1596 = vmatprep.subr.bf16.mxu1 %v3985_v37 }
 0x750   :  { %1556 = vmatpush1.bf16.msra.mxu0 %v3988_v53  ;;  %1597 = vmatpush1.bf16.msra.mxu1 %v3991_v13 }
 0x751   :  { %1557 = vmatprep.subr.bf16.mxu0 %v3994_v31  ;;  %1598 = vmatprep.subr.bf16.mxu1 %v3997_v36 }
 0x754   :  { %1558 = vmatpush1.bf16.msra.mxu0 %v4000_v40  ;;  %1599 = vmatpush1.bf16.msra.mxu1 %v4003_v50 }
 0x755   :  { %1559 = vmatprep.subr.bf16.mxu0 %v4006_v51  ;;  %1600 = vmatprep.subr.bf16.mxu1 %v4009_v58 }
 0x758   :  { %1560 = vmatpush1.bf16.msra.mxu0 %v4012_v61  ;;  %1601 = vmatpush1.bf16.msra.mxu1 %v4015_v39 }
 0x759   :  { %1561 = vmatprep.subr.bf16.mxu0 %v4018_v43  ;;  %1602 = vmatprep.subr.bf16.mxu1 %v5827_v57 }
 0x75c   :  { %1562 = vmatpush1.bf16.msra.mxu0 %v5828_v63  ;;  %1603 = vmatpush1.bf16.msra.mxu1 %v5829_v35 }
 0x75d   :  { %1563 = vmatprep.subr.bf16.mxu0 %v5830_v2  ;;  %1604 = vmatprep.subr.bf16.mxu1 %v5831_v11 }
 0x760   :  { %1564 = vmatpush1.bf16.msra.mxu0 %v5832_v33  ;;  %1605 = vmatpush1.bf16.msra.mxu1 %v5833_v34 }
 0x761   :  { %1565 = vmatprep.subr.bf16.mxu0 %v5834_v52  ;;  %1606 = vmatprep.subr.bf16.mxu1 %v5835_v56 }
 0x764   :  { %1566 = vmatpush1.bf16.msra.mxu0 %v5836_v45  ;;  %1607 = vmatpush1.bf16.msra.mxu1 %v5837_v59 }
 0x765   :  { %1567 = vmatprep.subr.bf16.mxu0 %v5838_v1  ;;  %1608 = vmatprep.subr.bf16.mxu1 %v5839_v14 }
 0x768   :  { %1568 = vmatpush1.bf16.msra.mxu0 %v5840_v17  ;;  %1609 = vmatpush1.bf16.msra.mxu1 %v5841_v18 }
 0x769   :  { %1569 = vmatprep.subr.bf16.mxu0 %v5842_v21  ;;  %1610 = vmatprep.subr.bf16.mxu1 %v5843_v23 }
 0x76c   :  { %1570 = vmatpush1.bf16.msra.mxu0 %v5844_v25  ;;  %1611 = vmatpush1.bf16.msra.mxu1 %v5845_v30 }
 0x76d   :  { %1571 = vmatprep.subr.bf16.mxu0 %v5846_v38  ;;  %1612 = vmatprep.subr.bf16.mxu1 %v5847_v41 }
 0x770   :  { %1572 = vmatpush1.bf16.msra.mxu0 %v5848_v46  ;;  %1613 = vmatpush1.bf16.msra.mxu1 %v5849_v49 }
 0x771   :  { %1573 = vmatprep.subr.bf16.mxu0 %v5850_v44  ;;  %1614 = vmatprep.subr.bf16.mxu1 %v5851_v19  ;;  %v5861_v44 = vld [vmem:[#allocation56_spill] sm:$0xff]  ;;  %v5862_v19 = vld [vmem:[#allocation58_spill] sm:$0xff] }
 0x774   :  { %1574 = vmatpush1.bf16.msra.mxu0 %v5852_v5  ;;  %1615 = vmatpush1.bf16.msra.mxu1 %v5853_v28  ;;  %v5863_v5 = vld [vmem:[#allocation59_spill] sm:$0xff]  ;;  %v5864_v28 = vld [vmem:[#allocation61_spill] sm:$0xff] }
 0x775   :  { %1575 = vmatprep.subr.bf16.mxu0 %v5854_v22  ;;  %1616 = vmatprep.subr.bf16.mxu1 %v5855_v24  ;;  %v5865_v22 = vld [vmem:[#allocation60_spill] sm:$0xff]  ;;  %v5866_v24 = vld [vmem:[#allocation62_spill] sm:$0xff] }
 0x778   :  { %1576 = vmatpush1.bf16.msra.mxu0 %v5856_v26  ;;  %1617 = vmatpush1.bf16.msra.mxu1 %v5857_v29  ;;  %v5867_v26 = vld [vmem:[#allocation63_spill] sm:$0xff] }
 0x779   :  { %1577 = vmatprep.subr.bf16.mxu0 %v5858_v6  ;;  %1618 = vmatprep.subr.bf16.mxu1 %v5859_v47 }
 0x77c   :  { %1578 = vmatpush1.bf16.msra.mxu0 %v5860_v15  ;;  %1619 = vmatpush1.bf16.msra.mxu1 %v5861_v44 }
 0x77d   :  { %1579 = vmatprep.subr.bf16.mxu0 %v5862_v19  ;;  %1620 = vmatprep.subr.bf16.mxu1 %v5863_v5  ;;  %v4312_v5 = vld [vmem:[#allocation2 + $0x8] sm:$0xff] }
 0x77e   :  { %5868 = vst [vmem:[#allocation70_spill] sm:$0xff] %v4312_v5 }
 0x780   :  { %1580 = vmatpush1.bf16.msra.mxu0 %v5864_v28  ;;  %1621 = vmatpush1.bf16.msra.mxu1 %v5865_v22  ;;  %v4315_v22 = vld [vmem:[#allocation2 + $0x18] sm:$0xff] }
 0x781   :  { %1581 = vmatprep.subr.bf16.mxu0 %v5866_v24  ;;  %1622 = vmatprep.subr.bf16.mxu1 %v5867_v26  ;;  %5869 = vst [vmem:[#allocation71_spill] sm:$0xff] %v4315_v22  ;;  %v5933_v26 = vld [vmem:[#allocation41_spill] sm:$0xff] }
 0x784   :  { %1582 = vmatpush1.bf16.msra.mxu0 %v4144_v48  ;;  %1623 = vmatpush1.bf16.msra.mxu1 %v4147_v62  ;;  %v4320_v62 = vld [vmem:[#allocation2] sm:$0xff] }
 0x785   :  { %1583 = vmatprep.subr.bf16.mxu0 %v4150_v3  ;;  %1624 = vmatprep.subr.bf16.mxu1 %v4153_v55  ;;  %5870 = vst [vmem:[#allocation72_spill] sm:$0xff] %v4320_v62  ;;  %v4323_v55 = vld [vmem:[#allocation2 + $0x10] sm:$0xff] }
 0x786   :  { %5871 = vst [vmem:[#allocation73_spill] sm:$0xff] %v4323_v55 }
 0x788   :  { %1584 = vmatpush1.bf16.msra.mxu0 %v4156_v0  ;;  %1625 = vmatpush1.bf16.msra.mxu1 %v4159_v4  ;;  %v4326_v4 = vld [vmem:[#allocation2 + $0x48] sm:$0xff]  ;;  %v5932_v0 = vld [vmem:[#allocation39_spill] sm:$0xff] }
 0x789   :  { %1682 = vmatprep.subr.bf16.mxu0 %v4312_v5  ;;  %1723 = vmatprep.subr.bf16.mxu1 %v4315_v22  ;;  %5872 = vst [vmem:[#allocation74_spill] sm:$0xff] %v4326_v4  ;;  %v4329_v5 = vld [vmem:[#allocation2 + $0x58] sm:$0xff]  ;;  %v4332_v22 = vld [vmem:[#allocation2 + $0x40] sm:$0xff] }
 0x78a   :  { %5873 = vst [vmem:[#allocation23_spill] sm:$0xff] %v4329_v5  ;;  %5874 = vst [vmem:[#allocation25_spill] sm:$0xff] %v4332_v22 }
 0x78b   :  { %1586 = vmatmul.mubr.bf16.vlgmr.msra.gmra.mrb[56].mxu0 %v4246_v16  ;;  %1627 = vmatmul.mubr.bf16.vlgmr.msra.gmra.mrb[56].mxu1 %v4246_v16  ;;  %v4335_v16 = vld [vmem:[#allocation2 + $0x50] sm:$0xff] }
 0x78c   :  { %1683 = vmatpush1.bf16.msra.mxu0 %v4320_v62  ;;  %1724 = vmatpush1.bf16.msra.mxu1 %v4323_v55  ;;  %5875 = vst [vmem:[#allocation24_spill] sm:$0xff] %v4335_v16  ;;  %v4338_v62 = vld [vmem:[#allocation2 + $0x88] sm:$0xff]  ;;  %v4341_v55 = vld [vmem:[#allocation2 + $0x98] sm:$0xff] }
 0x78d   :  { %1684 = vmatprep.subr.bf16.mxu0 %v4326_v4  ;;  %1725 = vmatprep.subr.bf16.mxu1 %v4329_v5  ;;  %5876 = vst [vmem:[#allocation26_spill] sm:$0xff] %v4338_v62  ;;  %5877 = vst [vmem:[#allocation14_spill] sm:$0xff] %v4341_v55  ;;  %v4344_v4 = vld [vmem:[#allocation2 + $0x80] sm:$0xff]  ;;  %v4347_v5 = vld [vmem:[#allocation2 + $0x90] sm:$0xff] }
 0x78e   :  { %5878 = vst [vmem:[#allocation19_spill] sm:$0xff] %v4344_v4  ;;  %5879 = vst [vmem:[#allocation21_spill] sm:$0xff] %v4347_v5 }
 0x790   :  { %1685 = vmatpush1.bf16.msra.mxu0 %v4332_v22  ;;  %1726 = vmatpush1.bf16.msra.mxu1 %v4335_v16  ;;  %v4350_v22 = vld [vmem:[#allocation2 + $0xc8] sm:$0xff]  ;;  %v4353_v16 = vld [vmem:[#allocation2 + $0xd8] sm:$0xff] }
 0x791   :  { %1686 = vmatprep.subr.bf16.mxu0 %v4338_v62  ;;  %1727 = vmatprep.subr.bf16.mxu1 %v4341_v55  ;;  %5880 = vst [vmem:[#allocation20_spill] sm:$0xff] %v4350_v22  ;;  %5881 = vst [vmem:[#allocation22_spill] sm:$0xff] %v4353_v16  ;;  %v4356_v62 = vld [vmem:[#allocation2 + $0xc0] sm:$0xff]  ;;  %v4359_v55 = vld [vmem:[#allocation2 + $0xd0] sm:$0xff] }
 0x792   :  { %5882 = vst [vmem:[#allocation13_spill] sm:$0xff] %v4356_v62  ;;  %5883 = vst [vmem:[#allocation75_spill] sm:$0xff] %v4359_v55 }
 0x794   :  { %1687 = vmatpush1.bf16.msra.mxu0 %v4344_v4  ;;  %1728 = vmatpush1.bf16.msra.mxu1 %v4347_v5  ;;  %v4362_v4 = vld [vmem:[#allocation2 + $0x108] sm:$0xff]  ;;  %v4365_v5 = vld [vmem:[#allocation2 + $0x118] sm:$0xff] }
 0x795   :  { %1688 = vmatprep.subr.bf16.mxu0 %v4350_v22  ;;  %1729 = vmatprep.subr.bf16.mxu1 %v4353_v16  ;;  %5884 = vst [vmem:[#allocation76_spill] sm:$0xff] %v4362_v4  ;;  %5885 = vst [vmem:[#allocation31_spill] sm:$0xff] %v4365_v5  ;;  %v4368_v22 = vld [vmem:[#allocation2 + $0x100] sm:$0xff]  ;;  %v4371_v16 = vld [vmem:[#allocation2 + $0x110] sm:$0xff] }
 0x796   :  { %5886 = vst [vmem:[#allocation33_spill] sm:$0xff] %v4368_v22  ;;  %5887 = vst [vmem:[#allocation32_spill] sm:$0xff] %v4371_v16 }
 0x798   :  { %1689 = vmatpush1.bf16.msra.mxu0 %v4356_v62  ;;  %1730 = vmatpush1.bf16.msra.mxu1 %v4359_v55  ;;  %v4374_v62 = vld [vmem:[#allocation2 + $0x148] sm:$0xff]  ;;  %v4377_v55 = vld [vmem:[#allocation2 + $0x158] sm:$0xff] }
 0x799   :  { %1690 = vmatprep.subr.bf16.mxu0 %v4362_v4  ;;  %1731 = vmatprep.subr.bf16.mxu1 %v4365_v5  ;;  %5888 = vst [vmem:[#allocation34_spill] sm:$0xff] %v4374_v62  ;;  %5889 = vst [vmem:[#allocation77_spill] sm:$0xff] %v4377_v55  ;;  %v4380_v4 = vld [vmem:[#allocation2 + $0x140] sm:$0xff]  ;;  %v4383_v5 = vld [vmem:[#allocation2 + $0x150] sm:$0xff] }
 0x79a   :  { %5890 = vst [vmem:[#allocation78_spill] sm:$0xff] %v4380_v4  ;;  %5891 = vst [vmem:[#allocation79_spill] sm:$0xff] %v4383_v5 }
 0x79c   :  { %1691 = vmatpush1.bf16.msra.mxu0 %v4368_v22  ;;  %1732 = vmatpush1.bf16.msra.mxu1 %v4371_v16  ;;  %v4386_v22 = vld [vmem:[#allocation2 + $0x188] sm:$0xff]  ;;  %v4389_v16 = vld [vmem:[#allocation2 + $0x198] sm:$0xff] }
 0x79d   :  { %1692 = vmatprep.subr.bf16.mxu0 %v4374_v62  ;;  %1733 = vmatprep.subr.bf16.mxu1 %v4377_v55  ;;  %5892 = vst [vmem:[#allocation80_spill] sm:$0xff] %v4386_v22  ;;  %5893 = vst [vmem:[#allocation81_spill] sm:$0xff] %v4389_v16  ;;  %v4392_v62 = vld [vmem:[#allocation2 + $0x180] sm:$0xff]  ;;  %v4395_v55 = vld [vmem:[#allocation2 + $0x190] sm:$0xff] }
 0x79e   :  { %5894 = vst [vmem:[#allocation82_spill] sm:$0xff] %v4392_v62  ;;  %5895 = vst [vmem:[#allocation83_spill] sm:$0xff] %v4395_v55 }
 0x7a0   :  { %1693 = vmatpush1.bf16.msra.mxu0 %v4380_v4  ;;  %1734 = vmatpush1.bf16.msra.mxu1 %v4383_v5  ;;  %v4398_v4 = vld [vmem:[#allocation2 + $0x1c8] sm:$0xff]  ;;  %v4401_v5 = vld [vmem:[#allocation2 + $0x1d8] sm:$0xff] }
 0x7a1   :  { %1694 = vmatprep.subr.bf16.mxu0 %v4386_v22  ;;  %1735 = vmatprep.subr.bf16.mxu1 %v4389_v16  ;;  %5896 = vst [vmem:[#allocation84_spill] sm:$0xff] %v4398_v4  ;;  %5897 = vst [vmem:[#allocation85_spill] sm:$0xff] %v4401_v5  ;;  %v4404_v22 = vld [vmem:[#allocation2 + $0x1c0] sm:$0xff]  ;;  %v4407_v16 = vld [vmem:[#allocation2 + $0x1d0] sm:$0xff] }
 0x7a2   :  { %5898 = vst [vmem:[#allocation86_spill] sm:$0xff] %v4404_v22  ;;  %5899 = vst [vmem:[#allocation87_spill] sm:$0xff] %v4407_v16 }
 0x7a4   :  { %1695 = vmatpush1.bf16.msra.mxu0 %v4392_v62  ;;  %1736 = vmatpush1.bf16.msra.mxu1 %v4395_v55  ;;  %v4410_v62 = vld [vmem:[#allocation2 + $0x208] sm:$0xff]  ;;  %v4413_v55 = vld [vmem:[#allocation2 + $0x218] sm:$0xff] }
 0x7a5   :  { %1696 = vmatprep.subr.bf16.mxu0 %v4398_v4  ;;  %1737 = vmatprep.subr.bf16.mxu1 %v4401_v5  ;;  %5900 = vst [vmem:[#allocation88_spill] sm:$0xff] %v4410_v62  ;;  %5901 = vst [vmem:[#allocation89_spill] sm:$0xff] %v4413_v55  ;;  %v4416_v4 = vld [vmem:[#allocation2 + $0x200] sm:$0xff]  ;;  %v4419_v5 = vld [vmem:[#allocation2 + $0x210] sm:$0xff] }
 0x7a6   :  { %5902 = vst [vmem:[#allocation90_spill] sm:$0xff] %v4416_v4  ;;  %5903 = vst [vmem:[#allocation91_spill] sm:$0xff] %v4419_v5 }
 0x7a8   :  { %1697 = vmatpush1.bf16.msra.mxu0 %v4404_v22  ;;  %1738 = vmatpush1.bf16.msra.mxu1 %v4407_v16  ;;  %v4422_v22 = vld [vmem:[#allocation2 + $0x248] sm:$0xff]  ;;  %v4425_v16 = vld [vmem:[#allocation2 + $0x258] sm:$0xff] }
 0x7a9   :  { %1698 = vmatprep.subr.bf16.mxu0 %v4410_v62  ;;  %1739 = vmatprep.subr.bf16.mxu1 %v4413_v55  ;;  %5904 = vst [vmem:[#allocation92_spill] sm:$0xff] %v4422_v22  ;;  %5905 = vst [vmem:[#allocation93_spill] sm:$0xff] %v4425_v16  ;;  %v4428_v62 = vld [vmem:[#allocation2 + $0x240] sm:$0xff]  ;;  %v4431_v55 = vld [vmem:[#allocation2 + $0x250] sm:$0xff] }
 0x7aa   :  { %5906 = vst [vmem:[#allocation120_spill] sm:$0xff] %v4428_v62  ;;  %5907 = vst [vmem:[#allocation121_spill] sm:$0xff] %v4431_v55 }
 0x7ac   :  { %1699 = vmatpush1.bf16.msra.mxu0 %v4416_v4  ;;  %1740 = vmatpush1.bf16.msra.mxu1 %v4419_v5  ;;  %v4434_v4 = vld [vmem:[#allocation2 + $0x288] sm:$0xff]  ;;  %v4437_v5 = vld [vmem:[#allocation2 + $0x298] sm:$0xff] }
 0x7ad   :  { %1700 = vmatprep.subr.bf16.mxu0 %v4422_v22  ;;  %1741 = vmatprep.subr.bf16.mxu1 %v4425_v16  ;;  %5908 = vst [vmem:[#allocation122_spill] sm:$0xff] %v4434_v4  ;;  %5909 = vst [vmem:[#allocation123_spill] sm:$0xff] %v4437_v5  ;;  %v4440_v22 = vld [vmem:[#allocation2 + $0x280] sm:$0xff]  ;;  %v4443_v16 = vld [vmem:[#allocation2 + $0x290] sm:$0xff] }
 0x7ae   :  { %5910 = vst [vmem:[#allocation124_spill] sm:$0xff] %v4440_v22  ;;  %5911 = vst [vmem:[#allocation125_spill] sm:$0xff] %v4443_v16 }
 0x7b0   :  { %1701 = vmatpush1.bf16.msra.mxu0 %v4428_v62  ;;  %1742 = vmatpush1.bf16.msra.mxu1 %v4431_v55  ;;  %v4446_v62 = vld [vmem:[#allocation2 + $0x2c8] sm:$0xff]  ;;  %v4449_v55 = vld [vmem:[#allocation2 + $0x2d8] sm:$0xff] }
 0x7b1   :  { %1702 = vmatprep.subr.bf16.mxu0 %v4434_v4  ;;  %1743 = vmatprep.subr.bf16.mxu1 %v4437_v5  ;;  %5912 = vst [vmem:[#allocation126_spill] sm:$0xff] %v4446_v62  ;;  %5913 = vst [vmem:[#allocation127_spill] sm:$0xff] %v4449_v55  ;;  %v4452_v4 = vld [vmem:[#allocation2 + $0x2c0] sm:$0xff]  ;;  %v4455_v5 = vld [vmem:[#allocation2 + $0x2d0] sm:$0xff] }
 0x7b2   :  { %5914 = vst [vmem:[#allocation128_spill] sm:$0xff] %v4452_v4  ;;  %5915 = vst [vmem:[#allocation129_spill] sm:$0xff] %v4455_v5 }
 0x7b4   :  { %1703 = vmatpush1.bf16.msra.mxu0 %v4440_v22  ;;  %1744 = vmatpush1.bf16.msra.mxu1 %v4443_v16  ;;  %v4458_v22 = vld [vmem:[#allocation2 + $0x308] sm:$0xff]  ;;  %v4461_v16 = vld [vmem:[#allocation2 + $0x318] sm:$0xff] }
 0x7b5   :  { %1704 = vmatprep.subr.bf16.mxu0 %v4446_v62  ;;  %1745 = vmatprep.subr.bf16.mxu1 %v4449_v55  ;;  %5916 = vst [vmem:[#allocation130_spill] sm:$0xff] %v4458_v22  ;;  %5917 = vst [vmem:[#allocation27_spill] sm:$0xff] %v4461_v16  ;;  %v4464_v62 = vld [vmem:[#allocation2 + $0x300] sm:$0xff]  ;;  %v4467_v55 = vld [vmem:[#allocation2 + $0x310] sm:$0xff] }
 0x7b6   :  { %5918 = vst [vmem:[#allocation29_spill] sm:$0xff] %v4464_v62  ;;  %5919 = vst [vmem:[#allocation35_spill] sm:$0xff] %v4467_v55 }
 0x7b8   :  { %1705 = vmatpush1.bf16.msra.mxu0 %v4452_v4  ;;  %1746 = vmatpush1.bf16.msra.mxu1 %v4455_v5  ;;  %v4470_v4 = vld [vmem:[#allocation2 + $0x348] sm:$0xff]  ;;  %v4473_v5 = vld [vmem:[#allocation2 + $0x358] sm:$0xff] }
 0x7b9   :  { %1706 = vmatprep.subr.bf16.mxu0 %v4458_v22  ;;  %1747 = vmatprep.subr.bf16.mxu1 %v4461_v16  ;;  %5920 = vst [vmem:[#allocation37_spill] sm:$0xff] %v4470_v4  ;;  %5921 = vst [vmem:[#allocation36_spill] sm:$0xff] %v4473_v5  ;;  %v4476_v22 = vld [vmem:[#allocation2 + $0x340] sm:$0xff]  ;;  %v4479_v16 = vld [vmem:[#allocation2 + $0x350] sm:$0xff] }
 0x7ba   :  { %5922 = vst [vmem:[#allocation38_spill] sm:$0xff] %v4476_v22  ;;  %5923 = vst [vmem:[#allocation28_spill] sm:$0xff] %v4479_v16 }
 0x7bc   :  { %1707 = vmatpush1.bf16.msra.mxu0 %v4464_v62  ;;  %1748 = vmatpush1.bf16.msra.mxu1 %v4467_v55  ;;  %v4482_v62 = vld [vmem:[#allocation2 + $0x388] sm:$0xff]  ;;  %v4485_v55 = vld [vmem:[#allocation2 + $0x398] sm:$0xff] }
 0x7bd   :  { %1708 = vmatprep.subr.bf16.mxu0 %v4470_v4  ;;  %1749 = vmatprep.subr.bf16.mxu1 %v4473_v5  ;;  %5924 = vst [vmem:[#allocation30_spill] sm:$0xff] %v4482_v62  ;;  %5925 = vst [vmem:[#allocation94_spill] sm:$0xff] %v4485_v55  ;;  %v4488_v4 = vld [vmem:[#allocation2 + $0x380] sm:$0xff]  ;;  %v4491_v5 = vld [vmem:[#allocation2 + $0x390] sm:$0xff] }
 0x7be   :  { %5926 = vst [vmem:[#allocation95_spill] sm:$0xff] %v4488_v4  ;;  %5927 = vst [vmem:[#allocation96_spill] sm:$0xff] %v4491_v5 }
 0x7c0   :  { %1709 = vmatpush1.bf16.msra.mxu0 %v4476_v22  ;;  %1750 = vmatpush1.bf16.msra.mxu1 %v4479_v16  ;;  %v4494_v22 = vld [vmem:[#allocation2 + $0x3c8] sm:$0xff]  ;;  %v4497_v16 = vld [vmem:[#allocation2 + $0x3d8] sm:$0xff] }
 0x7c1   :  { %1710 = vmatprep.subr.bf16.mxu0 %v4482_v62  ;;  %1751 = vmatprep.subr.bf16.mxu1 %v4485_v55  ;;  %5928 = vst [vmem:[#allocation97_spill] sm:$0xff] %v4494_v22  ;;  %5929 = vst [vmem:[#allocation98_spill] sm:$0xff] %v4497_v16  ;;  %v4500_v62 = vld [vmem:[#allocation2 + $0x3c0] sm:$0xff]  ;;  %v4503_v55 = vld [vmem:[#allocation2 + $0x3d0] sm:$0xff] }
 0x7c2   :  { %5930 = vst [vmem:[#allocation99_spill] sm:$0xff] %v4500_v62  ;;  %5931 = vst [vmem:[#allocation100_spill] sm:$0xff] %v4503_v55 }
 0x7c4   :  { %1711 = vmatpush1.bf16.msra.mxu0 %v4488_v4  ;;  %1752 = vmatpush1.bf16.msra.mxu1 %v4491_v5 }
 0x7c5   :  { %1712 = vmatprep.subr.bf16.mxu0 %v4494_v22  ;;  %1753 = vmatprep.subr.bf16.mxu1 %v4497_v16 }
 0x7c8   :  { %1713 = vmatpush1.bf16.msra.mxu0 %v4500_v62  ;;  %1754 = vmatpush1.bf16.msra.mxu1 %v4503_v55  ;;  %v5934_v55 = vld [vmem:[#allocation40_spill] sm:$0xff] }
 0x7c9   :  { %1764 = vmatprep.subr.bf16.mxu0 %v5821_v20  ;;  %1805 = vmatprep.subr.bf16.mxu1 %v5822_v12 }
 0x81e   :  { %v1505_v5 = vpop.f32.mrb[52].mxu0  ;;  %v1546_v4 = vpop.f32.mrb[52].mxu1 }
 0x81f   :  { %v1639_v22 = vadd.f32 %v1505_v5, %v5932_v0  ;;  %v1507_v3 = vpop.f32.mrb[53].mxu0  ;;  %v1548_v48 = vpop.f32.mrb[53].mxu1  ;;  %v1641_v47 = vadd.f32 %v1546_v4, %v5934_v55 }
 0x820   :  { %v1640_v16 = vadd.f32 %v1507_v3, %v5933_v26  ;;  %v1509_v24 = vpop.f32.mrb[54].mxu0  ;;  %v1550_v28 = vpop.f32.mrb[54].mxu1 }
 0x821   :  { %v1663_v19 = vmul.f32 0.5, %v1639_v22  ;;  %v1510_v62 = vpop.f32.mrb[55].mxu0  ;;  %v1551_v44 = vpop.f32.mrb[55].mxu1 }
 0x822   :  { %v1667_v15 = vmul.f32 0.5, %v1640_v16 }
 0x823   :  { %2381 = vtanh.f32 %v1663_v19 }
 0x824   :  { %2383 = vtanh.f32 %v1667_v15 }
 0x825   :  { %2385 = vtanh.f32 %v1641_v47 }
 0x82d   :  { %v2382_v20 = vpop.eup %2381 }
 0x82e   :  { %v2384_v12 = vpop.eup %2383  ;;  %v1665_v6 = vmul.f32 0.5, %v2382_v20 }
 0x82f   :  { %v1669_v29 = vmul.f32 0.5, %v2384_v12  ;;  %v2386_v5 = vpop.eup %2385 }
 0x830   :  { %v1666_v0 = vadd.f32 0.5, %v1665_v6 }
 0x831   :  { %v1670_v49 = vadd.f32 0.5, %v1669_v29 }
 0x832   :  { %v1677_v46 = vmul.f32 %v2386_v5, %v1666_v0 }
 0x833   :  { %v1676_v3 = vmul.f32 %v1670_v49, %v4234_v54  ;;  %v5935_v54 = vld [vmem:[#allocation42_spill] sm:$0xff] }
 0x835   :  { %v4512_v28 = vadd.f32 %v1677_v46, %v1676_v3  ;;  %v1642_v46 = vadd.f32 %v1548_v48, %v5935_v54 }
 0x837   :  { %v1672_v20 = vmul.f32 0.5, %v1642_v46 }
 0x85e   :  { %v1587_v62 = vpop.f32.mrb[56].mxu0  ;;  %v1628_v44 = vpop.f32.mrb[56].mxu1 }
 0x85f   :  { %v1635_v19 = vadd.f32 %v1587_v62, %v5534_v8  ;;  %v1589_v22 = vpop.f32.mrb[57].mxu0  ;;  %v1630_v55 = vpop.f32.mrb[57].mxu1  ;;  %v1637_v29 = vadd.f32 %v1628_v44, %v5536_v32 }
 0x860   :  { %v1636_v4 = vadd.f32 %v1589_v22, %v5535_v42  ;;  %v1591_v24 = vpop.f32.mrb[58].mxu0  ;;  %v1632_v26 = vpop.f32.mrb[58].mxu1  ;;  %v1638_v49 = vadd.f32 %v1630_v55, %v5538_v7 }
 0x861   :  { %v1643_v47 = vmul.f32 0.5, %v1635_v19  ;;  %v1592_v15 = vpop.f32.mrb[59].mxu0  ;;  %v1633_v6 = vpop.f32.mrb[59].mxu1 }
 0x862   :  { %v1647_v16 = vmul.f32 0.5, %v1636_v4  ;;  %v1652_v12 = vmul.f32 0.5, %v1638_v49 }
 0x863   :  { %2387 = vtanh.f32 %v1643_v47 }
 0x864   :  { %2389 = vtanh.f32 %v1647_v16 }
 0x865   :  { %2391 = vtanh.f32 %v1637_v29 }
 0x866   :  { %2393 = vtanh.f32 %v1672_v20 }
 0x867   :  { %2395 = vtanh.f32 %v1652_v12 }
 0x868   :  { %2397 = vtanh.f32 %v4512_v28 }
 0x86d   :  { %v2388_v0 = vpop.eup %2387 }
 0x86e   :  { %v2390_v5 = vpop.eup %2389  ;;  %v1645_v3 = vmul.f32 0.5, %v2388_v0  ;;  %v5973_v0 = vld [vmem:[#allocation21_spill] sm:$0xff] }
 0x86f   :  { %v1649_v62 = vmul.f32 0.5, %v2390_v5  ;;  %v2392_v22 = vpop.eup %2391  ;;  %v5974_v5 = vld [vmem:[#allocation20_spill] sm:$0xff] }
 0x870   :  { %v1646_v19 = vadd.f32 0.5, %v1645_v3  ;;  %v2394_v55 = vpop.eup %2393  ;;  %v5975_v3 = vld [vmem:[#allocation22_spill] sm:$0xff] }
 0x871   :  { %v1650_v4 = vadd.f32 0.5, %v1649_v62  ;;  %v2396_v26 = vpop.eup %2395  ;;  %v1674_v47 = vmul.f32 0.5, %v2394_v55  ;;  %v5976_v62 = vld [vmem:[#allocation13_spill] sm:$0xff]  ;;  %v5982_v55 = vld [vmem:[#allocation34_spill] sm:$0xff] }
 0x872   :  { %v1657_v24 = vmul.f32 %v2392_v22, %v1646_v19  ;;  %v1654_v15 = vmul.f32 0.5, %v2396_v26  ;;  %v2398_v6 = vpop.eup %2397  ;;  %v5977_v19 = vld [vmem:[#allocation75_spill] sm:$0xff]  ;;  %v5978_v22 = vld [vmem:[#allocation76_spill] sm:$0xff]  ;;  %v5983_v26 = vld [vmem:[#allocation77_spill] sm:$0xff] }
 0x873   :  { %v1656_v44 = vmul.f32 %v1650_v4, %v4243_v60  ;;  %v1675_v16 = vadd.f32 0.5, %v1674_v47  ;;  %v5951_v60 = vld [vmem:[#allocation59_spill] sm:$0xff]  ;;  %v5984_v47 = vld [vmem:[#allocation78_spill] sm:$0xff] }
 0x874   :  { %v1655_v29 = vadd.f32 0.5, %v1654_v15  ;;  %v5979_v4 = vld [vmem:[#allocation31_spill] sm:$0xff] }
 0x875   :  { %v4521_v48 = vadd.f32 %v1657_v24, %v1656_v44  ;;  %v1680_v46 = vmul.f32 %v2398_v6, %v1675_v16  ;;  %v5980_v24 = vld [vmem:[#allocation33_spill] sm:$0xff]  ;;  %v5981_v44 = vld [vmem:[#allocation32_spill] sm:$0xff]  ;;  %v5985_v15 = vld [vmem:[#allocation79_spill] sm:$0xff] }
 0x876   :  { %v5986_v6 = vld [vmem:[#allocation80_spill] sm:$0xff]  ;;  %v5987_v16 = vld [vmem:[#allocation81_spill] sm:$0xff] }
 0x877   :  { %2399 = vtanh.f32 %v4521_v48  ;;  %v4524_v12 = vpack.c.bf16 %v1680_v46, %v1680_v46  ;;  %v5990_v46 = vld [vmem:[#allocation84_spill] sm:$0xff] }
 0x881   :  { %v2400_v54 = vpop.eup %2399 }
 0x882   :  { %v1660_v49 = vmul.f32 %v2400_v54, %v1655_v29  ;;  %v5988_v29 = vld [vmem:[#allocation82_spill] sm:$0xff]  ;;  %v5989_v54 = vld [vmem:[#allocation83_spill] sm:$0xff] }
 0x884   :  { %v1661_v20 = vpack.c.bf16 %v1660_v49, %v1660_v49  ;;  %v5991_v49 = vld [vmem:[#allocation85_spill] sm:$0xff] }
 0x886   :  { %1662 = vst [vmem:[#allocation7 + $0x10] sm:$0xf] %v1661_v20  ;;  %1714 = vmatprep.mubr.bf16.mxu0 %v1661_v20  ;;  %1755 = vmatprep.mubr.bf16.mxu1 %v1661_v20 }
 0x887   :  { %1715 = vmatmul.mubr.bf16.vlgmr.msra.gmra.mrb[60].mxu0 %v4524_v12  ;;  %1756 = vmatmul.mubr.bf16.vlgmr.msra.gmra.mrb[60].mxu1 %v4524_v12 }
 0x888   :  { %1765 = vmatpush1.bf16.msra.mxu0 %v3976_v27  ;;  %1806 = vmatpush1.bf16.msra.mxu1 %v3979_v9  ;;  %v5936_v27 = vld [vmem:[#allocation113_spill] sm:$0xff]  ;;  %v5937_v9 = vld [vmem:[#allocation114_spill] sm:$0xff] }
 0x889   :  { %1796 = vmatprep.mubr.bf16.mxu0 %v1661_v20  ;;  %1837 = vmatprep.mubr.bf16.mxu1 %v1661_v20  ;;  %v5992_v20 = vld [vmem:[#allocation86_spill] sm:$0xff] }
 0x88a   :  { %1766 = vmatprep.subr.bf16.mxu0 %v3982_v10  ;;  %1807 = vmatprep.subr.bf16.mxu1 %v3985_v37  ;;  %v5938_v10 = vld [vmem:[#allocation115_spill] sm:$0xff]  ;;  %v5939_v37 = vld [vmem:[#allocation116_spill] sm:$0xff] }
 0x88c   :  { %1767 = vmatpush1.bf16.msra.mxu0 %v3988_v53  ;;  %1808 = vmatpush1.bf16.msra.mxu1 %v3991_v13  ;;  %v5940_v53 = vld [vmem:[#allocation117_spill] sm:$0xff]  ;;  %v5941_v13 = vld [vmem:[#allocation118_spill] sm:$0xff] }
 0x88d   :  { %1768 = vmatprep.subr.bf16.mxu0 %v3994_v31  ;;  %1809 = vmatprep.subr.bf16.mxu1 %v3997_v36  ;;  %v5942_v31 = vld [vmem:[#allocation119_spill] sm:$0xff] }
 0x88e   :  { %v5943_v36 = vld [vmem:[#allocation51_spill] sm:$0xff] }
 0x890   :  { %1769 = vmatpush1.bf16.msra.mxu0 %v4000_v40  ;;  %1810 = vmatpush1.bf16.msra.mxu1 %v4003_v50  ;;  %v5944_v40 = vld [vmem:[#allocation53_spill] sm:$0xff]  ;;  %v5945_v50 = vld [vmem:[#allocation52_spill] sm:$0xff] }
 0x891   :  { %1770 = vmatprep.subr.bf16.mxu0 %v4006_v51  ;;  %1811 = vmatprep.subr.bf16.mxu1 %v4009_v58  ;;  %v5946_v51 = vld [vmem:[#allocation54_spill] sm:$0xff]  ;;  %v5947_v58 = vld [vmem:[#allocation55_spill] sm:$0xff] }
 0x894   :  { %1771 = vmatpush1.bf16.msra.mxu0 %v4012_v61  ;;  %1812 = vmatpush1.bf16.msra.mxu1 %v4015_v39  ;;  %v5948_v61 = vld [vmem:[#allocation57_spill] sm:$0xff]  ;;  %v5949_v39 = vld [vmem:[#allocation56_spill] sm:$0xff] }
 0x895   :  { %1772 = vmatprep.subr.bf16.mxu0 %v4018_v43  ;;  %1813 = vmatprep.subr.bf16.mxu1 %v5827_v57  ;;  %v5950_v43 = vld [vmem:[#allocation58_spill] sm:$0xff]  ;;  %v5952_v57 = vld [vmem:[#allocation61_spill] sm:$0xff] }
 0x898   :  { %1773 = vmatpush1.bf16.msra.mxu0 %v5828_v63  ;;  %1814 = vmatpush1.bf16.msra.mxu1 %v5829_v35  ;;  %v5953_v63 = vld [vmem:[#allocation60_spill] sm:$0xff]  ;;  %v5954_v35 = vld [vmem:[#allocation62_spill] sm:$0xff] }
 0x899   :  { %1774 = vmatprep.subr.bf16.mxu0 %v5830_v2  ;;  %1815 = vmatprep.subr.bf16.mxu1 %v5831_v11  ;;  %v5955_v2 = vld [vmem:[#allocation63_spill] sm:$0xff]  ;;  %v5956_v11 = vld [vmem:[#allocation65_spill] sm:$0xff] }
 0x89c   :  { %1775 = vmatpush1.bf16.msra.mxu0 %v5832_v33  ;;  %1816 = vmatpush1.bf16.msra.mxu1 %v5833_v34  ;;  %v5957_v33 = vld [vmem:[#allocation64_spill] sm:$0xff]  ;;  %v5958_v34 = vld [vmem:[#allocation66_spill] sm:$0xff] }
 0x89d   :  { %1776 = vmatprep.subr.bf16.mxu0 %v5834_v52  ;;  %1817 = vmatprep.subr.bf16.mxu1 %v5835_v56  ;;  %v5959_v52 = vld [vmem:[#allocation67_spill] sm:$0xff]  ;;  %v5960_v56 = vld [vmem:[#allocation69_spill] sm:$0xff] }
 0x8a0   :  { %1777 = vmatpush1.bf16.msra.mxu0 %v5836_v45  ;;  %1818 = vmatpush1.bf16.msra.mxu1 %v5837_v59  ;;  %v5961_v45 = vld [vmem:[#allocation68_spill] sm:$0xff]  ;;  %v5962_v59 = vld [vmem:[#allocation70_spill] sm:$0xff] }
 0x8a1   :  { %1778 = vmatprep.subr.bf16.mxu0 %v5838_v1  ;;  %1819 = vmatprep.subr.bf16.mxu1 %v5839_v14  ;;  %v5963_v1 = vld [vmem:[#allocation71_spill] sm:$0xff]  ;;  %v5964_v14 = vld [vmem:[#allocation72_spill] sm:$0xff] }
 0x8a4   :  { %1779 = vmatpush1.bf16.msra.mxu0 %v5840_v17  ;;  %1820 = vmatpush1.bf16.msra.mxu1 %v5841_v18  ;;  %v5965_v17 = vld [vmem:[#allocation73_spill] sm:$0xff]  ;;  %v5966_v18 = vld [vmem:[#allocation74_spill] sm:$0xff] }
 0x8a5   :  { %1780 = vmatprep.subr.bf16.mxu0 %v5842_v21  ;;  %1821 = vmatprep.subr.bf16.mxu1 %v5843_v23  ;;  %v5967_v21 = vld [vmem:[#allocation23_spill] sm:$0xff]  ;;  %v5968_v23 = vld [vmem:[#allocation25_spill] sm:$0xff] }
 0x8a8   :  { %1781 = vmatpush1.bf16.msra.mxu0 %v5844_v25  ;;  %1822 = vmatpush1.bf16.msra.mxu1 %v5845_v30  ;;  %v5969_v25 = vld [vmem:[#allocation24_spill] sm:$0xff]  ;;  %v5970_v30 = vld [vmem:[#allocation26_spill] sm:$0xff] }
 0x8a9   :  { %1782 = vmatprep.subr.bf16.mxu0 %v5846_v38  ;;  %1823 = vmatprep.subr.bf16.mxu1 %v5847_v41  ;;  %v5971_v38 = vld [vmem:[#allocation14_spill] sm:$0xff]  ;;  %v5972_v41 = vld [vmem:[#allocation19_spill] sm:$0xff] }
 0x8ac   :  { %1783 = vmatpush1.bf16.msra.mxu0 %v5936_v27  ;;  %1824 = vmatpush1.bf16.msra.mxu1 %v5937_v9  ;;  %v5994_v27 = vld [vmem:[#allocation88_spill] sm:$0xff]  ;;  %v5995_v9 = vld [vmem:[#allocation89_spill] sm:$0xff] }
 0x8ad   :  { %1784 = vmatprep.subr.bf16.mxu0 %v5938_v10  ;;  %1825 = vmatprep.subr.bf16.mxu1 %v5939_v37  ;;  %v5996_v10 = vld [vmem:[#allocation90_spill] sm:$0xff]  ;;  %v5997_v37 = vld [vmem:[#allocation91_spill] sm:$0xff] }
 0x8b0   :  { %1785 = vmatpush1.bf16.msra.mxu0 %v5940_v53  ;;  %1826 = vmatpush1.bf16.msra.mxu1 %v5941_v13  ;;  %v5998_v53 = vld [vmem:[#allocation92_spill] sm:$0xff]  ;;  %v5999_v13 = vld [vmem:[#allocation93_spill] sm:$0xff] }
 0x8b1   :  { %1786 = vmatprep.subr.bf16.mxu0 %v5942_v31  ;;  %1827 = vmatprep.subr.bf16.mxu1 %v5943_v36  ;;  %v6000_v31 = vld [vmem:[#allocation120_spill] sm:$0xff]  ;;  %v6001_v36 = vld [vmem:[#allocation121_spill] sm:$0xff] }
 0x8b4   :  { %1787 = vmatpush1.bf16.msra.mxu0 %v5944_v40  ;;  %1828 = vmatpush1.bf16.msra.mxu1 %v5945_v50  ;;  %v6002_v40 = vld [vmem:[#allocation122_spill] sm:$0xff]  ;;  %v6003_v50 = vld [vmem:[#allocation123_spill] sm:$0xff] }
 0x8b5   :  { %1788 = vmatprep.subr.bf16.mxu0 %v5946_v51  ;;  %1829 = vmatprep.subr.bf16.mxu1 %v5947_v58  ;;  %v6004_v51 = vld [vmem:[#allocation124_spill] sm:$0xff]  ;;  %v6005_v58 = vld [vmem:[#allocation125_spill] sm:$0xff] }
 0x8b8   :  { %1789 = vmatpush1.bf16.msra.mxu0 %v5948_v61  ;;  %1830 = vmatpush1.bf16.msra.mxu1 %v5949_v39  ;;  %v6006_v61 = vld [vmem:[#allocation126_spill] sm:$0xff]  ;;  %v6007_v39 = vld [vmem:[#allocation127_spill] sm:$0xff] }
 0x8b9   :  { %1790 = vmatprep.subr.bf16.mxu0 %v5950_v43  ;;  %1831 = vmatprep.subr.bf16.mxu1 %v5951_v60  ;;  %v6008_v43 = vld [vmem:[#allocation128_spill] sm:$0xff]  ;;  %v6009_v60 = vld [vmem:[#allocation129_spill] sm:$0xff] }
 0x8bc   :  { %1791 = vmatpush1.bf16.msra.mxu0 %v5952_v57  ;;  %1832 = vmatpush1.bf16.msra.mxu1 %v5953_v63  ;;  %v6010_v57 = vld [vmem:[#allocation130_spill] sm:$0xff]  ;;  %v6011_v63 = vld [vmem:[#allocation27_spill] sm:$0xff] }
 0x8bd   :  { %1792 = vmatprep.subr.bf16.mxu0 %v5954_v35  ;;  %1833 = vmatprep.subr.bf16.mxu1 %v5955_v2  ;;  %v6012_v35 = vld [vmem:[#allocation29_spill] sm:$0xff]  ;;  %v6013_v2 = vld [vmem:[#allocation35_spill] sm:$0xff] }
 0x8c0   :  { %1793 = vmatpush1.bf16.msra.mxu0 %v5956_v11  ;;  %1834 = vmatpush1.bf16.msra.mxu1 %v5957_v33  ;;  %v6014_v11 = vld [vmem:[#allocation37_spill] sm:$0xff]  ;;  %v6015_v33 = vld [vmem:[#allocation36_spill] sm:$0xff] }
 0x8c1   :  { %1794 = vmatprep.subr.bf16.mxu0 %v5958_v34  ;;  %1835 = vmatprep.subr.bf16.mxu1 %v5959_v52  ;;  %v6016_v34 = vld [vmem:[#allocation38_spill] sm:$0xff]  ;;  %v6017_v52 = vld [vmem:[#allocation28_spill] sm:$0xff] }
 0x8c4   :  { %1795 = vmatpush1.bf16.msra.mxu0 %v5960_v56  ;;  %1836 = vmatpush1.bf16.msra.mxu1 %v5961_v45  ;;  %v6018_v56 = vld [vmem:[#allocation30_spill] sm:$0xff] }
 0x8c5   :  { %1893 = vmatprep.subr.bf16.mxu0 %v5962_v59  ;;  %1934 = vmatprep.subr.bf16.mxu1 %v5963_v1  ;;  %v6019_v45 = vld [vmem:[#allocation94_spill] sm:$0xff]  ;;  %v6020_v59 = vld [vmem:[#allocation95_spill] sm:$0xff]  ;;  %v6021_v1 = vld [vmem:[#allocation96_spill] sm:$0xff] }
 0x8c7   :  { %1797 = vmatmul.mubr.bf16.vlgmr.msra.gmra.mrb[64].mxu0 %v4524_v12  ;;  %1838 = vmatmul.mubr.bf16.vlgmr.msra.gmra.mrb[64].mxu1 %v4524_v12  ;;  %v5993_v12 = vld [vmem:[#allocation87_spill] sm:$0xff] }
 0x8c8   :  { %1894 = vmatpush1.bf16.msra.mxu0 %v5964_v14  ;;  %1935 = vmatpush1.bf16.msra.mxu1 %v5965_v17  ;;  %v6022_v14 = vld [vmem:[#allocation97_spill] sm:$0xff]  ;;  %v6023_v17 = vld [vmem:[#allocation98_spill] sm:$0xff] }
 0x8c9   :  { %1895 = vmatprep.subr.bf16.mxu0 %v5966_v18  ;;  %1936 = vmatprep.subr.bf16.mxu1 %v5967_v21  ;;  %v6024_v18 = vld [vmem:[#allocation99_spill] sm:$0xff]  ;;  %v6025_v21 = vld [vmem:[#allocation100_spill] sm:$0xff] }
 0x8cc   :  { %1896 = vmatpush1.bf16.msra.mxu0 %v5968_v23  ;;  %1937 = vmatpush1.bf16.msra.mxu1 %v5969_v25  ;;  %v4656_v23 = vld [vmem:[#allocation2 + $0x28] sm:$0xff]  ;;  %v4659_v25 = vld [vmem:[#allocation2 + $0x38] sm:$0xff] }
 0x8cd   :  { %1897 = vmatprep.subr.bf16.mxu0 %v5970_v30  ;;  %1938 = vmatprep.subr.bf16.mxu1 %v5971_v38 }
 0x8d0   :  { %1898 = vmatpush1.bf16.msra.mxu0 %v5972_v41  ;;  %1939 = vmatpush1.bf16.msra.mxu1 %v5973_v0  ;;  %v6026_v41 = vld [vmem:[#allocation43_spill] sm:$0xff] }
 0x8d1   :  { %1899 = vmatprep.subr.bf16.mxu0 %v5974_v5  ;;  %1940 = vmatprep.subr.bf16.mxu1 %v5975_v3 }
 0x8d4   :  { %1900 = vmatpush1.bf16.msra.mxu0 %v5976_v62  ;;  %1941 = vmatpush1.bf16.msra.mxu1 %v5977_v19  ;;  %v6027_v62 = vld [vmem:[#allocation45_spill] sm:$0xff] }
 0x8d5   :  { %1901 = vmatprep.subr.bf16.mxu0 %v5978_v22  ;;  %1942 = vmatprep.subr.bf16.mxu1 %v5979_v4 }
 0x8d8   :  { %1902 = vmatpush1.bf16.msra.mxu0 %v5980_v24  ;;  %1943 = vmatpush1.bf16.msra.mxu1 %v5981_v44 }
 0x8d9   :  { %1903 = vmatprep.subr.bf16.mxu0 %v5982_v55  ;;  %1944 = vmatprep.subr.bf16.mxu1 %v5983_v26 }
 0x8dc   :  { %1904 = vmatpush1.bf16.msra.mxu0 %v5984_v47  ;;  %1945 = vmatpush1.bf16.msra.mxu1 %v5985_v15  ;;  %v6028_v47 = vld [vmem:[#allocation44_spill] sm:$0xff] }
 0x8dd   :  { %1905 = vmatprep.subr.bf16.mxu0 %v5986_v6  ;;  %1946 = vmatprep.subr.bf16.mxu1 %v5987_v16 }
 0x8e0   :  { %1906 = vmatpush1.bf16.msra.mxu0 %v5988_v29  ;;  %1947 = vmatpush1.bf16.msra.mxu1 %v5989_v54 }
 0x8e1   :  { %1907 = vmatprep.subr.bf16.mxu0 %v5990_v46  ;;  %1948 = vmatprep.subr.bf16.mxu1 %v5991_v49 }
 0x8e4   :  { %1908 = vmatpush1.bf16.msra.mxu0 %v5992_v20  ;;  %1949 = vmatpush1.bf16.msra.mxu1 %v5993_v12 }
 0x8e5   :  { %1909 = vmatprep.subr.bf16.mxu0 %v5994_v27  ;;  %1950 = vmatprep.subr.bf16.mxu1 %v5995_v9 }
 0x8e8   :  { %1910 = vmatpush1.bf16.msra.mxu0 %v5996_v10  ;;  %1951 = vmatpush1.bf16.msra.mxu1 %v5997_v37 }
 0x8e9   :  { %1911 = vmatprep.subr.bf16.mxu0 %v5998_v53  ;;  %1952 = vmatprep.subr.bf16.mxu1 %v5999_v13 }
 0x8ec   :  { %1912 = vmatpush1.bf16.msra.mxu0 %v6000_v31  ;;  %1953 = vmatpush1.bf16.msra.mxu1 %v6001_v36 }
 0x8ed   :  { %1913 = vmatprep.subr.bf16.mxu0 %v6002_v40  ;;  %1954 = vmatprep.subr.bf16.mxu1 %v6003_v50 }
 0x8f0   :  { %1914 = vmatpush1.bf16.msra.mxu0 %v6004_v51  ;;  %1955 = vmatpush1.bf16.msra.mxu1 %v6005_v58 }
 0x8f1   :  { %1915 = vmatprep.subr.bf16.mxu0 %v6006_v61  ;;  %1956 = vmatprep.subr.bf16.mxu1 %v6007_v39 }
 0x8f4   :  { %1916 = vmatpush1.bf16.msra.mxu0 %v6008_v43  ;;  %1957 = vmatpush1.bf16.msra.mxu1 %v6009_v60 }
 0x8f5   :  { %1917 = vmatprep.subr.bf16.mxu0 %v6010_v57  ;;  %1958 = vmatprep.subr.bf16.mxu1 %v6011_v63 }
 0x8f8   :  { %1918 = vmatpush1.bf16.msra.mxu0 %v6012_v35  ;;  %1959 = vmatpush1.bf16.msra.mxu1 %v6013_v2 }
 0x8f9   :  { %1919 = vmatprep.subr.bf16.mxu0 %v6014_v11  ;;  %1960 = vmatprep.subr.bf16.mxu1 %v6015_v33 }
 0x8fc   :  { %1920 = vmatpush1.bf16.msra.mxu0 %v6016_v34  ;;  %1961 = vmatpush1.bf16.msra.mxu1 %v6017_v52 }
 0x8fd   :  { %1921 = vmatprep.subr.bf16.mxu0 %v6018_v56  ;;  %1962 = vmatprep.subr.bf16.mxu1 %v6019_v45 }
 0x900   :  { %1922 = vmatpush1.bf16.msra.mxu0 %v6020_v59  ;;  %1963 = vmatpush1.bf16.msra.mxu1 %v6021_v1 }
 0x901   :  { %1923 = vmatprep.subr.bf16.mxu0 %v6022_v14  ;;  %1964 = vmatprep.subr.bf16.mxu1 %v6023_v17 }
 0x904   :  { %1924 = vmatpush1.bf16.msra.mxu0 %v6024_v18  ;;  %1965 = vmatpush1.bf16.msra.mxu1 %v6025_v21 }
 0x905   :  { %1975 = vmatprep.subr.bf16.mxu0 %v4656_v23  ;;  %2016 = vmatprep.subr.bf16.mxu1 %v4659_v25 }
 0x95a   :  { %v1716_v30 = vpop.f32.mrb[60].mxu0  ;;  %v1757_v38 = vpop.f32.mrb[60].mxu1 }
 0x95b   :  { %v1850_v0 = vadd.f32 %v1716_v30, %v6026_v41  ;;  %v1718_v5 = vpop.f32.mrb[61].mxu0  ;;  %v1759_v3 = vpop.f32.mrb[61].mxu1  ;;  %v1852_v15 = vadd.f32 %v1757_v38, %v6028_v47  ;;  %v4700_v47 = vld [vmem:[#allocation2 + $0xa8] sm:$0xff] }
 0x95c   :  { %v1851_v19 = vadd.f32 %v1718_v5, %v6027_v62  ;;  %v1720_v22 = vpop.f32.mrb[62].mxu0  ;;  %v1761_v4 = vpop.f32.mrb[62].mxu1 }
 0x95d   :  { %v1874_v24 = vmul.f32 0.5, %v1850_v0  ;;  %v1721_v44 = vpop.f32.mrb[63].mxu0  ;;  %v1762_v55 = vpop.f32.mrb[63].mxu1  ;;  %v4685_v4 = vld [vmem:[#allocation2 + $0x30] sm:$0xff] }
 0x95e   :  { %v1878_v26 = vmul.f32 0.5, %v1851_v19  ;;  %v4691_v44 = vld [vmem:[#allocation2 + $0x78] sm:$0xff]  ;;  %v4694_v55 = vld [vmem:[#allocation2 + $0x60] sm:$0xff] }
 0x95f   :  { %2401 = vtanh.f32 %v1874_v24  ;;  %v4688_v24 = vld [vmem:[#allocation2 + $0x68] sm:$0xff] }
 0x960   :  { %2403 = vtanh.f32 %v1878_v26  ;;  %v4697_v26 = vld [vmem:[#allocation2 + $0x70] sm:$0xff] }
 0x961   :  { %2405 = vtanh.f32 %v1852_v15  ;;  %v4703_v15 = vld [vmem:[#allocation2 + $0xb8] sm:$0xff] }
 0x969   :  { %v2402_v6 = vpop.eup %2401 }
 0x96a   :  { %v2404_v16 = vpop.eup %2403  ;;  %v1876_v29 = vmul.f32 0.5, %v2402_v6  ;;  %v4706_v6 = vld [vmem:[#allocation2 + $0xa0] sm:$0xff] }
 0x96b   :  { %v1880_v54 = vmul.f32 0.5, %v2404_v16  ;;  %v2406_v49 = vpop.eup %2405  ;;  %v4709_v16 = vld [vmem:[#allocation2 + $0xb0] sm:$0xff] }
 0x96c   :  { %v1877_v46 = vadd.f32 0.5, %v1876_v29  ;;  %v4712_v29 = vld [vmem:[#allocation2 + $0xe8] sm:$0xff] }
 0x96d   :  { %v1881_v20 = vadd.f32 0.5, %v1880_v54  ;;  %v4715_v54 = vld [vmem:[#allocation2 + $0xf8] sm:$0xff] }
 0x96e   :  { %v1888_v12 = vmul.f32 %v2406_v49, %v1877_v46  ;;  %v4718_v46 = vld [vmem:[#allocation2 + $0xe0] sm:$0xff]  ;;  %v4721_v49 = vld [vmem:[#allocation2 + $0xf0] sm:$0xff] }
 0x96f   :  { %v1887_v27 = vmul.f32 %v1881_v20, %v4512_v28  ;;  %v6030_v28 = vld [vmem:[#allocation46_spill] sm:$0xff] }
 0x970   :  { %v1853_v60 = vadd.f32 %v1759_v3, %v6030_v28  ;;  %v4724_v20 = vld [vmem:[#allocation2 + $0x128] sm:$0xff] }
 0x971   :  { %v4666_v9 = vadd.f32 %v1888_v12, %v1887_v27  ;;  %v4727_v12 = vld [vmem:[#allocation2 + $0x138] sm:$0xff]  ;;  %v4730_v27 = vld [vmem:[#allocation2 + $0x120] sm:$0xff]  ;;  %v4772_v28 = vld [vmem:[#allocation2 + $0x228] sm:$0xff] }
 0x972   :  { %v1883_v63 = vmul.f32 0.5, %v1853_v60  ;;  %v4775_v60 = vld [vmem:[#allocation2 + $0x238] sm:$0xff] }
 0x973   :  { %6029 = vst [vmem:[#allocation101_spill] sm:$0xff] %v4666_v9 }
 0x99a   :  { %v1798_v10 = vpop.f32.mrb[64].mxu0  ;;  %v1839_v37 = vpop.f32.mrb[64].mxu1 }
 0x99b   :  { %v1846_v53 = vadd.f32 %v1798_v10, %v5534_v8  ;;  %v1800_v13 = vpop.f32.mrb[65].mxu0  ;;  %v1841_v31 = vpop.f32.mrb[65].mxu1  ;;  %v1848_v43 = vadd.f32 %v1839_v37, %v5536_v32  ;;  %v4733_v10 = vld [vmem:[#allocation2 + $0x130] sm:$0xff]  ;;  %v4736_v37 = vld [vmem:[#allocation2 + $0x168] sm:$0xff]  ;;  %v4859_v8 = vld [vmem:[#allocation2 + $0x3f8] sm:$0xff] }
 0x99c   :  { %v1847_v36 = vadd.f32 %v1800_v13, %v5535_v42  ;;  %v1802_v40 = vpop.f32.mrb[66].mxu0  ;;  %v1843_v50 = vpop.f32.mrb[66].mxu1  ;;  %v1849_v57 = vadd.f32 %v1841_v31, %v5538_v7  ;;  %v4742_v13 = vld [vmem:[#allocation2 + $0x160] sm:$0xff]  ;;  %v4745_v31 = vld [vmem:[#allocation2 + $0x170] sm:$0xff]  ;;  %v4856_v42 = vld [vmem:[#allocation2 + $0x3e8] sm:$0xff] }
 0x99d   :  { %v1854_v51 = vmul.f32 0.5, %v1846_v53  ;;  %v1803_v58 = vpop.f32.mrb[67].mxu0  ;;  %v1844_v61 = vpop.f32.mrb[67].mxu1  ;;  %v4739_v53 = vld [vmem:[#allocation2 + $0x178] sm:$0xff]  ;;  %v4754_v50 = vld [vmem:[#allocation2 + $0x1a0] sm:$0xff]  ;;  %v4853_v32 = vld [vmem:[#allocation2 + $0x3b0] sm:$0xff] }
 0x99e   :  { %v1858_v39 = vmul.f32 0.5, %v1847_v36  ;;  %v1863_v35 = vmul.f32 0.5, %v1849_v57  ;;  %v4748_v36 = vld [vmem:[#allocation2 + $0x1a8] sm:$0xff]  ;;  %v4751_v40 = vld [vmem:[#allocation2 + $0x1b8] sm:$0xff]  ;;  %v4778_v57 = vld [vmem:[#allocation2 + $0x220] sm:$0xff] }
 0x99f   :  { %2407 = vtanh.f32 %v1854_v51  ;;  %v4757_v51 = vld [vmem:[#allocation2 + $0x1b0] sm:$0xff]  ;;  %v4760_v58 = vld [vmem:[#allocation2 + $0x1e8] sm:$0xff]  ;;  %v4763_v61 = vld [vmem:[#allocation2 + $0x1f8] sm:$0xff] }
 0x9a0   :  { %2409 = vtanh.f32 %v1858_v39  ;;  %v4766_v39 = vld [vmem:[#allocation2 + $0x1e0] sm:$0xff] }
 0x9a1   :  { %2411 = vtanh.f32 %v1848_v43  ;;  %v4769_v43 = vld [vmem:[#allocation2 + $0x1f0] sm:$0xff]  ;;  %v4850_v7 = vld [vmem:[#allocation2 + $0x3a0] sm:$0xff] }
 0x9a2   :  { %2413 = vtanh.f32 %v1883_v63  ;;  %v4781_v63 = vld [vmem:[#allocation2 + $0x230] sm:$0xff] }
 0x9a3   :  { %2415 = vtanh.f32 %v1863_v35  ;;  %v4784_v35 = vld [vmem:[#allocation2 + $0x268] sm:$0xff] }
 0x9a4   :  { %2417 = vtanh.f32 %v4666_v9  ;;  %v4862_v9 = vld [vmem:[#allocation2 + $0x3e0] sm:$0xff] }
 0x9a9   :  { %v2408_v2 = vpop.eup %2407 }
 0x9aa   :  { %v2410_v11 = vpop.eup %2409  ;;  %v1856_v33 = vmul.f32 0.5, %v2408_v2  ;;  %v4787_v2 = vld [vmem:[#allocation2 + $0x278] sm:$0xff] }
 0x9ab   :  { %v1860_v34 = vmul.f32 0.5, %v2410_v11  ;;  %v2412_v56 = vpop.eup %2411  ;;  %v4790_v11 = vld [vmem:[#allocation2 + $0x260] sm:$0xff] }
 0x9ac   :  { %v1857_v52 = vadd.f32 0.5, %v1856_v33  ;;  %v2414_v17 = vpop.eup %2413  ;;  %v4793_v33 = vld [vmem:[#allocation2 + $0x270] sm:$0xff] }
 0x9ad   :  { %v1861_v45 = vadd.f32 0.5, %v1860_v34  ;;  %v2416_v18 = vpop.eup %2415  ;;  %v1885_v21 = vmul.f32 0.5, %v2414_v17  ;;  %v4796_v34 = vld [vmem:[#allocation2 + $0x2a8] sm:$0xff]  ;;  %v4814_v17 = vld [vmem:[#allocation2 + $0x2e0] sm:$0xff] }
 0x9ae   :  { %v1868_v59 = vmul.f32 %v2412_v56, %v1857_v52  ;;  %v1865_v30 = vmul.f32 0.5, %v2416_v18  ;;  %v2418_v38 = vpop.eup %2417  ;;  %v4799_v52 = vld [vmem:[#allocation2 + $0x2b8] sm:$0xff]  ;;  %v4802_v56 = vld [vmem:[#allocation2 + $0x2a0] sm:$0xff]  ;;  %v4817_v18 = vld [vmem:[#allocation2 + $0x2f0] sm:$0xff] }
 0x9af   :  { %v1867_v1 = vmul.f32 %v1861_v45, %v4521_v48  ;;  %v1886_v41 = vadd.f32 0.5, %v1885_v21  ;;  %v4682_v48 = vld [vmem:[#allocation2 + $0x20] sm:$0xff]  ;;  %v4805_v45 = vld [vmem:[#allocation2 + $0x2b0] sm:$0xff]  ;;  %v4820_v21 = vld [vmem:[#allocation2 + $0x328] sm:$0xff] }
 0x9b0   :  { %v1866_v0 = vadd.f32 0.5, %v1865_v30  ;;  %v4823_v30 = vld [vmem:[#allocation2 + $0x338] sm:$0xff] }
 0x9b1   :  { %v4675_v14 = vadd.f32 %v1868_v59, %v1867_v1  ;;  %v1891_v3 = vmul.f32 %v2418_v38, %v1886_v41  ;;  %v4808_v59 = vld [vmem:[#allocation2 + $0x2e8] sm:$0xff]  ;;  %v4811_v1 = vld [vmem:[#allocation2 + $0x2f8] sm:$0xff]  ;;  %v4826_v38 = vld [vmem:[#allocation2 + $0x320] sm:$0xff] }
 0x9b2   :  { %v4829_v41 = vld [vmem:[#allocation2 + $0x330] sm:$0xff] }
 0x9b3   :  { %6031 = vst [vmem:[#allocation102_spill] sm:$0xff] %v4675_v14  ;;  %2419 = vtanh.f32 %v4675_v14  ;;  %v4678_v22 = vpack.c.bf16 %v1891_v3, %v1891_v3  ;;  %v4838_v3 = vld [vmem:[#allocation2 + $0x360] sm:$0xff]  ;;  %v4847_v14 = vld [vmem:[#allocation2 + $0x3b8] sm:$0xff] }
 0x9b4   :  { %6032 = vst [vmem:[#allocation103_spill] sm:$0xff] %v4847_v14 }
 0x9bd   :  { %v2420_v5 = vpop.eup %2419 }
 0x9be   :  { %v1871_v62 = vmul.f32 %v2420_v5, %v1866_v0  ;;  %v4832_v0 = vld [vmem:[#allocation2 + $0x368] sm:$0xff]  ;;  %v4835_v5 = vld [vmem:[#allocation2 + $0x378] sm:$0xff] }
 0x9c0   :  { %v1872_v19 = vpack.c.bf16 %v1871_v62, %v1871_v62  ;;  %v4841_v62 = vld [vmem:[#allocation2 + $0x370] sm:$0xff] }
 0x9c2   :  { %1873 = vst [vmem:[#allocation7 + $0x14] sm:$0xf] %v1872_v19  ;;  %1925 = vmatprep.mubr.bf16.mxu0 %v1872_v19  ;;  %1966 = vmatprep.mubr.bf16.mxu1 %v1872_v19 }
 0x9c3   :  { %1926 = vmatmul.mubr.bf16.vlgmr.msra.gmra.mrb[68].mxu0 %v4678_v22  ;;  %1967 = vmatmul.mubr.bf16.vlgmr.msra.gmra.mrb[68].mxu1 %v4678_v22 }
 0x9c4   :  { %1976 = vmatpush1.bf16.msra.mxu0 %v4682_v48  ;;  %2017 = vmatpush1.bf16.msra.mxu1 %v4685_v4 }
 0x9c5   :  { %2007 = vmatprep.mubr.bf16.mxu0 %v1872_v19  ;;  %2048 = vmatprep.mubr.bf16.mxu1 %v1872_v19  ;;  %v4844_v19 = vld [vmem:[#allocation2 + $0x3a8] sm:$0xff] }
 0x9c6   :  { %1977 = vmatprep.subr.bf16.mxu0 %v4688_v24  ;;  %2018 = vmatprep.subr.bf16.mxu1 %v4691_v44 }
 0x9c8   :  { %1978 = vmatpush1.bf16.msra.mxu0 %v4694_v55  ;;  %2019 = vmatpush1.bf16.msra.mxu1 %v4697_v26 }
 0x9c9   :  { %1979 = vmatprep.subr.bf16.mxu0 %v4700_v47  ;;  %2020 = vmatprep.subr.bf16.mxu1 %v4703_v15 }
 0x9cc   :  { %1980 = vmatpush1.bf16.msra.mxu0 %v4706_v6  ;;  %2021 = vmatpush1.bf16.msra.mxu1 %v4709_v16 }
 0x9cd   :  { %1981 = vmatprep.subr.bf16.mxu0 %v4712_v29  ;;  %2022 = vmatprep.subr.bf16.mxu1 %v4715_v54 }
 0x9d0   :  { %1982 = vmatpush1.bf16.msra.mxu0 %v4718_v46  ;;  %2023 = vmatpush1.bf16.msra.mxu1 %v4721_v49 }
 0x9d1   :  { %1983 = vmatprep.subr.bf16.mxu0 %v4724_v20  ;;  %2024 = vmatprep.subr.bf16.mxu1 %v4727_v12 }
 0x9d4   :  { %1984 = vmatpush1.bf16.msra.mxu0 %v4730_v27  ;;  %2025 = vmatpush1.bf16.msra.mxu1 %v4733_v10 }
 0x9d5   :  { %1985 = vmatprep.subr.bf16.mxu0 %v4736_v37  ;;  %2026 = vmatprep.subr.bf16.mxu1 %v4739_v53 }
 0x9d8   :  { %1986 = vmatpush1.bf16.msra.mxu0 %v4742_v13  ;;  %2027 = vmatpush1.bf16.msra.mxu1 %v4745_v31 }
 0x9d9   :  { %1987 = vmatprep.subr.bf16.mxu0 %v4748_v36  ;;  %2028 = vmatprep.subr.bf16.mxu1 %v4751_v40 }
 0x9dc   :  { %1988 = vmatpush1.bf16.msra.mxu0 %v4754_v50  ;;  %2029 = vmatpush1.bf16.msra.mxu1 %v4757_v51 }
 0x9dd   :  { %1989 = vmatprep.subr.bf16.mxu0 %v4760_v58  ;;  %2030 = vmatprep.subr.bf16.mxu1 %v4763_v61 }
 0x9e0   :  { %1990 = vmatpush1.bf16.msra.mxu0 %v4766_v39  ;;  %2031 = vmatpush1.bf16.msra.mxu1 %v4769_v43 }
 0x9e1   :  { %1991 = vmatprep.subr.bf16.mxu0 %v4772_v28  ;;  %2032 = vmatprep.subr.bf16.mxu1 %v4775_v60 }
 0x9e4   :  { %1992 = vmatpush1.bf16.msra.mxu0 %v4778_v57  ;;  %2033 = vmatpush1.bf16.msra.mxu1 %v4781_v63 }
 0x9e5   :  { %1993 = vmatprep.subr.bf16.mxu0 %v4784_v35  ;;  %2034 = vmatprep.subr.bf16.mxu1 %v4787_v2 }
 0x9e8   :  { %1994 = vmatpush1.bf16.msra.mxu0 %v4790_v11  ;;  %2035 = vmatpush1.bf16.msra.mxu1 %v4793_v33 }
 0x9e9   :  { %1995 = vmatprep.subr.bf16.mxu0 %v4796_v34  ;;  %2036 = vmatprep.subr.bf16.mxu1 %v4799_v52 }
 0x9ec   :  { %1996 = vmatpush1.bf16.msra.mxu0 %v4802_v56  ;;  %2037 = vmatpush1.bf16.msra.mxu1 %v4805_v45 }
 0x9ed   :  { %1997 = vmatprep.subr.bf16.mxu0 %v4808_v59  ;;  %2038 = vmatprep.subr.bf16.mxu1 %v4811_v1 }
 0x9f0   :  { %1998 = vmatpush1.bf16.msra.mxu0 %v4814_v17  ;;  %2039 = vmatpush1.bf16.msra.mxu1 %v4817_v18 }
 0x9f1   :  { %1999 = vmatprep.subr.bf16.mxu0 %v4820_v21  ;;  %2040 = vmatprep.subr.bf16.mxu1 %v4823_v30 }
 0x9f4   :  { %2000 = vmatpush1.bf16.msra.mxu0 %v4826_v38  ;;  %2041 = vmatpush1.bf16.msra.mxu1 %v4829_v41 }
 0x9f5   :  { %2001 = vmatprep.subr.bf16.mxu0 %v4832_v0  ;;  %2042 = vmatprep.subr.bf16.mxu1 %v4835_v5 }
 0x9f8   :  { %2002 = vmatpush1.bf16.msra.mxu0 %v4838_v3  ;;  %2043 = vmatpush1.bf16.msra.mxu1 %v4841_v62 }
 0x9f9   :  { %2003 = vmatprep.subr.bf16.mxu0 %v4844_v19  ;;  %2044 = vmatprep.subr.bf16.mxu1 %v4847_v14  ;;  %v4865_v14 = vld [vmem:[#allocation2 + $0x3f0] sm:$0xff] }
 0x9fc   :  { %2004 = vmatpush1.bf16.msra.mxu0 %v4850_v7  ;;  %2045 = vmatpush1.bf16.msra.mxu1 %v4853_v32 }
 0x9fd   :  { %2005 = vmatprep.subr.bf16.mxu0 %v4856_v42  ;;  %2046 = vmatprep.subr.bf16.mxu1 %v4859_v8 }
 0xa00   :  { %2006 = vmatpush1.bf16.msra.mxu0 %v4862_v9  ;;  %2047 = vmatpush1.bf16.msra.mxu1 %v4865_v14 }
 0xa01   :  { %2104 = vmatprep.subr.bf16.mxu0 %v4656_v23  ;;  %2145 = vmatprep.subr.bf16.mxu1 %v4659_v25  ;;  %v6033_v23 = vld [vmem:[#allocation103_spill] sm:$0xff] }
 0xa03   :  { %2008 = vmatmul.mubr.bf16.vlgmr.msra.gmra.mrb[72].mxu0 %v4678_v22  ;;  %2049 = vmatmul.mubr.bf16.vlgmr.msra.gmra.mrb[72].mxu1 %v4678_v22 }
 0xa04   :  { %2105 = vmatpush1.bf16.msra.mxu0 %v4682_v48  ;;  %2146 = vmatpush1.bf16.msra.mxu1 %v4685_v4  ;;  %v6034_v48 = vld [vmem:[#allocation47_spill] sm:$0xff] }
 0xa05   :  { %2106 = vmatprep.subr.bf16.mxu0 %v4688_v24  ;;  %2147 = vmatprep.subr.bf16.mxu1 %v4691_v44 }
 0xa08   :  { %2107 = vmatpush1.bf16.msra.mxu0 %v4694_v55  ;;  %2148 = vmatpush1.bf16.msra.mxu1 %v4697_v26  ;;  %v6035_v55 = vld [vmem:[#allocation49_spill] sm:$0xff] }
 0xa09   :  { %2108 = vmatprep.subr.bf16.mxu0 %v4700_v47  ;;  %2149 = vmatprep.subr.bf16.mxu1 %v4703_v15 }
 0xa0c   :  { %2109 = vmatpush1.bf16.msra.mxu0 %v4706_v6  ;;  %2150 = vmatpush1.bf16.msra.mxu1 %v4709_v16 }
 0xa0d   :  { %2110 = vmatprep.subr.bf16.mxu0 %v4712_v29  ;;  %2151 = vmatprep.subr.bf16.mxu1 %v4715_v54 }
 0xa10   :  { %2111 = vmatpush1.bf16.msra.mxu0 %v4718_v46  ;;  %2152 = vmatpush1.bf16.msra.mxu1 %v4721_v49 }
 0xa11   :  { %2112 = vmatprep.subr.bf16.mxu0 %v4724_v20  ;;  %2153 = vmatprep.subr.bf16.mxu1 %v4727_v12 }
 0xa14   :  { %2113 = vmatpush1.bf16.msra.mxu0 %v4730_v27  ;;  %2154 = vmatpush1.bf16.msra.mxu1 %v4733_v10 }
 0xa15   :  { %2114 = vmatprep.subr.bf16.mxu0 %v4736_v37  ;;  %2155 = vmatprep.subr.bf16.mxu1 %v4739_v53  ;;  %v6038_v53 = vld [vmem:[#allocation101_spill] sm:$0xff] }
 0xa18   :  { %2115 = vmatpush1.bf16.msra.mxu0 %v4742_v13  ;;  %2156 = vmatpush1.bf16.msra.mxu1 %v4745_v31 }
 0xa19   :  { %2116 = vmatprep.subr.bf16.mxu0 %v4748_v36  ;;  %2157 = vmatprep.subr.bf16.mxu1 %v4751_v40 }
 0xa1c   :  { %2117 = vmatpush1.bf16.msra.mxu0 %v4754_v50  ;;  %2158 = vmatpush1.bf16.msra.mxu1 %v4757_v51 }
 0xa1d   :  { %2118 = vmatprep.subr.bf16.mxu0 %v4760_v58  ;;  %2159 = vmatprep.subr.bf16.mxu1 %v4763_v61 }
 0xa20   :  { %2119 = vmatpush1.bf16.msra.mxu0 %v4766_v39  ;;  %2160 = vmatpush1.bf16.msra.mxu1 %v4769_v43  ;;  %v6039_v43 = vld [vmem:[#allocation15_spill] sm:$0xff] }
 0xa21   :  { %2120 = vmatprep.subr.bf16.mxu0 %v4772_v28  ;;  %2161 = vmatprep.subr.bf16.mxu1 %v4775_v60 }
 0xa24   :  { %2121 = vmatpush1.bf16.msra.mxu0 %v4778_v57  ;;  %2162 = vmatpush1.bf16.msra.mxu1 %v4781_v63  ;;  %v6040_v63 = vld [vmem:[#allocation17_spill] sm:$0xff] }
 0xa25   :  { %2122 = vmatprep.subr.bf16.mxu0 %v4784_v35  ;;  %2163 = vmatprep.subr.bf16.mxu1 %v4787_v2 }
 0xa28   :  { %2123 = vmatpush1.bf16.msra.mxu0 %v4790_v11  ;;  %2164 = vmatpush1.bf16.msra.mxu1 %v4793_v33 }
 0xa29   :  { %2124 = vmatprep.subr.bf16.mxu0 %v4796_v34  ;;  %2165 = vmatprep.subr.bf16.mxu1 %v4799_v52 }
 0xa2c   :  { %2125 = vmatpush1.bf16.msra.mxu0 %v4802_v56  ;;  %2166 = vmatpush1.bf16.msra.mxu1 %v4805_v45  ;;  %v6041_v45 = vld [vmem:[#allocation16_spill] sm:$0xff] }
 0xa2d   :  { %2126 = vmatprep.subr.bf16.mxu0 %v4808_v59  ;;  %2167 = vmatprep.subr.bf16.mxu1 %v4811_v1  ;;  %v6042_v1 = vld [vmem:[#allocation18_spill] sm:$0xff] }
 0xa30   :  { %2127 = vmatpush1.bf16.msra.mxu0 %v4814_v17  ;;  %2168 = vmatpush1.bf16.msra.mxu1 %v4817_v18 }
 0xa31   :  { %2128 = vmatprep.subr.bf16.mxu0 %v4820_v21  ;;  %2169 = vmatprep.subr.bf16.mxu1 %v4823_v30 }
 0xa34   :  { %2129 = vmatpush1.bf16.msra.mxu0 %v4826_v38  ;;  %2170 = vmatpush1.bf16.msra.mxu1 %v4829_v41 }
 0xa35   :  { %2130 = vmatprep.subr.bf16.mxu0 %v4832_v0  ;;  %2171 = vmatprep.subr.bf16.mxu1 %v4835_v5 }
 0xa38   :  { %2131 = vmatpush1.bf16.msra.mxu0 %v4838_v3  ;;  %2172 = vmatpush1.bf16.msra.mxu1 %v4841_v62 }
 0xa39   :  { %2132 = vmatprep.subr.bf16.mxu0 %v4844_v19  ;;  %2173 = vmatprep.subr.bf16.mxu1 %v6033_v23  ;;  %v6043_v19 = vld [vmem:[#allocation102_spill] sm:$0xff] }
 0xa3c   :  { %2133 = vmatpush1.bf16.msra.mxu0 %v4850_v7  ;;  %2174 = vmatpush1.bf16.msra.mxu1 %v4853_v32 }
 0xa3d   :  { %2134 = vmatprep.subr.bf16.mxu0 %v4856_v42  ;;  %2175 = vmatprep.subr.bf16.mxu1 %v4859_v8  ;;  %v6036_v8 = vld [vmem:[#allocation48_spill] sm:$0xff] }
 0xa40   :  { %2135 = vmatpush1.bf16.msra.mxu0 %v4862_v9  ;;  %2176 = vmatpush1.bf16.msra.mxu1 %v4865_v14  ;;  %v6037_v9 = vld [vmem:[#allocation50_spill] sm:$0xff] }
 0xa96   :  { %v1927_v25 = vpop.f32.mrb[68].mxu0  ;;  %v1968_v22 = vpop.f32.mrb[68].mxu1 }
 0xa97   :  { %v2061_v4 = vadd.f32 %v1927_v25, %v6034_v48  ;;  %v1929_v24 = vpop.f32.mrb[69].mxu0  ;;  %v1970_v44 = vpop.f32.mrb[69].mxu1  ;;  %v2063_v16 = vadd.f32 %v1968_v22, %v6036_v8 }
 0xa98   :  { %v2062_v26 = vadd.f32 %v1929_v24, %v6035_v55  ;;  %v1931_v47 = vpop.f32.mrb[70].mxu0  ;;  %v1972_v7 = vpop.f32.mrb[70].mxu1  ;;  %v2064_v14 = vadd.f32 %v1970_v44, %v6037_v9 }
 0xa99   :  { %v2085_v15 = vmul.f32 0.5, %v2061_v4  ;;  %v1932_v32 = vpop.f32.mrb[71].mxu0  ;;  %v1973_v6 = vpop.f32.mrb[71].mxu1 }
 0xa9a   :  { %v2089_v42 = vmul.f32 0.5, %v2062_v26  ;;  %v2094_v29 = vmul.f32 0.5, %v2064_v14 }
 0xa9b   :  { %2421 = vtanh.f32 %v2085_v15 }
 0xa9c   :  { %2423 = vtanh.f32 %v2089_v42 }
 0xa9d   :  { %2425 = vtanh.f32 %v2063_v16 }
 0xa9e   :  { %2427 = vtanh.f32 %v2094_v29 }
 0xaa5   :  { %v2422_v54 = vpop.eup %2421 }
 0xaa6   :  { %v2424_v46 = vpop.eup %2423  ;;  %v2087_v49 = vmul.f32 0.5, %v2422_v54 }
 0xaa7   :  { %v2091_v20 = vmul.f32 0.5, %v2424_v46  ;;  %v2426_v27 = vpop.eup %2425 }
 0xaa8   :  { %v2088_v12 = vadd.f32 0.5, %v2087_v49  ;;  %v2428_v36 = vpop.eup %2427 }
 0xaa9   :  { %v2092_v10 = vadd.f32 0.5, %v2091_v20  ;;  %v2096_v40 = vmul.f32 0.5, %v2428_v36 }
 0xaaa   :  { %v2099_v37 = vmul.f32 %v2426_v27, %v2088_v12 }
 0xaab   :  { %v2098_v13 = vmul.f32 %v2092_v10, %v6038_v53  ;;  %v2097_v50 = vadd.f32 0.5, %v2096_v40 }
 0xaad   :  { %v2100_v31 = vadd.f32 %v2099_v37, %v2098_v13 }
 0xaaf   :  { %2429 = vtanh.f32 %v2100_v31 }
 0xab9   :  { %v2430_v51 = vpop.eup %2429 }
 0xaba   :  { %v2102_v58 = vmul.f32 %v2430_v51, %v2097_v50 }
 0xabc   :  { %v2103_v26 = vpack.c.bf16 %v2102_v58, %v2102_v58 }
 0xad6   :  { %v2009_v61 = vpop.f32.mrb[72].mxu0  ;;  %v2050_v39 = vpop.f32.mrb[72].mxu1 }
 0xad7   :  { %v2057_v28 = vadd.f32 %v2009_v61, %v6039_v43  ;;  %v2011_v60 = vpop.f32.mrb[73].mxu0  ;;  %v2052_v57 = vpop.f32.mrb[73].mxu1  ;;  %v2059_v59 = vadd.f32 %v2050_v39, %v6041_v45 }
 0xad8   :  { %v2058_v35 = vadd.f32 %v2011_v60, %v6040_v63  ;;  %v2013_v2 = vpop.f32.mrb[74].mxu0  ;;  %v2054_v11 = vpop.f32.mrb[74].mxu1  ;;  %v2060_v17 = vadd.f32 %v2052_v57, %v6042_v1 }
 0xad9   :  { %v2065_v33 = vmul.f32 0.5, %v2057_v28  ;;  %v2014_v34 = vpop.f32.mrb[75].mxu0  ;;  %v2055_v52 = vpop.f32.mrb[75].mxu1 }
 0xada   :  { %v2069_v56 = vmul.f32 0.5, %v2058_v35  ;;  %v2074_v18 = vmul.f32 0.5, %v2060_v17 }
 0xadb   :  { %2431 = vtanh.f32 %v2065_v33 }
 0xadc   :  { %2433 = vtanh.f32 %v2069_v56 }
 0xadd   :  { %2435 = vtanh.f32 %v2059_v59 }
 0xade   :  { %2437 = vtanh.f32 %v2074_v18 }
 0xae5   :  { %v2432_v21 = vpop.eup %2431 }
 0xae6   :  { %v2434_v30 = vpop.eup %2433  ;;  %v2067_v38 = vmul.f32 0.5, %v2432_v21 }
 0xae7   :  { %v2071_v41 = vmul.f32 0.5, %v2434_v30  ;;  %v2436_v5 = vpop.eup %2435 }
 0xae8   :  { %v2068_v0 = vadd.f32 0.5, %v2067_v38  ;;  %v2438_v22 = vpop.eup %2437 }
 0xae9   :  { %v2072_v3 = vadd.f32 0.5, %v2071_v41  ;;  %v2076_v48 = vmul.f32 0.5, %v2438_v22 }
 0xaea   :  { %v2079_v62 = vmul.f32 %v2436_v5, %v2068_v0 }
 0xaeb   :  { %v2078_v23 = vmul.f32 %v2072_v3, %v6043_v19  ;;  %v2077_v4 = vadd.f32 0.5, %v2076_v48 }
 0xaed   :  { %v2080_v25 = vadd.f32 %v2079_v62, %v2078_v23 }
 0xaef   :  { %2439 = vtanh.f32 %v2080_v25 }
 0xaf9   :  { %v2440_v24 = vpop.eup %2439 }
 0xafa   :  { %v2082_v44 = vmul.f32 %v2440_v24, %v2077_v4 }
 0xafc   :  { %v2083_v55 = vpack.c.bf16 %v2082_v44, %v2082_v44 }
 0xafe   :  { %2084 = vst [vmem:[#allocation7 + $0x18] sm:$0xf] %v2083_v55  ;;  %2136 = vmatprep.mubr.bf16.mxu0 %v2083_v55  ;;  %2177 = vmatprep.mubr.bf16.mxu1 %v2083_v55 }
 0xaff   :  { %2137 = vmatmul.mubr.bf16.vlgmr.msra.gmra.mrb[76].mxu0 %v2103_v26  ;;  %2178 = vmatmul.mubr.bf16.vlgmr.msra.gmra.mrb[76].mxu1 %v2103_v26 }
 0xbd2   :  { %v2138_v47 = vpop.f32.mrb[76].mxu0  ;;  %v2179_v7 = vpop.f32.mrb[76].mxu1 }
 0xbd3   :  { %v2186_v15 = vadd.f32 %v2138_v47, %v6039_v43  ;;  %v2140_v32 = vpop.f32.mrb[77].mxu0  ;;  %v2181_v6 = vpop.f32.mrb[77].mxu1  ;;  %v2188_v46 = vadd.f32 %v2179_v7, %v6041_v45 }
 0xbd4   :  { %v2187_v42 = vadd.f32 %v2140_v32, %v6040_v63  ;;  %v2142_v8 = vpop.f32.mrb[78].mxu0  ;;  %v2183_v16 = vpop.f32.mrb[78].mxu1  ;;  %v2189_v49 = vadd.f32 %v2181_v6, %v6042_v1 }
 0xbd5   :  { %v2190_v9 = vmul.f32 0.5, %v2186_v15  ;;  %v2143_v14 = vpop.f32.mrb[79].mxu0  ;;  %v2184_v29 = vpop.f32.mrb[79].mxu1 }
 0xbd6   :  { %v2194_v54 = vmul.f32 0.5, %v2187_v42  ;;  %v2199_v20 = vmul.f32 0.5, %v2189_v49 }
 0xbd7   :  { %2441 = vtanh.f32 %v2190_v9 }
 0xbd8   :  { %2443 = vtanh.f32 %v2194_v54 }
 0xbd9   :  { %2445 = vtanh.f32 %v2188_v46 }
 0xbda   :  { %2447 = vtanh.f32 %v2199_v20 }
 0xbe1   :  { %v2442_v12 = vpop.eup %2441 }
 0xbe2   :  { %v2444_v27 = vpop.eup %2443  ;;  %v2192_v10 = vmul.f32 0.5, %v2442_v12 }
 0xbe3   :  { %v2196_v37 = vmul.f32 0.5, %v2444_v27  ;;  %v2446_v13 = vpop.eup %2445 }
 0xbe4   :  { %v2193_v53 = vadd.f32 0.5, %v2192_v10  ;;  %v2448_v51 = vpop.eup %2447 }
 0xbe5   :  { %v2197_v31 = vadd.f32 0.5, %v2196_v37  ;;  %v2201_v58 = vmul.f32 0.5, %v2448_v51 }
 0xbe6   :  { %v2204_v36 = vmul.f32 %v2446_v13, %v2193_v53 }
 0xbe7   :  { %v2203_v40 = vmul.f32 %v2197_v31, %v2080_v25  ;;  %v2202_v61 = vadd.f32 0.5, %v2201_v58 }
 0xbe9   :  { %v2205_v50 = vadd.f32 %v2204_v36, %v2203_v40 }
 0xbeb   :  { %2449 = vtanh.f32 %v2205_v50 }
 0xbf5   :  { %v2450_v39 = vpop.eup %2449 }
 0xbf6   :  { %v2207_v43 = vmul.f32 %v2450_v39, %v2202_v61 }
 0xbf8   :  { %v2208_v28 = vpack.c.bf16 %v2207_v43, %v2207_v43 }
 0xbfa   :  { %2209 = vst [vmem:[#allocation7 + $0x1c] sm:$0xf] %v2208_v28 }
 0xbfb   :  { %2740 = shalt.err (!%p2737_p12)
}
 0xbfc   :  { %s2741_s14 = scalar_lea.hbm %s4972_s9, 512 }
 0xbfd   :  { %p2742_p13 = scmp.ne.s32.totalorder %s4972_s9, %s2741_s14  ;;  %p2745_p0 = scmp.lt.u32.totalorder %s2741_s14, %s4972_s9 }
 0xbff   :  { %p2747_p1 = pnand %p2745_p0, %p2742_p13 }
 0xc01   :  { %2750 = shalt.err (!%p2747_p1)
}
 0xc02   :  { %2221 = dma.vmem_to_hbm [thread:$0]  %s2216_s4, 512, %s4972_s9, [#allocation6], %s2763_s26, %s2763_s26, %s2767_s10  }
 0xc03   :  { %2755 = dma.done.wait [#allocation6], 512  }
 0xc04   :  { %2756 = vsyncadd [#allocation6], 4294966784 }
 0xc05   :  { %2225 = vsyncpa [#allocation5], 1 }
 0xc06   :  { %2226 = vsyncpa [#allocation6], 1 }
 0xc07   :  { %2227 = vsyncmov [#allocation3] }
 0xc0a   :  { %s2228_s21 = vpop.sfrf %2227 }
 0xc0b   :  { %p2259_p2 = scmp.ne.s32.totalorder %s2228_s21, 0 }
 0xc0d   :  { %2232 = shalt.err (%p2259_p2)  }

</bundles_post_ra>
